<compile_context>
chip_gen: v6e
topology: v6e:2x2x1
jax: 0.10.0
libtpu: 0.0.40
codegen_flags: <defaults>
</compile_context>

<pallas_src>
import functools
import math

import jax
import jax.numpy as jnp
from jax.experimental import pallas as pl
from jax.experimental.pallas import tpu as pltpu


# --------------------------------------------------------------------------- fused kernel
def _fused_block_kernel(x_ref, hmask_ref, wc_ref, bc_ref,
                        win1_ref, bin1_ref, wout1_ref, bout1_ref, g1_ref, bt1_ref,
                        win2_ref, bin2_ref, wout2_ref, bout2_ref, ge1_ref, be1_ref,
                        wl1_ref, bl1_ref, wl2_ref, bl2_ref, ge2_ref, be2_ref,
                        o_ref, *, seq_len, nh_channels, embed_dim, num_heads):
    L, NC, E = seq_len, nh_channels, embed_dim
    scale = 1.0 / math.sqrt(E // num_heads)

    # ---- 1x1 conv (channel mixing) directly in the (L, c, E) sequence layout.
    wc = wc_ref[...].astype(jnp.bfloat16)                    # (NC, Cin)
    bc = bc_ref[...]                                         # (NC, 1) f32
    xc = jnp.concatenate(
        [jnp.dot(wc, x_ref[l], preferred_element_type=jnp.float32) + bc
         for l in range(L)], axis=0)                         # (L*NC, E) f32, rows (l, c)

    hmask = hmask_ref[...]                                   # (E, E) f32 block-diag per head

    def layer_norm(y, g_ref, b_ref):
        mu = jnp.mean(y, axis=-1, keepdims=True)
        yc = y - mu
        var = jnp.mean(yc * yc, axis=-1, keepdims=True)
        return yc * jax.lax.rsqrt(var + 1e-5) * g_ref[...] + b_ref[...]

    def attend(q, k, v):
        # q/k/v: (L*NC, E) f32, lanes head-major (h*Dh + d).  Attention runs over the
        # L axis (the original batch dim), batched over channels and heads.
        # TODO(synk): this unrolls the L x L score set statically; fine for the tiny L
        #             this module implies, revisit (online softmax) for large L.
        qs = [q[i * NC:(i + 1) * NC] for i in range(L)]
        ks = [k[i * NC:(i + 1) * NC] for i in range(L)]
        vs = [v[i * NC:(i + 1) * NC] for i in range(L)]
        outs = []
        for i in range(L):
            # Per-head scores, already broadcast across each head's Dh lanes (one MXU op).
            sb = [jnp.dot(qs[i] * ks[j], hmask, preferred_element_type=jnp.float32)
                  for j in range(L)]
            m = sb[0]
            for j in range(1, L):
                m = jnp.maximum(m, sb[j])
            es = [jnp.exp(s - m) for s in sb]
            num, den = es[0] * vs[0], es[0]
            for j in range(1, L):
                num = num + es[j] * vs[j]
                den = den + es[j]
            outs.append(num * pl.reciprocal(den, approx=True))   # den >= 1, EUP slot
        return jnp.concatenate(outs, axis=0)

    def mha(rows_f32, win_ref, bin_ref, wout_ref, bout_ref):
        qkv = jnp.dot(rows_f32.astype(jnp.bfloat16), win_ref[...],
                      preferred_element_type=jnp.float32) + bin_ref[...]   # (rows, 3E)
        q = qkv[:, 0:E] * scale
        k = qkv[:, E:2 * E]
        v = qkv[:, 2 * E:3 * E]
        ctx = attend(q, k, v)
        return jnp.dot(ctx.astype(jnp.bfloat16), wout_ref[...],
                       preferred_element_type=jnp.float32) + bout_ref[...]

    # ---- TransformerBlock: MHA(q=k=v=xc) + residual(query) + norm1  (norm2 unused).
    y1 = layer_norm(xc + mha(xc, win1_ref, bin1_ref, wout1_ref, bout1_ref),
                    g1_ref, bt1_ref)

    # ---- nn.TransformerEncoderLayer (post-norm, relu FFN).
    # TODO(synk): Dropout(p=0.1) layers are identity in eval mode; train-mode RNG dropout
    #             is not implemented here.
    z1 = layer_norm(y1 + mha(y1, win2_ref, bin2_ref, wout2_ref, bout2_ref),
                    ge1_ref, be1_ref)
    h = jnp.dot(z1.astype(jnp.bfloat16), wl1_ref[...],
                preferred_element_type=jnp.float32) + bl1_ref[...]
    h = jnp.maximum(h, 0.0)                                   # fused ReLU
    ff = jnp.dot(h.astype(jnp.bfloat16), wl2_ref[...],
                 preferred_element_type=jnp.float32) + bl2_ref[...]
    z2 = layer_norm(z1 + ff, ge2_ref, be2_ref)

    for l in range(L):
        o_ref[l] = z2[l * NC:(l + 1) * NC].astype(o_ref.dtype)


# --------------------------------------------------------------------------- wrapper
def convlstm_transformer_forward(x_nchw, P, *, num_heads=4):
    B, C, H, W = x_nchw.shape
    E = H * W
    assert E % num_heads == 0

    # Channel-halves grid: 2 "parallel" steps so v7x's second TensorCore gets work,
    # as long as the half block is still (8,128)-tileable; otherwise one big block.
    n_blocks = 2 if (C % 2 == 0 and (C // 2) % 8 == 0) else 1
    NC = C // n_blocks

    x_seq = x_nchw.reshape(B, C, E).astype(jnp.bfloat16)
    head_ids = jnp.arange(E, dtype=jnp.int32) // (E // num_heads)
    hmask = (head_ids[:, None] == head_ids[None, :]).astype(jnp.float32)

    operands = [
        x_seq, hmask, P["conv"]["w"], P["conv"]["b"],
        P["mha1"]["w_in"], P["mha1"]["b_in"], P["mha1"]["w_out"], P["mha1"]["b_out"],
        P["norm1"]["g"], P["norm1"]["b"],
        P["enc_attn"]["w_in"], P["enc_attn"]["b_in"],
        P["enc_attn"]["w_out"], P["enc_attn"]["b_out"],
        P["enc_norm1"]["g"], P["enc_norm1"]["b"],
        P["enc_lin1"]["w"], P["enc_lin1"]["b"],
        P["enc_lin2"]["w"], P["enc_lin2"]["b"],
        P["enc_norm2"]["g"], P["enc_norm2"]["b"],
    ]

    def _const2(a):  # full 2-D array, constant block index -> fetched once, stays resident
        return pl.BlockSpec(a.shape, lambda i: (0, 0))

    in_specs = [
        pl.BlockSpec((B, C, E), lambda i: (0, 0, 0)),   # x: conv mixes all channels
        _const2(hmask),
        pl.BlockSpec((NC, C), lambda i: (i, 0)),        # conv weight rows for this half
        pl.BlockSpec((NC, 1), lambda i: (i, 0)),        # conv bias rows for this half
    ] + [_const2(a) for a in operands[4:]]

    out_specs = pl.BlockSpec((B, NC, E), lambda i: (0, i, 0))

    # Right-sized VMEM budget: double-buffered operands + output block + headroom (~13 MiB).
    def _nbytes(a):
        return int(math.prod(a.shape)) * jnp.dtype(a.dtype).itemsize
    vmem_limit = int(2 * (sum(_nbytes(a) for a in operands) + B * NC * E * 4) + (8 << 20))

    kernel = functools.partial(_fused_block_kernel, seq_len=B, nh_channels=NC,
                               embed_dim=E, num_heads=num_heads)
    out = pl.pallas_call(
        kernel,
        grid=(n_blocks,),
        in_specs=in_specs,
        out_specs=out_specs,
        out_shape=jax.ShapeDtypeStruct((B, C, E), jnp.float32),
        compiler_params=pltpu.CompilerParams(
            dimension_semantics=("parallel",),
            vmem_limit_bytes=vmem_limit),
    )(*operands)
    return out.reshape(B, C, H, W)


# --------------------------------------------------------------------------- deterministic parameters
def make_params(key, *, in_channels, out_channels, embed_dim, forward_expansion=4):
    E = embed_dim
    F = E * forward_expansion
    cnt = [0]

    def nk():
        cnt[0] += 1
        return jax.random.fold_in(key, cnt[0])

    def uni(shape, bound, dtype=jnp.float32):
        return jax.random.uniform(nk(), shape, jnp.float32, -bound, bound).astype(dtype)

    def mha_p():
        xav = math.sqrt(6.0 / (E + 3 * E))               # xavier_uniform_ on in_proj_weight
        kaim = 1.0 / math.sqrt(E)
        return {"w_in": uni((E, 3 * E), xav, jnp.bfloat16),   # (in, out): [q | k | v] columns
                "b_in": jnp.zeros((1, 3 * E), jnp.float32),
                "w_out": uni((E, E), kaim, jnp.bfloat16),
                "b_out": jnp.zeros((1, E), jnp.float32)}      # PyTorch zero-inits out_proj bias

    def ln_p():
        return {"g": jnp.ones((1, E), jnp.float32), "b": jnp.zeros((1, E), jnp.float32)}

    def lin_p(fi, fo):
        b = 1.0 / math.sqrt(fi)
        return {"w": uni((fi, fo), b, jnp.bfloat16), "b": uni((1, fo), b)}

    cb = 1.0 / math.sqrt(in_channels)
    return {
        # conv kept f32: its grid-sliced (NC, C) block follows f32 (8,128) tiling rules.
        "conv": {"w": uni((out_channels, in_channels), cb),
                 "b": uni((out_channels, 1), cb)},
        "mha1": mha_p(), "norm1": ln_p(),
        "enc_attn": mha_p(), "enc_norm1": ln_p(), "enc_norm2": ln_p(),
        "enc_lin1": lin_p(E, F), "enc_lin2": lin_p(F, E),
    }


# --------------------------------------------------------------------------- main
if __name__ == "__main__":
    # batch=2, channels=16, spatial=16x16 -> lstm_length = embed_dim = 256, num_heads=4
    B, C, H, W = 2, 16, 16, 16
    root = jax.random.PRNGKey(0)
    params = make_params(jax.random.fold_in(root, 1),
                         in_channels=C, out_channels=C, embed_dim=H * W,
                         forward_expansion=4)
    x = jax.random.normal(jax.random.fold_in(root, 2), (B, C, H, W), dtype=jnp.float32)

    fwd = jax.jit(lambda inp: convlstm_transformer_forward(inp, params, num_heads=4))
    y = jax.block_until_ready(fwd(x))
    assert y.shape == (B, C, H, W), y.shape
    assert bool(jnp.all(jnp.isfinite(y)))
    print("KERNEL_OK")
</pallas_src>

<mosaic_0001>
module attributes {stable_mosaic.version = 11 : i64} {
  func.func @_fused_block_kernel(%arg0: i32, %arg1: memref<2x16x256xbf16, #tpu.memory_space<vmem>>, %arg2: memref<256x256xf32, #tpu.memory_space<vmem>>, %arg3: memref<8x16xf32, #tpu.memory_space<vmem>>, %arg4: memref<8x1xf32, #tpu.memory_space<vmem>>, %arg5: memref<256x768xbf16, #tpu.memory_space<vmem>>, %arg6: memref<1x768xf32, #tpu.memory_space<vmem>>, %arg7: memref<256x256xbf16, #tpu.memory_space<vmem>>, %arg8: memref<1x256xf32, #tpu.memory_space<vmem>>, %arg9: memref<1x256xf32, #tpu.memory_space<vmem>>, %arg10: memref<1x256xf32, #tpu.memory_space<vmem>>, %arg11: memref<256x768xbf16, #tpu.memory_space<vmem>>, %arg12: memref<1x768xf32, #tpu.memory_space<vmem>>, %arg13: memref<256x256xbf16, #tpu.memory_space<vmem>>, %arg14: memref<1x256xf32, #tpu.memory_space<vmem>>, %arg15: memref<1x256xf32, #tpu.memory_space<vmem>>, %arg16: memref<1x256xf32, #tpu.memory_space<vmem>>, %arg17: memref<256x1024xbf16, #tpu.memory_space<vmem>>, %arg18: memref<1x1024xf32, #tpu.memory_space<vmem>>, %arg19: memref<1024x256xbf16, #tpu.memory_space<vmem>>, %arg20: memref<1x256xf32, #tpu.memory_space<vmem>>, %arg21: memref<1x256xf32, #tpu.memory_space<vmem>>, %arg22: memref<1x256xf32, #tpu.memory_space<vmem>>, %arg23: memref<2x8x256xf32, #tpu.memory_space<vmem>>) attributes {dimension_semantics = [#tpu.dimension_semantics<parallel>], iteration_bounds = array<i64: 2>, scalar_prefetch = 0 : i64, scratch_operands = 0 : i64, tpu.core_type = #tpu.core_type<tc>, window_params = [{pipeline_mode = #tpu.pipeline_mode<synchronous>, transform_indices = @transform_0, window_bounds = array<i64: 2, 16, 256>}, {pipeline_mode = #tpu.pipeline_mode<synchronous>, transform_indices = @transform_1, window_bounds = array<i64: 256, 256>}, {transform_indices = @transform_2, window_bounds = array<i64: 8, 16>}, {transform_indices = @transform_3, window_bounds = array<i64: 8, 1>}, {pipeline_mode = #tpu.pipeline_mode<synchronous>, transform_indices = @transform_4, window_bounds = array<i64: 256, 768>}, {pipeline_mode = #tpu.pipeline_mode<synchronous>, transform_indices = @transform_5, window_bounds = array<i64: 1, 768>}, {pipeline_mode = #tpu.pipeline_mode<synchronous>, transform_indices = @transform_6, window_bounds = array<i64: 256, 256>}, {pipeline_mode = #tpu.pipeline_mode<synchronous>, transform_indices = @transform_7, window_bounds = array<i64: 1, 256>}, {pipeline_mode = #tpu.pipeline_mode<synchronous>, transform_indices = @transform_8, window_bounds = array<i64: 1, 256>}, {pipeline_mode = #tpu.pipeline_mode<synchronous>, transform_indices = @transform_9, window_bounds = array<i64: 1, 256>}, {pipeline_mode = #tpu.pipeline_mode<synchronous>, transform_indices = @transform_10, window_bounds = array<i64: 256, 768>}, {pipeline_mode = #tpu.pipeline_mode<synchronous>, transform_indices = @transform_11, window_bounds = array<i64: 1, 768>}, {pipeline_mode = #tpu.pipeline_mode<synchronous>, transform_indices = @transform_12, window_bounds = array<i64: 256, 256>}, {pipeline_mode = #tpu.pipeline_mode<synchronous>, transform_indices = @transform_13, window_bounds = array<i64: 1, 256>}, {pipeline_mode = #tpu.pipeline_mode<synchronous>, transform_indices = @transform_14, window_bounds = array<i64: 1, 256>}, {pipeline_mode = #tpu.pipeline_mode<synchronous>, transform_indices = @transform_15, window_bounds = array<i64: 1, 256>}, {pipeline_mode = #tpu.pipeline_mode<synchronous>, transform_indices = @transform_16, window_bounds = array<i64: 256, 1024>}, {pipeline_mode = #tpu.pipeline_mode<synchronous>, transform_indices = @transform_17, window_bounds = array<i64: 1, 1024>}, {pipeline_mode = #tpu.pipeline_mode<synchronous>, transform_indices = @transform_18, window_bounds = array<i64: 1024, 256>}, {pipeline_mode = #tpu.pipeline_mode<synchronous>, transform_indices = @transform_19, window_bounds = array<i64: 1, 256>}, {pipeline_mode = #tpu.pipeline_mode<synchronous>, transform_indices = @transform_20, window_bounds = array<i64: 1, 256>}, {pipeline_mode = #tpu.pipeline_mode<synchronous>, transform_indices = @transform_21, window_bounds = array<i64: 1, 256>}, {transform_indices = @transform_22, window_bounds = array<i64: 2, 8, 256>}]} {
    %c0 = arith.constant 0 : index
    %c0_0 = arith.constant 0 : index
    %0 = vector.load %arg3[%c0, %c0_0] : memref<8x16xf32, #tpu.memory_space<vmem>>, vector<8x16xf32>
    %1 = arith.truncf %0 : vector<8x16xf32> to vector<8x16xbf16>
    %c0_1 = arith.constant 0 : index
    %c0_2 = arith.constant 0 : index
    %2 = vector.load %arg4[%c0_1, %c0_2] : memref<8x1xf32, #tpu.memory_space<vmem>>, vector<8x1xf32>
    %c0_3 = arith.constant 0 : index
    %c0_4 = arith.constant 0 : index
    %c0_5 = arith.constant 0 : index
    %3 = vector.load %arg1[%c0_3, %c0_4, %c0_5] : memref<2x16x256xbf16, #tpu.memory_space<vmem>>, vector<1x16x256xbf16>
    %4 = vector.shape_cast %3 : vector<1x16x256xbf16> to vector<16x256xbf16>
    %cst = arith.constant dense<0.000000e+00> : vector<8x256xf32>
    %5 = tpu.matmul %1, %4, %cst {dimension_numbers = #tpu.dot_dimension_numbers<[1], [0], [0], [1], [0, 0, 1, 1], [], []>} : vector<8x16xbf16>, vector<16x256xbf16>, vector<8x256xf32> -> vector<8x256xf32>
    %6 = vector.broadcast %2 : vector<8x1xf32> to vector<8x256xf32>
    %7 = arith.addf %5, %6 : vector<8x256xf32>
    %c1 = arith.constant 1 : index
    %c0_6 = arith.constant 0 : index
    %c0_7 = arith.constant 0 : index
    %8 = vector.load %arg1[%c1, %c0_6, %c0_7] : memref<2x16x256xbf16, #tpu.memory_space<vmem>>, vector<1x16x256xbf16>
    %9 = vector.shape_cast %8 : vector<1x16x256xbf16> to vector<16x256xbf16>
    %cst_8 = arith.constant dense<0.000000e+00> : vector<8x256xf32>
    %10 = tpu.matmul %1, %9, %cst_8 {dimension_numbers = #tpu.dot_dimension_numbers<[1], [0], [0], [1], [0, 0, 1, 1], [], []>} : vector<8x16xbf16>, vector<16x256xbf16>, vector<8x256xf32> -> vector<8x256xf32>
    %11 = vector.broadcast %2 : vector<8x1xf32> to vector<8x256xf32>
    %12 = arith.addf %10, %11 : vector<8x256xf32>
    %13 = tpu.concatenate %7, %12 in 0 : vector<8x256xf32>, vector<8x256xf32> -> vector<16x256xf32>
    %c0_9 = arith.constant 0 : index
    %c0_10 = arith.constant 0 : index
    %14 = vector.load %arg2[%c0_9, %c0_10] : memref<256x256xf32, #tpu.memory_space<vmem>>, vector<256x256xf32>
    %15 = arith.truncf %13 : vector<16x256xf32> to vector<16x256xbf16>
    %c0_11 = arith.constant 0 : index
    %c0_12 = arith.constant 0 : index
    %16 = vector.load %arg5[%c0_11, %c0_12] : memref<256x768xbf16, #tpu.memory_space<vmem>>, vector<256x768xbf16>
    %cst_13 = arith.constant dense<0.000000e+00> : vector<16x768xf32>
    %17 = tpu.matmul %15, %16, %cst_13 {dimension_numbers = #tpu.dot_dimension_numbers<[1], [0], [0], [1], [0, 0, 1, 1], [], []>} : vector<16x256xbf16>, vector<256x768xbf16>, vector<16x768xf32> -> vector<16x768xf32>
    %c0_14 = arith.constant 0 : index
    %c0_15 = arith.constant 0 : index
    %18 = vector.load %arg6[%c0_14, %c0_15] : memref<1x768xf32, #tpu.memory_space<vmem>>, vector<1x768xf32>
    %19 = vector.broadcast %18 : vector<1x768xf32> to vector<16x768xf32>
    %20 = arith.addf %17, %19 : vector<16x768xf32>
    %21 = vector.extract_strided_slice %20 {offsets = [0, 0], sizes = [16, 256], strides = [1, 1]} : vector<16x768xf32> to vector<16x256xf32>
    %cst_16 = arith.constant 1.250000e-01 : f32
    %22 = vector.broadcast %cst_16 : f32 to vector<16x256xf32>
    %23 = arith.mulf %21, %22 : vector<16x256xf32>
    %24 = vector.extract_strided_slice %20 {offsets = [0, 256], sizes = [16, 256], strides = [1, 1]} : vector<16x768xf32> to vector<16x256xf32>
    %25 = vector.extract_strided_slice %20 {offsets = [0, 512], sizes = [16, 256], strides = [1, 1]} : vector<16x768xf32> to vector<16x256xf32>
    %26 = vector.extract_strided_slice %23 {offsets = [0, 0], sizes = [8, 256], strides = [1, 1]} : vector<16x256xf32> to vector<8x256xf32>
    %27 = vector.extract_strided_slice %23 {offsets = [8, 0], sizes = [8, 256], strides = [1, 1]} : vector<16x256xf32> to vector<8x256xf32>
    %28 = vector.extract_strided_slice %24 {offsets = [0, 0], sizes = [8, 256], strides = [1, 1]} : vector<16x256xf32> to vector<8x256xf32>
    %29 = vector.extract_strided_slice %24 {offsets = [8, 0], sizes = [8, 256], strides = [1, 1]} : vector<16x256xf32> to vector<8x256xf32>
    %30 = vector.extract_strided_slice %25 {offsets = [0, 0], sizes = [8, 256], strides = [1, 1]} : vector<16x256xf32> to vector<8x256xf32>
    %31 = vector.extract_strided_slice %25 {offsets = [8, 0], sizes = [8, 256], strides = [1, 1]} : vector<16x256xf32> to vector<8x256xf32>
    %32 = arith.mulf %26, %28 : vector<8x256xf32>
    %cst_17 = arith.constant dense<0.000000e+00> : vector<8x256xf32>
    %33 = tpu.matmul %32, %14, %cst_17 {dimension_numbers = #tpu.dot_dimension_numbers<[1], [0], [0], [1], [0, 0, 1, 1], [], []>} : vector<8x256xf32>, vector<256x256xf32>, vector<8x256xf32> -> vector<8x256xf32>
    %34 = arith.mulf %26, %29 : vector<8x256xf32>
    %cst_18 = arith.constant dense<0.000000e+00> : vector<8x256xf32>
    %35 = tpu.matmul %34, %14, %cst_18 {dimension_numbers = #tpu.dot_dimension_numbers<[1], [0], [0], [1], [0, 0, 1, 1], [], []>} : vector<8x256xf32>, vector<256x256xf32>, vector<8x256xf32> -> vector<8x256xf32>
    %36 = arith.maximumf %33, %35 : vector<8x256xf32>
    %37 = arith.subf %33, %36 : vector<8x256xf32>
    %38 = math.exp %37 : vector<8x256xf32>
    %39 = arith.subf %35, %36 : vector<8x256xf32>
    %40 = math.exp %39 : vector<8x256xf32>
    %41 = arith.mulf %38, %30 : vector<8x256xf32>
    %42 = arith.mulf %40, %31 : vector<8x256xf32>
    %43 = arith.addf %41, %42 : vector<8x256xf32>
    %44 = arith.addf %38, %40 : vector<8x256xf32>
    %45 = tpu.reciprocal %44 {approx = true} : vector<8x256xf32> -> vector<8x256xf32>
    %46 = arith.mulf %43, %45 : vector<8x256xf32>
    %47 = arith.mulf %27, %28 : vector<8x256xf32>
    %cst_19 = arith.constant dense<0.000000e+00> : vector<8x256xf32>
    %48 = tpu.matmul %47, %14, %cst_19 {dimension_numbers = #tpu.dot_dimension_numbers<[1], [0], [0], [1], [0, 0, 1, 1], [], []>} : vector<8x256xf32>, vector<256x256xf32>, vector<8x256xf32> -> vector<8x256xf32>
    %49 = arith.mulf %27, %29 : vector<8x256xf32>
    %cst_20 = arith.constant dense<0.000000e+00> : vector<8x256xf32>
    %50 = tpu.matmul %49, %14, %cst_20 {dimension_numbers = #tpu.dot_dimension_numbers<[1], [0], [0], [1], [0, 0, 1, 1], [], []>} : vector<8x256xf32>, vector<256x256xf32>, vector<8x256xf32> -> vector<8x256xf32>
    %51 = arith.maximumf %48, %50 : vector<8x256xf32>
    %52 = arith.subf %48, %51 : vector<8x256xf32>
    %53 = math.exp %52 : vector<8x256xf32>
    %54 = arith.subf %50, %51 : vector<8x256xf32>
    %55 = math.exp %54 : vector<8x256xf32>
    %56 = arith.mulf %53, %30 : vector<8x256xf32>
    %57 = arith.mulf %55, %31 : vector<8x256xf32>
    %58 = arith.addf %56, %57 : vector<8x256xf32>
    %59 = arith.addf %53, %55 : vector<8x256xf32>
    %60 = tpu.reciprocal %59 {approx = true} : vector<8x256xf32> -> vector<8x256xf32>
    %61 = arith.mulf %58, %60 : vector<8x256xf32>
    %62 = tpu.concatenate %46, %61 in 0 : vector<8x256xf32>, vector<8x256xf32> -> vector<16x256xf32>
    %63 = arith.truncf %62 : vector<16x256xf32> to vector<16x256xbf16>
    %c0_21 = arith.constant 0 : index
    %c0_22 = arith.constant 0 : index
    %64 = vector.load %arg7[%c0_21, %c0_22] : memref<256x256xbf16, #tpu.memory_space<vmem>>, vector<256x256xbf16>
    %cst_23 = arith.constant dense<0.000000e+00> : vector<16x256xf32>
    %65 = tpu.matmul %63, %64, %cst_23 {dimension_numbers = #tpu.dot_dimension_numbers<[1], [0], [0], [1], [0, 0, 1, 1], [], []>} : vector<16x256xbf16>, vector<256x256xbf16>, vector<16x256xf32> -> vector<16x256xf32>
    %c0_24 = arith.constant 0 : index
    %c0_25 = arith.constant 0 : index
    %66 = vector.load %arg8[%c0_24, %c0_25] : memref<1x256xf32, #tpu.memory_space<vmem>>, vector<1x256xf32>
    %67 = vector.broadcast %66 : vector<1x256xf32> to vector<16x256xf32>
    %68 = arith.addf %65, %67 : vector<16x256xf32>
    %69 = arith.addf %13, %68 : vector<16x256xf32>
    %cst_26 = arith.constant dense<0.000000e+00> : vector<16xf32>
    %70 = vector.multi_reduction <add>, %69, %cst_26 [1] : vector<16x256xf32> to vector<16xf32>
    %71 = vector.shape_cast %70 : vector<16xf32> to vector<16x1xf32>
    %cst_27 = arith.constant 2.560000e+02 : f32
    %72 = vector.broadcast %cst_27 : f32 to vector<16x1xf32>
    %73 = arith.divf %71, %72 : vector<16x1xf32>
    %74 = vector.broadcast %73 : vector<16x1xf32> to vector<16x256xf32>
    %75 = arith.subf %69, %74 : vector<16x256xf32>
    %76 = arith.mulf %75, %75 : vector<16x256xf32>
    %cst_28 = arith.constant dense<0.000000e+00> : vector<16xf32>
    %77 = vector.multi_reduction <add>, %76, %cst_28 [1] : vector<16x256xf32> to vector<16xf32>
    %78 = vector.shape_cast %77 : vector<16xf32> to vector<16x1xf32>
    %cst_29 = arith.constant 2.560000e+02 : f32
    %79 = vector.broadcast %cst_29 : f32 to vector<16x1xf32>
    %80 = arith.divf %78, %79 : vector<16x1xf32>
    %cst_30 = arith.constant 9.99999974E-6 : f32
    %81 = vector.broadcast %cst_30 : f32 to vector<16x1xf32>
    %82 = arith.addf %80, %81 : vector<16x1xf32>
    %83 = math.rsqrt %82 : vector<16x1xf32>
    %84 = vector.broadcast %83 : vector<16x1xf32> to vector<16x256xf32>
    %85 = arith.mulf %75, %84 : vector<16x256xf32>
    %c0_31 = arith.constant 0 : index
    %c0_32 = arith.constant 0 : index
    %86 = vector.load %arg9[%c0_31, %c0_32] : memref<1x256xf32, #tpu.memory_space<vmem>>, vector<1x256xf32>
    %87 = vector.broadcast %86 : vector<1x256xf32> to vector<16x256xf32>
    %88 = arith.mulf %85, %87 : vector<16x256xf32>
    %c0_33 = arith.constant 0 : index
    %c0_34 = arith.constant 0 : index
    %89 = vector.load %arg10[%c0_33, %c0_34] : memref<1x256xf32, #tpu.memory_space<vmem>>, vector<1x256xf32>
    %90 = vector.broadcast %89 : vector<1x256xf32> to vector<16x256xf32>
    %91 = arith.addf %88, %90 : vector<16x256xf32>
    %92 = arith.truncf %91 : vector<16x256xf32> to vector<16x256xbf16>
    %c0_35 = arith.constant 0 : index
    %c0_36 = arith.constant 0 : index
    %93 = vector.load %arg11[%c0_35, %c0_36] : memref<256x768xbf16, #tpu.memory_space<vmem>>, vector<256x768xbf16>
    %cst_37 = arith.constant dense<0.000000e+00> : vector<16x768xf32>
    %94 = tpu.matmul %92, %93, %cst_37 {dimension_numbers = #tpu.dot_dimension_numbers<[1], [0], [0], [1], [0, 0, 1, 1], [], []>} : vector<16x256xbf16>, vector<256x768xbf16>, vector<16x768xf32> -> vector<16x768xf32>
    %c0_38 = arith.constant 0 : index
    %c0_39 = arith.constant 0 : index
    %95 = vector.load %arg12[%c0_38, %c0_39] : memref<1x768xf32, #tpu.memory_space<vmem>>, vector<1x768xf32>
    %96 = vector.broadcast %95 : vector<1x768xf32> to vector<16x768xf32>
    %97 = arith.addf %94, %96 : vector<16x768xf32>
    %98 = vector.extract_strided_slice %97 {offsets = [0, 0], sizes = [16, 256], strides = [1, 1]} : vector<16x768xf32> to vector<16x256xf32>
    %cst_40 = arith.constant 1.250000e-01 : f32
    %99 = vector.broadcast %cst_40 : f32 to vector<16x256xf32>
    %100 = arith.mulf %98, %99 : vector<16x256xf32>
    %101 = vector.extract_strided_slice %97 {offsets = [0, 256], sizes = [16, 256], strides = [1, 1]} : vector<16x768xf32> to vector<16x256xf32>
    %102 = vector.extract_strided_slice %97 {offsets = [0, 512], sizes = [16, 256], strides = [1, 1]} : vector<16x768xf32> to vector<16x256xf32>
    %103 = vector.extract_strided_slice %100 {offsets = [0, 0], sizes = [8, 256], strides = [1, 1]} : vector<16x256xf32> to vector<8x256xf32>
    %104 = vector.extract_strided_slice %100 {offsets = [8, 0], sizes = [8, 256], strides = [1, 1]} : vector<16x256xf32> to vector<8x256xf32>
    %105 = vector.extract_strided_slice %101 {offsets = [0, 0], sizes = [8, 256], strides = [1, 1]} : vector<16x256xf32> to vector<8x256xf32>
    %106 = vector.extract_strided_slice %101 {offsets = [8, 0], sizes = [8, 256], strides = [1, 1]} : vector<16x256xf32> to vector<8x256xf32>
    %107 = vector.extract_strided_slice %102 {offsets = [0, 0], sizes = [8, 256], strides = [1, 1]} : vector<16x256xf32> to vector<8x256xf32>
    %108 = vector.extract_strided_slice %102 {offsets = [8, 0], sizes = [8, 256], strides = [1, 1]} : vector<16x256xf32> to vector<8x256xf32>
    %109 = arith.mulf %103, %105 : vector<8x256xf32>
    %cst_41 = arith.constant dense<0.000000e+00> : vector<8x256xf32>
    %110 = tpu.matmul %109, %14, %cst_41 {dimension_numbers = #tpu.dot_dimension_numbers<[1], [0], [0], [1], [0, 0, 1, 1], [], []>} : vector<8x256xf32>, vector<256x256xf32>, vector<8x256xf32> -> vector<8x256xf32>
    %111 = arith.mulf %103, %106 : vector<8x256xf32>
    %cst_42 = arith.constant dense<0.000000e+00> : vector<8x256xf32>
    %112 = tpu.matmul %111, %14, %cst_42 {dimension_numbers = #tpu.dot_dimension_numbers<[1], [0], [0], [1], [0, 0, 1, 1], [], []>} : vector<8x256xf32>, vector<256x256xf32>, vector<8x256xf32> -> vector<8x256xf32>
    %113 = arith.maximumf %110, %112 : vector<8x256xf32>
    %114 = arith.subf %110, %113 : vector<8x256xf32>
    %115 = math.exp %114 : vector<8x256xf32>
    %116 = arith.subf %112, %113 : vector<8x256xf32>
    %117 = math.exp %116 : vector<8x256xf32>
    %118 = arith.mulf %115, %107 : vector<8x256xf32>
    %119 = arith.mulf %117, %108 : vector<8x256xf32>
    %120 = arith.addf %118, %119 : vector<8x256xf32>
    %121 = arith.addf %115, %117 : vector<8x256xf32>
    %122 = tpu.reciprocal %121 {approx = true} : vector<8x256xf32> -> vector<8x256xf32>
    %123 = arith.mulf %120, %122 : vector<8x256xf32>
    %124 = arith.mulf %104, %105 : vector<8x256xf32>
    %cst_43 = arith.constant dense<0.000000e+00> : vector<8x256xf32>
    %125 = tpu.matmul %124, %14, %cst_43 {dimension_numbers = #tpu.dot_dimension_numbers<[1], [0], [0], [1], [0, 0, 1, 1], [], []>} : vector<8x256xf32>, vector<256x256xf32>, vector<8x256xf32> -> vector<8x256xf32>
    %126 = arith.mulf %104, %106 : vector<8x256xf32>
    %cst_44 = arith.constant dense<0.000000e+00> : vector<8x256xf32>
    %127 = tpu.matmul %126, %14, %cst_44 {dimension_numbers = #tpu.dot_dimension_numbers<[1], [0], [0], [1], [0, 0, 1, 1], [], []>} : vector<8x256xf32>, vector<256x256xf32>, vector<8x256xf32> -> vector<8x256xf32>
    %128 = arith.maximumf %125, %127 : vector<8x256xf32>
    %129 = arith.subf %125, %128 : vector<8x256xf32>
    %130 = math.exp %129 : vector<8x256xf32>
    %131 = arith.subf %127, %128 : vector<8x256xf32>
    %132 = math.exp %131 : vector<8x256xf32>
    %133 = arith.mulf %130, %107 : vector<8x256xf32>
    %134 = arith.mulf %132, %108 : vector<8x256xf32>
    %135 = arith.addf %133, %134 : vector<8x256xf32>
    %136 = arith.addf %130, %132 : vector<8x256xf32>
    %137 = tpu.reciprocal %136 {approx = true} : vector<8x256xf32> -> vector<8x256xf32>
    %138 = arith.mulf %135, %137 : vector<8x256xf32>
    %139 = tpu.concatenate %123, %138 in 0 : vector<8x256xf32>, vector<8x256xf32> -> vector<16x256xf32>
    %140 = arith.truncf %139 : vector<16x256xf32> to vector<16x256xbf16>
    %c0_45 = arith.constant 0 : index
    %c0_46 = arith.constant 0 : index
    %141 = vector.load %arg13[%c0_45, %c0_46] : memref<256x256xbf16, #tpu.memory_space<vmem>>, vector<256x256xbf16>
    %cst_47 = arith.constant dense<0.000000e+00> : vector<16x256xf32>
    %142 = tpu.matmul %140, %141, %cst_47 {dimension_numbers = #tpu.dot_dimension_numbers<[1], [0], [0], [1], [0, 0, 1, 1], [], []>} : vector<16x256xbf16>, vector<256x256xbf16>, vector<16x256xf32> -> vector<16x256xf32>
    %c0_48 = arith.constant 0 : index
    %c0_49 = arith.constant 0 : index
    %143 = vector.load %arg14[%c0_48, %c0_49] : memref<1x256xf32, #tpu.memory_space<vmem>>, vector<1x256xf32>
    %144 = vector.broadcast %143 : vector<1x256xf32> to vector<16x256xf32>
    %145 = arith.addf %142, %144 : vector<16x256xf32>
    %146 = arith.addf %91, %145 : vector<16x256xf32>
    %cst_50 = arith.constant dense<0.000000e+00> : vector<16xf32>
    %147 = vector.multi_reduction <add>, %146, %cst_50 [1] : vector<16x256xf32> to vector<16xf32>
    %148 = vector.shape_cast %147 : vector<16xf32> to vector<16x1xf32>
    %cst_51 = arith.constant 2.560000e+02 : f32
    %149 = vector.broadcast %cst_51 : f32 to vector<16x1xf32>
    %150 = arith.divf %148, %149 : vector<16x1xf32>
    %151 = vector.broadcast %150 : vector<16x1xf32> to vector<16x256xf32>
    %152 = arith.subf %146, %151 : vector<16x256xf32>
    %153 = arith.mulf %152, %152 : vector<16x256xf32>
    %cst_52 = arith.constant dense<0.000000e+00> : vector<16xf32>
    %154 = vector.multi_reduction <add>, %153, %cst_52 [1] : vector<16x256xf32> to vector<16xf32>
    %155 = vector.shape_cast %154 : vector<16xf32> to vector<16x1xf32>
    %cst_53 = arith.constant 2.560000e+02 : f32
    %156 = vector.broadcast %cst_53 : f32 to vector<16x1xf32>
    %157 = arith.divf %155, %156 : vector<16x1xf32>
    %cst_54 = arith.constant 9.99999974E-6 : f32
    %158 = vector.broadcast %cst_54 : f32 to vector<16x1xf32>
    %159 = arith.addf %157, %158 : vector<16x1xf32>
    %160 = math.rsqrt %159 : vector<16x1xf32>
    %161 = vector.broadcast %160 : vector<16x1xf32> to vector<16x256xf32>
    %162 = arith.mulf %152, %161 : vector<16x256xf32>
    %c0_55 = arith.constant 0 : index
    %c0_56 = arith.constant 0 : index
    %163 = vector.load %arg15[%c0_55, %c0_56] : memref<1x256xf32, #tpu.memory_space<vmem>>, vector<1x256xf32>
    %164 = vector.broadcast %163 : vector<1x256xf32> to vector<16x256xf32>
    %165 = arith.mulf %162, %164 : vector<16x256xf32>
    %c0_57 = arith.constant 0 : index
    %c0_58 = arith.constant 0 : index
    %166 = vector.load %arg16[%c0_57, %c0_58] : memref<1x256xf32, #tpu.memory_space<vmem>>, vector<1x256xf32>
    %167 = vector.broadcast %166 : vector<1x256xf32> to vector<16x256xf32>
    %168 = arith.addf %165, %167 : vector<16x256xf32>
    %169 = arith.truncf %168 : vector<16x256xf32> to vector<16x256xbf16>
    %c0_59 = arith.constant 0 : index
    %c0_60 = arith.constant 0 : index
    %170 = vector.load %arg17[%c0_59, %c0_60] : memref<256x1024xbf16, #tpu.memory_space<vmem>>, vector<256x1024xbf16>
    %cst_61 = arith.constant dense<0.000000e+00> : vector<16x1024xf32>
    %171 = tpu.matmul %169, %170, %cst_61 {dimension_numbers = #tpu.dot_dimension_numbers<[1], [0], [0], [1], [0, 0, 1, 1], [], []>} : vector<16x256xbf16>, vector<256x1024xbf16>, vector<16x1024xf32> -> vector<16x1024xf32>
    %c0_62 = arith.constant 0 : index
    %c0_63 = arith.constant 0 : index
    %172 = vector.load %arg18[%c0_62, %c0_63] : memref<1x1024xf32, #tpu.memory_space<vmem>>, vector<1x1024xf32>
    %173 = vector.broadcast %172 : vector<1x1024xf32> to vector<16x1024xf32>
    %174 = arith.addf %171, %173 : vector<16x1024xf32>
    %cst_64 = arith.constant 0.000000e+00 : f32
    %175 = vector.broadcast %cst_64 : f32 to vector<16x1024xf32>
    %176 = arith.maximumf %174, %175 : vector<16x1024xf32>
    %177 = arith.truncf %176 : vector<16x1024xf32> to vector<16x1024xbf16>
    %c0_65 = arith.constant 0 : index
    %c0_66 = arith.constant 0 : index
    %178 = vector.load %arg19[%c0_65, %c0_66] : memref<1024x256xbf16, #tpu.memory_space<vmem>>, vector<1024x256xbf16>
    %cst_67 = arith.constant dense<0.000000e+00> : vector<16x256xf32>
    %179 = tpu.matmul %177, %178, %cst_67 {dimension_numbers = #tpu.dot_dimension_numbers<[1], [0], [0], [1], [0, 0, 1, 1], [], []>} : vector<16x1024xbf16>, vector<1024x256xbf16>, vector<16x256xf32> -> vector<16x256xf32>
    %c0_68 = arith.constant 0 : index
    %c0_69 = arith.constant 0 : index
    %180 = vector.load %arg20[%c0_68, %c0_69] : memref<1x256xf32, #tpu.memory_space<vmem>>, vector<1x256xf32>
    %181 = vector.broadcast %180 : vector<1x256xf32> to vector<16x256xf32>
    %182 = arith.addf %179, %181 : vector<16x256xf32>
    %183 = arith.addf %168, %182 : vector<16x256xf32>
    %cst_70 = arith.constant dense<0.000000e+00> : vector<16xf32>
    %184 = vector.multi_reduction <add>, %183, %cst_70 [1] : vector<16x256xf32> to vector<16xf32>
    %185 = vector.shape_cast %184 : vector<16xf32> to vector<16x1xf32>
    %cst_71 = arith.constant 2.560000e+02 : f32
    %186 = vector.broadcast %cst_71 : f32 to vector<16x1xf32>
    %187 = arith.divf %185, %186 : vector<16x1xf32>
    %188 = vector.broadcast %187 : vector<16x1xf32> to vector<16x256xf32>
    %189 = arith.subf %183, %188 : vector<16x256xf32>
    %190 = arith.mulf %189, %189 : vector<16x256xf32>
    %cst_72 = arith.constant dense<0.000000e+00> : vector<16xf32>
    %191 = vector.multi_reduction <add>, %190, %cst_72 [1] : vector<16x256xf32> to vector<16xf32>
    %192 = vector.shape_cast %191 : vector<16xf32> to vector<16x1xf32>
    %cst_73 = arith.constant 2.560000e+02 : f32
    %193 = vector.broadcast %cst_73 : f32 to vector<16x1xf32>
    %194 = arith.divf %192, %193 : vector<16x1xf32>
    %cst_74 = arith.constant 9.99999974E-6 : f32
    %195 = vector.broadcast %cst_74 : f32 to vector<16x1xf32>
    %196 = arith.addf %194, %195 : vector<16x1xf32>
    %197 = math.rsqrt %196 : vector<16x1xf32>
    %198 = vector.broadcast %197 : vector<16x1xf32> to vector<16x256xf32>
    %199 = arith.mulf %189, %198 : vector<16x256xf32>
    %c0_75 = arith.constant 0 : index
    %c0_76 = arith.constant 0 : index
    %200 = vector.load %arg21[%c0_75, %c0_76] : memref<1x256xf32, #tpu.memory_space<vmem>>, vector<1x256xf32>
    %201 = vector.broadcast %200 : vector<1x256xf32> to vector<16x256xf32>
    %202 = arith.mulf %199, %201 : vector<16x256xf32>
    %c0_77 = arith.constant 0 : index
    %c0_78 = arith.constant 0 : index
    %203 = vector.load %arg22[%c0_77, %c0_78] : memref<1x256xf32, #tpu.memory_space<vmem>>, vector<1x256xf32>
    %204 = vector.broadcast %203 : vector<1x256xf32> to vector<16x256xf32>
    %205 = arith.addf %202, %204 : vector<16x256xf32>
    %206 = vector.extract_strided_slice %205 {offsets = [0, 0], sizes = [8, 256], strides = [1, 1]} : vector<16x256xf32> to vector<8x256xf32>
    %c0_79 = arith.constant 0 : index
    %c0_80 = arith.constant 0 : index
    %c0_81 = arith.constant 0 : index
    %207 = vector.load %arg23[%c0_79, %c0_80, %c0_81] : memref<2x8x256xf32, #tpu.memory_space<vmem>>, vector<1x8x256xf32>
    %208 = vector.shape_cast %207 : vector<1x8x256xf32> to vector<8x256xf32>
    %209 = vector.shape_cast %206 : vector<8x256xf32> to vector<1x8x256xf32>
    tpu.vector_store %arg23[%c0_79, %c0_80, %c0_81], %209 {strides = array<i32>} : memref<2x8x256xf32, #tpu.memory_space<vmem>>, vector<1x8x256xf32>,
    %210 = vector.extract_strided_slice %205 {offsets = [8, 0], sizes = [8, 256], strides = [1, 1]} : vector<16x256xf32> to vector<8x256xf32>
    %c1_82 = arith.constant 1 : index
    %c0_83 = arith.constant 0 : index
    %c0_84 = arith.constant 0 : index
    %211 = vector.load %arg23[%c1_82, %c0_83, %c0_84] : memref<2x8x256xf32, #tpu.memory_space<vmem>>, vector<1x8x256xf32>
    %212 = vector.shape_cast %211 : vector<1x8x256xf32> to vector<8x256xf32>
    %213 = vector.shape_cast %210 : vector<8x256xf32> to vector<1x8x256xf32>
    tpu.vector_store %arg23[%c1_82, %c0_83, %c0_84], %213 {strides = array<i32>} : memref<2x8x256xf32, #tpu.memory_space<vmem>>, vector<1x8x256xf32>,
    return
  }
  func.func @transform_0(%arg0: i32) -> (i32, i32, i32) {
    %c0_i32 = arith.constant 0 : i32
    %c0_i32_0 = arith.constant 0 : i32
    %c0_i32_1 = arith.constant 0 : i32
    %c0_i32_2 = arith.constant 0 : i32
    return %c0_i32, %c0_i32_0, %c0_i32_1 : i32, i32, i32
  }
  func.func @transform_1(%arg0: i32) -> (i32, i32) {
    %c0_i32 = arith.constant 0 : i32
    %c0_i32_0 = arith.constant 0 : i32
    %c0_i32_1 = arith.constant 0 : i32
    return %c0_i32, %c0_i32_0 : i32, i32
  }
  func.func @transform_2(%arg0: i32) -> (i32, i32) {
    %c0_i32 = arith.constant 0 : i32
    %c0_i32_0 = arith.constant 0 : i32
    return %arg0, %c0_i32 : i32, i32
  }
  func.func @transform_3(%arg0: i32) -> (i32, i32) {
    %c0_i32 = arith.constant 0 : i32
    %c0_i32_0 = arith.constant 0 : i32
    return %arg0, %c0_i32 : i32, i32
  }
  func.func @transform_4(%arg0: i32) -> (i32, i32) {
    %c0_i32 = arith.constant 0 : i32
    %c0_i32_0 = arith.constant 0 : i32
    %c0_i32_1 = arith.constant 0 : i32
    return %c0_i32, %c0_i32_0 : i32, i32
  }
  func.func @transform_5(%arg0: i32) -> (i32, i32) {
    %c0_i32 = arith.constant 0 : i32
    %c0_i32_0 = arith.constant 0 : i32
    %c0_i32_1 = arith.constant 0 : i32
    return %c0_i32, %c0_i32_0 : i32, i32
  }
  func.func @transform_6(%arg0: i32) -> (i32, i32) {
    %c0_i32 = arith.constant 0 : i32
    %c0_i32_0 = arith.constant 0 : i32
    %c0_i32_1 = arith.constant 0 : i32
    return %c0_i32, %c0_i32_0 : i32, i32
  }
  func.func @transform_7(%arg0: i32) -> (i32, i32) {
    %c0_i32 = arith.constant 0 : i32
    %c0_i32_0 = arith.constant 0 : i32
    %c0_i32_1 = arith.constant 0 : i32
    return %c0_i32, %c0_i32_0 : i32, i32
  }
  func.func @transform_8(%arg0: i32) -> (i32, i32) {
    %c0_i32 = arith.constant 0 : i32
    %c0_i32_0 = arith.constant 0 : i32
    %c0_i32_1 = arith.constant 0 : i32
    return %c0_i32, %c0_i32_0 : i32, i32
  }
  func.func @transform_9(%arg0: i32) -> (i32, i32) {
    %c0_i32 = arith.constant 0 : i32
    %c0_i32_0 = arith.constant 0 : i32
    %c0_i32_1 = arith.constant 0 : i32
    return %c0_i32, %c0_i32_0 : i32, i32
  }
  func.func @transform_10(%arg0: i32) -> (i32, i32) {
    %c0_i32 = arith.constant 0 : i32
    %c0_i32_0 = arith.constant 0 : i32
    %c0_i32_1 = arith.constant 0 : i32
    return %c0_i32, %c0_i32_0 : i32, i32
  }
  func.func @transform_11(%arg0: i32) -> (i32, i32) {
    %c0_i32 = arith.constant 0 : i32
    %c0_i32_0 = arith.constant 0 : i32
    %c0_i32_1 = arith.constant 0 : i32
    return %c0_i32, %c0_i32_0 : i32, i32
  }
  func.func @transform_12(%arg0: i32) -> (i32, i32) {
    %c0_i32 = arith.constant 0 : i32
    %c0_i32_0 = arith.constant 0 : i32
    %c0_i32_1 = arith.constant 0 : i32
    return %c0_i32, %c0_i32_0 : i32, i32
  }
  func.func @transform_13(%arg0: i32) -> (i32, i32) {
    %c0_i32 = arith.constant 0 : i32
    %c0_i32_0 = arith.constant 0 : i32
    %c0_i32_1 = arith.constant 0 : i32
    return %c0_i32, %c0_i32_0 : i32, i32
  }
  func.func @transform_14(%arg0: i32) -> (i32, i32) {
    %c0_i32 = arith.constant 0 : i32
    %c0_i32_0 = arith.constant 0 : i32
    %c0_i32_1 = arith.constant 0 : i32
    return %c0_i32, %c0_i32_0 : i32, i32
  }
  func.func @transform_15(%arg0: i32) -> (i32, i32) {
    %c0_i32 = arith.constant 0 : i32
    %c0_i32_0 = arith.constant 0 : i32
    %c0_i32_1 = arith.constant 0 : i32
    return %c0_i32, %c0_i32_0 : i32, i32
  }
  func.func @transform_16(%arg0: i32) -> (i32, i32) {
    %c0_i32 = arith.constant 0 : i32
    %c0_i32_0 = arith.constant 0 : i32
    %c0_i32_1 = arith.constant 0 : i32
    return %c0_i32, %c0_i32_0 : i32, i32
  }
  func.func @transform_17(%arg0: i32) -> (i32, i32) {
    %c0_i32 = arith.constant 0 : i32
    %c0_i32_0 = arith.constant 0 : i32
    %c0_i32_1 = arith.constant 0 : i32
    return %c0_i32, %c0_i32_0 : i32, i32
  }
  func.func @transform_18(%arg0: i32) -> (i32, i32) {
    %c0_i32 = arith.constant 0 : i32
    %c0_i32_0 = arith.constant 0 : i32
    %c0_i32_1 = arith.constant 0 : i32
    return %c0_i32, %c0_i32_0 : i32, i32
  }
  func.func @transform_19(%arg0: i32) -> (i32, i32) {
    %c0_i32 = arith.constant 0 : i32
    %c0_i32_0 = arith.constant 0 : i32
    %c0_i32_1 = arith.constant 0 : i32
    return %c0_i32, %c0_i32_0 : i32, i32
  }
  func.func @transform_20(%arg0: i32) -> (i32, i32) {
    %c0_i32 = arith.constant 0 : i32
    %c0_i32_0 = arith.constant 0 : i32
    %c0_i32_1 = arith.constant 0 : i32
    return %c0_i32, %c0_i32_0 : i32, i32
  }
  func.func @transform_21(%arg0: i32) -> (i32, i32) {
    %c0_i32 = arith.constant 0 : i32
    %c0_i32_0 = arith.constant 0 : i32
    %c0_i32_1 = arith.constant 0 : i32
    return %c0_i32, %c0_i32_0 : i32, i32
  }
  func.func @transform_22(%arg0: i32) -> (i32, i32, i32) {
    %c0_i32 = arith.constant 0 : i32
    %c0_i32_0 = arith.constant 0 : i32
    %c0_i32_1 = arith.constant 0 : i32
    return %c0_i32, %arg0, %c0_i32_0 : i32, i32, i32
  }
}

</mosaic_0001>

<bundles_post_ra>
// kernel: _lambda_.1
= control target key start
LH: loop header
LB: loop body
LE: loop exit
PB: predicated region body
PF: predicated region fallthrough
CT: control target
= control target key end

     0   :  { %s9541_s0 = inlined_call_operand.vmem [shape: bf16[2,16,256], index: 0, kind: input, shape index: {}]   ;;  %s9542_s1 = inlined_call_operand.vmem [shape: f32[256,256], index: 1, kind: input, shape index: {}]   ;;  %s9543_s2 = inlined_call_operand.vmem [shape: f32[16,16], index: 2, kind: input, shape index: {}]   ;;  %s9544_s3 = inlined_call_operand.vmem [shape: f32[16,1], index: 3, kind: input, shape index: {}]   ;;  %s9545_s4 = inlined_call_operand.hbm [shape: bf16[256,768], index: 4, kind: input, shape index: {}]   ;;  %s9546_s5 = inlined_call_operand.vmem [shape: f32[1,768], index: 5, kind: input, shape index: {}, may-alias: {5,11}]   ;;  %s9547_s6 = inlined_call_operand.vmem [shape: bf16[256,256], index: 6, kind: input, shape index: {}]   ;;  %s9548_s7 = inlined_call_operand.vmem [shape: f32[1,256], index: 7, kind: input, shape index: {}, may-alias: {7,9,13,15,21}]   ;;  %s9549_s8 = inlined_call_operand.vmem [shape: f32[1,256], index: 8, kind: input, shape index: {}, may-alias: {8,14,20}]   ;;  %s9550_s9 = inlined_call_operand.vmem [shape: f32[1,256], index: 9, kind: input, shape index: {}, may-alias: {7,9,13,15,21}]   ;;  %s9551_s10 = inlined_call_operand.hbm [shape: bf16[256,768], index: 10, kind: input, shape index: {}]   ;;  %s9552_s11 = inlined_call_operand.vmem [shape: f32[1,768], index: 11, kind: input, shape index: {}, may-alias: {5,11}]   ;;  %s9553_s12 = inlined_call_operand.vmem [shape: bf16[256,256], index: 12, kind: input, shape index: {}]   ;;  %s9554_s13 = inlined_call_operand.vmem [shape: f32[1,256], index: 13, kind: input, shape index: {}, may-alias: {7,9,13,15,21}]   ;;  %s9555_s14 = inlined_call_operand.vmem [shape: f32[1,256], index: 14, kind: input, shape index: {}, may-alias: {8,14,20}]   ;;  %s9556_s15 = inlined_call_operand.vmem [shape: f32[1,256], index: 15, kind: input, shape index: {}, may-alias: {7,9,13,15,21}]   ;;  %s9557_s16 = inlined_call_operand.hbm [shape: bf16[256,1024], index: 16, kind: input, shape index: {}]   ;;  %s9558_s17 = inlined_call_operand.vmem [shape: f32[1,1024], index: 17, kind: input, shape index: {}]   ;;  %s9559_s18 = inlined_call_operand.vmem [shape: bf16[1024,256], index: 18, kind: input, shape index: {}]   ;;  %s9560_s19 = inlined_call_operand.vmem [shape: f32[1,256], index: 19, kind: input, shape index: {}]   ;;  %s9561_s20 = inlined_call_operand.vmem [shape: f32[1,256], index: 20, kind: input, shape index: {}, may-alias: {8,14,20}]   ;;  %s9562_s21 = inlined_call_operand.vmem [shape: f32[1,256], index: 21, kind: input, shape index: {}, may-alias: {7,9,13,15,21}]   ;;  %s9563_s22 = inlined_call_operand.vmem [shape: f32[2,16,256], index: 22, kind: output, shape index: {}]  }
   0x1   :  { %9702 = sst [smem:[#allocation52_spill]] %s9541_s0 }
   0x2   :  { %9703 = sst [smem:[#allocation53_spill]] %s9542_s1 }
   0x3   :  { %9704 = sst [smem:[#allocation54_spill]] %s9543_s2 }
   0x4   :  { %9705 = sst [smem:[#allocation55_spill]] %s9544_s3 }
   0x5   :  { %9706 = sst [smem:[#allocation56_spill]] %s9545_s4 }
   0x6   :  { %9707 = sst [smem:[#allocation57_spill]] %s9546_s5 }
   0x7   :  { %9708 = sst [smem:[#allocation58_spill]] %s9547_s6 }
   0x8   :  { %9709 = sst [smem:[#allocation59_spill]] %s9551_s10 }
   0x9   :  { %9710 = sst [smem:[#allocation60_spill]] %s9557_s16 }
   0xa   :  { %9711 = sst [smem:[#allocation61_spill]] %s9563_s22 }
   0xb   :  { %27 = vsyncpa [#allocation3], 0 }
   0xc   :  { %28 = vsyncpa [#allocation5], 0  ;;  %s7430_s3 = smov 0   ;;  %s7432_s28 = smov 0  }
   0xd   :  { %s7434_s29 = smov 0  }
   0xe LB: > { %9712 = sst [smem:[#allocation10_spill]] %s7301_s28  ;;  %s7443_s30 = sadd.s32 4294967295, %s7305_s29   ;;  %s7305_s29 = sphi %s7434_s29, %s9879_s29   ;;  %s7301_s28 = sphi %s7432_s28, %s9881_s28   ;;  %s7297_s3 = sphi %s7430_s3, %s9880_s3  }
   0xf   : > { %9713 = sst [smem:[#allocation11_spill]] %s7443_s30  ;;  %s7445_s4 = sadd.s32 1, %s7305_s29  }
  0x10   : > { %9714 = sst [smem:[#allocation12_spill]] %s7445_s4  ;;  %s510_s0 = ssub.s32 %s7305_s29, %s7445_s4 }
  0x11   : > { %s513_s23 = sadd.s32 1, %s7301_s28  ;;  %p511_p0 = scmp.eq.s32.totalorder %s510_s0, 0 }
  0x12   : > { %p523_p1 = scmp.ne.s32.totalorder %s7301_s28, %s7297_s3  ;;  %p524_p2 = scmp.eq.s32.totalorder %s7443_s30, 1 }
  0x13   : > { %p5890_p3 = scmp.ge.s32.totalorder %s7305_s29, 1  ;;  %p537_p5 = scmp.lt.s32.totalorder %s7305_s29, 3 }
  0x14   : > { %s7453_s1 = scalar_select %p511_p0, %s7301_s28, %s513_s23  }
  0x15   : > { %p7455_p4 = por %p524_p2, %p523_p1  ;;  %p9568_p6 = scmp.eq.s32.totalorder %s7443_s30, 0 }
  0x16   : > { %9715 = sst [smem:[#allocation13_spill]] %s7453_s1  ;;  %p7460_p7 = pnand %p5890_p3, %p537_p5 }
  0x17   : > { %s9716_s5 = scalar_select %p7455_p4, 1, 0 }
  0x18   : > { %p6442_p8 = pneg %p7460_p7  ;;  %s7307_s6 = smov [#allocation4]  }
  0x19   : > { %9717 = sst [smem:[#allocation14_spill]] %s9716_s5  ;;  %s583_s25 = sshll.u32 %s7307_s6, 4  ;;  %s584_s25 = int_to_ptr.vmem [resolvable:$true] %s583_s25 }
  0x1a   : > { %p7468_p9 = pnand %p9568_p6, %p6442_p8  ;;  %s7308_s2 = smov [#allocation2]  }
  0x1b   : > { %s555_s27 = sshll.u32 %s7308_s2, 4  ;;  %s7309_s29 = smov [#allocation6]   ;;  %s556_s27 = int_to_ptr.vmem [resolvable:$true] %s555_s27 }
  0x1c   : > { %s611_s0 = sshll.u32 %s7309_s29, 4  ;;  %p7199_p10 = pneg %p7468_p9  ;;  %s612_s0 = int_to_ptr.vmem [resolvable:$true] %s611_s0 }
  0x1d   : > { %s7208_s23 = scalar_lea.vmem %s584_s25, 12288  ;;  %p7216_p0 = scmp.lt.s32.totalorder %s584_s25, %s584_s25 }
  0x1e   : > { %p7209_p11 = scmp.ne.s32.totalorder %s584_s25, %s7208_s23  ;;  %p7217_p1 = scmp.lt.s32.totalorder %s7208_s23, %s7208_s23 }
  0x20   : > { %p7211_p12 = pnand %p7209_p11, %p7199_p10  ;;  %p7218_p2 = por %p7217_p1, %p7216_p0 }
  0x22   : > { %p7212_p13 = pneg %p7211_p12 }
  0x24   : > { %p7219_p3 = pnand %p7218_p2, %p7212_p13 }
  0x26   : > { %7222 = shalt.err (!%p7219_p3)
}
  0x27   : > { %s7310_s6 = smov 384   ;;  %s7311_s2 = smov 24  }
  0x28   : > { %s9720_s10 = sld [smem:[#allocation59_spill]]  ;;  %s7234_s28 = scalar_lea.vmem %s556_s27, 12288 }
  0x29   : > { %p7235_p5 = scmp.ne.s32.totalorder %s556_s27, %s7234_s28  ;;  %p7242_p12 = scmp.lt.s32.totalorder %s556_s27, %s556_s27 }
  0x2a   : > { %p7243_p6 = scmp.lt.s32.totalorder %s7234_s28, %s7234_s28 }
  0x2b   : > { %p7237_p8 = pnand %p7235_p5, %p7199_p10 }
  0x2c   : > { %p7244_p0 = por %p7243_p6, %p7242_p12 }
  0x2d   : > { %p7238_p11 = pneg %p7237_p8 }
  0x2e   : > { %6448 = dma.hbm_to_vmem [thread:$0]  (!%p7468_p9), %s9720_s10, 12288, %s584_s25, [#allocation5], %s7310_s6, %s7310_s6, %s7311_s2  }
  0x2f   : > { %p7245_p13 = pnand %p7244_p0, %p7238_p11 }
  0x31   : > { %7248 = shalt.err (!%p7245_p13)
}
  0x32   : > { %s9721_s22 = sld [smem:[#allocation56_spill]]  ;;  %s7260_s1 = scalar_lea.vmem %s612_s0, 16384 }
  0x33   : > { %p7261_p1 = scmp.ne.s32.totalorder %s612_s0, %s7260_s1  ;;  %p7268_p5 = scmp.lt.s32.totalorder %s612_s0, %s612_s0 }
  0x34   : > { %p7269_p8 = scmp.lt.s32.totalorder %s7260_s1, %s7260_s1 }
  0x35   : > { %p7263_p2 = pnand %p7261_p1, %p7199_p10 }
  0x36   : > { %p7270_p4 = por %p7269_p8, %p7268_p5 }
  0x37   : > { %p7264_p3 = pneg %p7263_p2 }
  0x38   : > { %6445 = dma.hbm_to_vmem [thread:$0]  (!%p7468_p9), %s9721_s22, 12288, %s556_s27, [#allocation3], %s7310_s6, %s7310_s6, %s7311_s2  }
  0x39   : > { %p7271_p6 = pnand %p7270_p4, %p7264_p3 }
  0x3b   : > { %7274 = shalt.err (!%p7271_p6)
}
  0x3c   : > { %s7312_s28 = smov 512   ;;  %s7313_s25 = smov 32  }
  0x3d   : > { %s9722_s16 = sld [smem:[#allocation60_spill]] }
  0x3f   : > { %656 = sbr.rel (%p7460_p7) target bundleno = 3125 (0xc35), region = 108 }
  0x43   : > { %6451 = dma.hbm_to_vmem [thread:$0]  (!%p7468_p9), %s9722_s16, 16384, %s612_s0, [#allocation5], %s7312_s28, %s7312_s28, %s7313_s25  }
  0x44   : > { %p9723_p11 = scmp.eq.s32.totalorder %s7443_s30, 0 }
  0x46   : > { %7288 = dma.done.wait (%p9723_p11), [#allocation3], 12288   ;;  %p9724_p10 = pmov %p9723_p11 }
  0x48   : > { %7290 = vsyncadd (%p9724_p10), [#allocation3], 4294955008  ;;  %p9725_p4 = pmov %p9724_p10 }
  0x4a   : > { %7292 = dma.done.wait (%p9725_p4), [#allocation5], 28672   ;;  %p9726_p12 = pmov %p9725_p4 }
  0x4b   : > { %p728_p0 = scmp.lt.s32.totalorder %s7443_s30, 1  ;;  %v7314_v0 = vmov 0   ;;  %s9727_s0 = sld [smem:[#allocation54_spill]]  ;;  %vm757_vm0 = vcmask 130048   ;;  %v6497_v8 = vld [vmem:[#allocation2 + $0x150] ss:$24 sps:$4 sm:$0xff]  }
  0x4c   : > { %7294 = vsyncadd (%p9726_p12), [#allocation5], 4294938624  ;;  %793 = vmatprep.mubr.bf16.mxu0 %v7314_v0  ;;  %847 = vmatprep.mubr.bf16.mxu1 %v7314_v0  ;;  %s9728_s1 = sld [smem:[#allocation52_spill]]  ;;  %v6499_v9 = vld [vmem:[#allocation2 + $0x154] ss:$24 sps:$4 sm:$0xff]  }
  0x4d   : > { %s729_s22 = scalar_select %p728_p0, %s7443_s30, 1  ;;  %6490 = vset.pattern.permute.xlu0 %v7314_v0  ;;  %v6500_v10 = vld [vmem:[#allocation2 + $0x158] ss:$24 sps:$4 sm:$0xff]   ;;  %v6502_v11 = vld [vmem:[#allocation2 + $0x15c] ss:$24 sps:$4 sm:$0xff]  }
  0x4e   : > { %s9729_s29 = sld [smem:[#allocation55_spill]]  ;;  %v6505_v12 = vld [vmem:[#allocation2 + $0x124] ss:$24 sps:$4 sm:$0xff]   ;;  %v6503_v13 = vld [vmem:[#allocation2 + $0x120] ss:$24 sps:$4 sm:$0xff]  }
  0x4f   : > { %s5900_s24 = sshll.u32 %s729_s22, 3  ;;  %v6508_v14 = vld [vmem:[#allocation2 + $0x12c] ss:$24 sps:$4 sm:$0xff]   ;;  %v6506_v15 = vld [vmem:[#allocation2 + $0x128] ss:$24 sps:$4 sm:$0xff]   ;;  %s9730_s30 = sld [smem:[#allocation53_spill]] }
  0x50   : > { %v6511_v16 = vld [vmem:[#allocation2 + $0xf4] ss:$24 sps:$4 sm:$0xff]   ;;  %v6509_v18 = vld [vmem:[#allocation2 + $0xf0] ss:$24 sps:$4 sm:$0xff]   ;;  %v6517_v20 = vld [vmem:[#allocation2 + $0xc4] ss:$24 sps:$4 sm:$0xff]  }
  0x51   : > { %s731_s6 = scalar_lea.vmem %s9727_s0, %s5900_s24  ;;  %v6514_v17 = vld [vmem:[#allocation2 + $0xfc] ss:$24 sps:$4 sm:$0xff]   ;;  %v6512_v19 = vld [vmem:[#allocation2 + $0xf8] ss:$24 sps:$4 sm:$0xff]   ;;  %v6520_v21 = vld [vmem:[#allocation2 + $0xcc] ss:$24 sps:$4 sm:$0xff]  }
  0x52   : > { %v6491_v1 = vld [vmem:[%s9728_s1 + $0x4] ss:$8 sps:$4 sm:$0xff]   ;;  %v6493_v2 = vld [vmem:[%s9728_s1 + $0x14] ss:$8 sps:$4 sm:$0xff]   ;;  %v6495_v3 = vld [vmem:[%s9728_s1] ss:$8 sps:$4 sm:$0xff]  }
  0x53   : > { %775 = vmatprep.subr.bf16.mxu0 %v6491_v1  ;;  %v6496_v4 = vld [vmem:[%s9728_s1 + $0x10] ss:$8 sps:$4 sm:$0xff]   ;;  %v737_v5 = vld [vmem:[%s731_s6] sm:$0xff]  ;;  %829 = vmatprep.subr.bf16.mxu1 %v6493_v2  ;;  %v6523_v24 = vld [vmem:[#allocation2 + $0x94] ss:$24 sps:$4 sm:$0xff]   ;;  %s9763_s25 = sld [smem:[#allocation57_spill]] }
  0x54   : > { %s735_s4 = scalar_lea.vmem %s9729_s29, %s5900_s24  ;;  %v738_v6 = vpack.c.bf16 %v737_v5, %v737_v5  ;;  %776 = vmatpush1.bf16.msra.mxu0 %v6495_v3  ;;  %830 = vmatpush1.bf16.msra.mxu1 %v6496_v4  ;;  %v6515_v22 = vld [vmem:[#allocation2 + $0xc0] ss:$24 sps:$4 sm:$0xff]   ;;  %v6526_v25 = vld [vmem:[#allocation2 + $0x9c] ss:$24 sps:$4 sm:$0xff]   ;;  %v6521_v26 = vld [vmem:[#allocation2 + $0x90] ss:$24 sps:$4 sm:$0xff]  }
  0x55   : > { %v739_v7 = vld [vmem:[%s735_s4] sm:$0xff]  ;;  %1530 = vmatprep.subr.bf16.mxu0 %v6499_v9  ;;  %1573 = vmatprep.subr.bf16.mxu1 %v6502_v11  ;;  %v6524_v27 = vld [vmem:[#allocation2 + $0x98] ss:$24 sps:$4 sm:$0xff]   ;;  %v6535_v32 = vld [vmem:[#allocation2 + $0x34] ss:$24 sps:$4 sm:$0xff]   ;;  %s9793_s22 = sld [smem:[#allocation58_spill]] }
  0x56   : > { %744 = vperm.xlu0 %6490, %v739_v7   ;;  %v6518_v23 = vld [vmem:[#allocation2 + $0xc8] ss:$24 sps:$4 sm:$0xff]   ;;  %v6529_v28 = vld [vmem:[#allocation2 + $0x64] ss:$24 sps:$4 sm:$0xff]   ;;  %v6536_v35 = vld [vmem:[#allocation2 + $0x38] ss:$24 sps:$4 sm:$0xff]  }
  0x57   : > { %5904 = vmatmul.mubr.msk.bf16.vlgmr.msra.gmra.mxu0 %vm757_vm0, %v738_v6  ;;  %5909 = vmatmul.mubr.msk.bf16.vlgmr.msra.gmra.mxu1 %vm757_vm0, %v738_v6  ;;  %v6532_v29 = vld [vmem:[#allocation2 + $0x6c] ss:$24 sps:$4 sm:$0xff]   ;;  %v6527_v30 = vld [vmem:[#allocation2 + $0x60] ss:$24 sps:$4 sm:$0xff]   ;;  %v6538_v33 = vld [vmem:[#allocation2 + $0x3c] ss:$24 sps:$4 sm:$0xff]  }
  0x58   : > { %1531 = vmatpush1.bf16.msra.mxu0 %v6497_v8  ;;  %1574 = vmatpush1.bf16.msra.mxu1 %v6500_v10  ;;  %v6530_v31 = vld [vmem:[#allocation2 + $0x68] ss:$24 sps:$4 sm:$0xff]   ;;  %v6541_v36 = vld [vmem:[#allocation2 + $0x4] ss:$24 sps:$4 sm:$0xff]   ;;  %v6547_v40 = vld [vmem:[#allocation2 + $0x2d4] ss:$24 sps:$4 sm:$0xff]  }
  0x59   : > { %1532 = vmatprep.subr.bf16.mxu0 %v6505_v12  ;;  %1575 = vmatprep.subr.bf16.mxu1 %v6508_v14  ;;  %v6533_v34 = vld [vmem:[#allocation2 + $0x30] ss:$24 sps:$4 sm:$0xff]   ;;  %v6544_v37 = vld [vmem:[#allocation2 + $0xc] ss:$24 sps:$4 sm:$0xff]   ;;  %v6539_v38 = vld [vmem:[#allocation2] ss:$24 sps:$4 sm:$0xff]  }
  0x5a   : > { %v6542_v39 = vld [vmem:[#allocation2 + $0x8] ss:$24 sps:$4 sm:$0xff]   ;;  %v6550_v41 = vld [vmem:[#allocation2 + $0x2dc] ss:$24 sps:$4 sm:$0xff]   ;;  %v6548_v43 = vld [vmem:[#allocation2 + $0x2d8] ss:$24 sps:$4 sm:$0xff]  }
  0x5b   : > { %v6545_v42 = vld [vmem:[#allocation2 + $0x2d0] ss:$24 sps:$4 sm:$0xff]   ;;  %v6553_v44 = vld [vmem:[#allocation2 + $0x2a4] ss:$24 sps:$4 sm:$0xff]   ;;  %v6551_v46 = vld [vmem:[#allocation2 + $0x2a0] ss:$24 sps:$4 sm:$0xff]  }
  0x5c   : > { %1533 = vmatpush1.bf16.msra.mxu0 %v6503_v13  ;;  %1576 = vmatpush1.bf16.msra.mxu1 %v6506_v15  ;;  %v6556_v45 = vld [vmem:[#allocation2 + $0x2ac] ss:$24 sps:$4 sm:$0xff]   ;;  %v6554_v47 = vld [vmem:[#allocation2 + $0x2a8] ss:$24 sps:$4 sm:$0xff]   ;;  %v6562_v49 = vld [vmem:[#allocation2 + $0x27c] ss:$24 sps:$4 sm:$0xff]  }
  0x5d   : > { %1534 = vmatprep.subr.bf16.mxu0 %v6511_v16  ;;  %1577 = vmatprep.subr.bf16.mxu1 %v6514_v17  ;;  %v6559_v48 = vld [vmem:[#allocation2 + $0x274] ss:$24 sps:$4 sm:$0xff]   ;;  %v6557_v50 = vld [vmem:[#allocation2 + $0x270] ss:$24 sps:$4 sm:$0xff]   ;;  %v6565_v52 = vld [vmem:[#allocation2 + $0x244] ss:$24 sps:$4 sm:$0xff]  }
  0x5e   : > { %v6560_v51 = vld [vmem:[#allocation2 + $0x278] ss:$24 sps:$4 sm:$0xff]   ;;  %v6568_v53 = vld [vmem:[#allocation2 + $0x24c] ss:$24 sps:$4 sm:$0xff]   ;;  %v6566_v55 = vld [vmem:[#allocation2 + $0x248] ss:$24 sps:$4 sm:$0xff]  }
  0x5f   : > { %v6563_v54 = vld [vmem:[#allocation2 + $0x240] ss:$24 sps:$4 sm:$0xff]   ;;  %v6571_v56 = vld [vmem:[#allocation2 + $0x214] ss:$24 sps:$4 sm:$0xff]   ;;  %v6569_v58 = vld [vmem:[#allocation2 + $0x210] ss:$24 sps:$4 sm:$0xff]  }
  0x60   : > { %1535 = vmatpush1.bf16.msra.mxu0 %v6509_v18  ;;  %1578 = vmatpush1.bf16.msra.mxu1 %v6512_v19  ;;  %v6574_v57 = vld [vmem:[#allocation2 + $0x21c] ss:$24 sps:$4 sm:$0xff]   ;;  %v6572_v59 = vld [vmem:[#allocation2 + $0x218] ss:$24 sps:$4 sm:$0xff]   ;;  %v6580_v61 = vld [vmem:[#allocation2 + $0x1ec] ss:$24 sps:$4 sm:$0xff]  }
  0x61   : > { %1536 = vmatprep.subr.bf16.mxu0 %v6517_v20  ;;  %1579 = vmatprep.subr.bf16.mxu1 %v6520_v21  ;;  %v6577_v60 = vld [vmem:[#allocation2 + $0x1e4] ss:$24 sps:$4 sm:$0xff]   ;;  %v6575_v62 = vld [vmem:[#allocation2 + $0x1e0] ss:$24 sps:$4 sm:$0xff]   ;;  %v6583_v0 = vld [vmem:[#allocation2 + $0x1b4] ss:$24 sps:$4 sm:$0xff]  }
  0x62   : > { %v6578_v63 = vld [vmem:[#allocation2 + $0x1e8] ss:$24 sps:$4 sm:$0xff]   ;;  %v6586_v2 = vld [vmem:[#allocation2 + $0x1bc] ss:$24 sps:$4 sm:$0xff]   ;;  %v6584_v3 = vld [vmem:[#allocation2 + $0x1b8] ss:$24 sps:$4 sm:$0xff]  }
  0x63   : > { %v6581_v1 = vld [vmem:[#allocation2 + $0x1b0] ss:$24 sps:$4 sm:$0xff]   ;;  %v6589_v4 = vld [vmem:[#allocation2 + $0x184] ss:$24 sps:$4 sm:$0xff]   ;;  %v6587_v5 = vld [vmem:[#allocation2 + $0x180] ss:$24 sps:$4 sm:$0xff]  }
  0x64   : > { %1537 = vmatpush1.bf16.msra.mxu0 %v6515_v22  ;;  %1580 = vmatpush1.bf16.msra.mxu1 %v6518_v23  ;;  %v6592_v6 = vld [vmem:[#allocation2 + $0x18c] ss:$24 sps:$4 sm:$0xff]   ;;  %v6590_v7 = vld [vmem:[#allocation2 + $0x188] ss:$24 sps:$4 sm:$0xff]   ;;  %v7531_v9 = vld [vmem:[%s9730_s30 + $0xf8] sm:$0xff]  ;;  %s725_s29 = sand.u32 1, %s7297_s3  }
  0x65   : > { %1538 = vmatprep.subr.bf16.mxu0 %v6523_v24  ;;  %1581 = vmatprep.subr.bf16.mxu1 %v6526_v25  ;;  %v6595_v8 = vld [vmem:[#allocation2 + $0x164] ss:$24 sps:$4 sm:$0xff]   ;;  %v6593_v22 = vld [vmem:[#allocation2 + $0x160] ss:$24 sps:$4 sm:$0xff]   ;;  %s5899_s10 = sshll.u32 %s725_s29, 5  ;;  %s9875_s16 = sld [smem:[#allocation14_spill]] }
  0x66   : > { %s727_s3 = scalar_lea.vmem [#allocation7], %s5899_s10 }
  0x68   : > { %1539 = vmatpush1.bf16.msra.mxu0 %v6521_v26  ;;  %1582 = vmatpush1.bf16.msra.mxu1 %v6524_v27  ;;  %v6598_v26 = vld [vmem:[#allocation2 + $0x134] ss:$24 sps:$4 sm:$0xff]  }
  0x69   : > { %1540 = vmatprep.subr.bf16.mxu0 %v6529_v28  ;;  %1583 = vmatprep.subr.bf16.mxu1 %v6532_v29  ;;  %v7551_v27 = vld [vmem:[%s9730_s30 + $0xf0] sm:$0xff]  ;;  %v7558_v28 = vld [vmem:[%s9730_s30 + $0xe8] sm:$0xff] }
  0x6a   : > { %v6596_v29 = vld [vmem:[#allocation2 + $0x130] ss:$24 sps:$4 sm:$0xff]  }
  0x6b   : > { %p9876_p7 = scmp.ne.s32.totalorder %s9875_s16, 0 }
  0x6c   : > { %1541 = vmatpush1.bf16.msra.mxu0 %v6527_v30  ;;  %1584 = vmatpush1.bf16.msra.mxu1 %v6530_v31  ;;  %v7563_v30 = vld [vmem:[%s9730_s30 + $0xe0] sm:$0xff]  ;;  %s9877_s5 = sld [smem:[#allocation11_spill]] (%p9876_p7) }
  0x6d   : > { %1542 = vmatprep.subr.bf16.mxu0 %v6535_v32  ;;  %1585 = vmatprep.subr.bf16.mxu1 %v6538_v33  ;;  %v6601_v31 = vld [vmem:[#allocation2 + $0x104] ss:$24 sps:$4 sm:$0xff]   ;;  %v7575_v33 = vld [vmem:[%s9730_s30 + $0xd0] sm:$0xff]  ;;  %s9878_s6 = sld [smem:[#allocation61_spill]] (%p9876_p7) }
  0x6e   : > { %v7569_v32 = vld [vmem:[%s9730_s30 + $0xd8] sm:$0xff] }
  0x70   : > { %1543 = vmatpush1.bf16.msra.mxu0 %v6533_v34  ;;  %1586 = vmatpush1.bf16.msra.mxu1 %v6536_v35  ;;  %v7581_v34 = vld [vmem:[%s9730_s30 + $0xc8] sm:$0xff]  ;;  %v6599_v35 = vld [vmem:[#allocation2 + $0x100] ss:$24 sps:$4 sm:$0xff]  }
  0x71   : > { %1544 = vmatprep.subr.bf16.mxu0 %v6541_v36  ;;  %1587 = vmatprep.subr.bf16.mxu1 %v6544_v37  ;;  %v7587_v36 = vld [vmem:[%s9730_s30 + $0xc0] sm:$0xff]  ;;  %v6604_v37 = vld [vmem:[#allocation2 + $0xd4] ss:$24 sps:$4 sm:$0xff]  }
  0x72   : > { %s6429_s24 = sshll.u32 (%p9876_p7), %s9877_s5, 4 }
  0x73   : > { %s5771_s2 = scalar_lea.vmem (%p9876_p7), %s9878_s6, %s6429_s24 }
  0x74   : > { %1545 = vmatpush1.bf16.msra.mxu0 %v6539_v38  ;;  %1588 = vmatpush1.bf16.msra.mxu1 %v6542_v39  ;;  %v7593_v38 = vld [vmem:[%s9730_s30 + $0xb8] sm:$0xff]  ;;  %v7599_v39 = vld [vmem:[%s9730_s30 + $0xb0] sm:$0xff] }
  0x75   : > { %1546 = vmatprep.subr.bf16.mxu0 %v6547_v40  ;;  %1589 = vmatprep.subr.bf16.mxu1 %v6550_v41  ;;  %v7605_v40 = vld [vmem:[%s9730_s30 + $0xa8] sm:$0xff] }
  0x76   : > { %v6602_v41 = vld [vmem:[#allocation2 + $0xd0] ss:$24 sps:$4 sm:$0xff]  }
  0x78   : > { %1547 = vmatpush2.bf16.msra.mxu0 %v6545_v42  ;;  %1590 = vmatpush2.bf16.msra.mxu1 %v6548_v43  ;;  %v7611_v42 = vld [vmem:[%s9730_s30 + $0xa0] sm:$0xff] }
  0x79   : > { %1548 = vmatprep.subr.bf16.mxu0 %v6553_v44  ;;  %1591 = vmatprep.subr.bf16.mxu1 %v6556_v45  ;;  %v6607_v43 = vld [vmem:[#allocation2 + $0xa4] ss:$24 sps:$4 sm:$0xff]   ;;  %v7623_v45 = vld [vmem:[%s9730_s30 + $0x90] sm:$0xff] }
  0x7a   : > { %v7617_v44 = vld [vmem:[%s9730_s30 + $0x98] sm:$0xff] }
  0x7c   : > { %1549 = vmatpush2.bf16.msra.mxu0 %v6551_v46  ;;  %1592 = vmatpush2.bf16.msra.mxu1 %v6554_v47  ;;  %v7629_v46 = vld [vmem:[%s9730_s30 + $0x88] sm:$0xff]  ;;  %v6605_v47 = vld [vmem:[#allocation2 + $0xa0] ss:$24 sps:$4 sm:$0xff]  }
  0x7d   : > { %1550 = vmatprep.subr.bf16.mxu0 %v6559_v48  ;;  %1593 = vmatprep.subr.bf16.mxu1 %v6562_v49  ;;  %v7635_v48 = vld [vmem:[%s9730_s30 + $0x80] sm:$0xff]  ;;  %v6610_v49 = vld [vmem:[#allocation2 + $0x74] ss:$24 sps:$4 sm:$0xff]  }
  0x80   : > { %1551 = vmatpush2.bf16.msra.mxu0 %v6557_v50  ;;  %1594 = vmatpush2.bf16.msra.mxu1 %v6560_v51  ;;  %v7641_v50 = vld [vmem:[%s9730_s30 + $0x78] sm:$0xff]  ;;  %v7647_v51 = vld [vmem:[%s9730_s30 + $0x70] sm:$0xff] }
  0x81   : > { %1552 = vmatprep.subr.bf16.mxu0 %v6565_v52  ;;  %1595 = vmatprep.subr.bf16.mxu1 %v6568_v53  ;;  %v7653_v52 = vld [vmem:[%s9730_s30 + $0x68] sm:$0xff] }
  0x82   : > { %v6608_v53 = vld [vmem:[#allocation2 + $0x70] ss:$24 sps:$4 sm:$0xff]  }
  0x84   : > { %1553 = vmatpush2.bf16.msra.mxu0 %v6563_v54  ;;  %1596 = vmatpush2.bf16.msra.mxu1 %v6566_v55  ;;  %v7659_v54 = vld [vmem:[%s9730_s30 + $0x60] sm:$0xff] }
  0x85   : > { %1554 = vmatprep.subr.bf16.mxu0 %v6571_v56  ;;  %1597 = vmatprep.subr.bf16.mxu1 %v6574_v57  ;;  %v6613_v55 = vld [vmem:[#allocation2 + $0x44] ss:$24 sps:$4 sm:$0xff]   ;;  %v7671_v57 = vld [vmem:[%s9730_s30 + $0x50] sm:$0xff] }
  0x86   : > { %v7665_v56 = vld [vmem:[%s9730_s30 + $0x58] sm:$0xff] }
  0x88   : > { %1555 = vmatpush2.bf16.msra.mxu0 %v6569_v58  ;;  %1598 = vmatpush2.bf16.msra.mxu1 %v6572_v59  ;;  %v7677_v58 = vld [vmem:[%s9730_s30 + $0x48] sm:$0xff]  ;;  %v6611_v59 = vld [vmem:[#allocation2 + $0x40] ss:$24 sps:$4 sm:$0xff]  }
  0x89   : > { %1556 = vmatprep.subr.bf16.mxu0 %v6577_v60  ;;  %1599 = vmatprep.subr.bf16.mxu1 %v6580_v61  ;;  %v7683_v60 = vld [vmem:[%s9730_s30 + $0x40] sm:$0xff]  ;;  %v6616_v61 = vld [vmem:[#allocation2 + $0x14] ss:$24 sps:$4 sm:$0xff]  }
  0x8c   : > { %1557 = vmatpush2.bf16.msra.mxu0 %v6575_v62  ;;  %1600 = vmatpush2.bf16.msra.mxu1 %v6578_v63  ;;  %v7689_v62 = vld [vmem:[%s9730_s30 + $0x38] sm:$0xff]  ;;  %v7695_v63 = vld [vmem:[%s9730_s30 + $0x30] sm:$0xff] }
  0x8d   : > { %1558 = vmatprep.subr.bf16.mxu0 %v6583_v0  ;;  %1601 = vmatprep.subr.bf16.mxu1 %v6586_v2  ;;  %v7701_v0 = vld [vmem:[%s9730_s30 + $0x28] sm:$0xff]  ;;  %v7707_v2 = vld [vmem:[%s9730_s30 + $0x20] sm:$0xff] }
  0x90   : > { %1559 = vmatpush2.bf16.msra.mxu0 %v6581_v1  ;;  %1602 = vmatpush2.bf16.msra.mxu1 %v6584_v3  ;;  %v6614_v1 = vld [vmem:[#allocation2 + $0x10] ss:$24 sps:$4 sm:$0xff]   ;;  %v6619_v3 = vld [vmem:[#allocation2 + $0x2e4] ss:$24 sps:$4 sm:$0xff]  }
  0x91   : > { %1560 = vmatprep.subr.bf16.mxu0 %v6589_v4  ;;  %1603 = vmatprep.subr.bf16.mxu1 %v6592_v6  ;;  %v7713_v4 = vld [vmem:[%s9730_s30 + $0x18] sm:$0xff]  ;;  %v7725_v6 = vld [vmem:[%s9730_s30 + $0x8] sm:$0xff] }
  0x94   : > { %1561 = vmatpush2.bf16.msra.mxu0 %v6587_v5  ;;  %1604 = vmatpush2.bf16.msra.mxu1 %v6590_v7  ;;  %v7719_v5 = vld [vmem:[%s9730_s30 + $0x10] sm:$0xff]  ;;  %v6617_v7 = vld [vmem:[#allocation2 + $0x2e0] ss:$24 sps:$4 sm:$0xff]  }
  0x95   : > { %1616 = vmatprep.subr.bf16.mxu0 %v6595_v8  ;;  %1665 = vmatprep.subr.mxu1 %v7531_v9  ;;  %v7731_v8 = vld [vmem:[%s9730_s30] sm:$0xff] }
  0xd1   : > { %v745_v10 = vpop.permute.xlu0 %744 }
 0x117   : > { %v795_v11 = vpop.f32.mrf.mxu0  ;;  %v849_v12 = vpop.f32.mrf.mxu1 }
 0x118   : > { %v7534_v13 = vadd.f32 %v795_v11, %v745_v10  ;;  %v7536_v14 = vadd.f32 %v849_v12, %v745_v10  ;;  %v7737_v11 = vld [vmem:[%s9730_s30 + $0x1f8] sm:$0xff]  ;;  %v7743_v12 = vld [vmem:[%s9730_s30 + $0x1f0] sm:$0xff] }
 0x119   : > { %v797_v15 = vpop.f32.mrf.mxu0  ;;  %v851_v16 = vpop.f32.mrf.mxu1 }
 0x11a   : > { %9731 = vst [vmem:[#allocation15_spill] sm:$0xff] %v7534_v13  ;;  %9732 = vst [vmem:[#allocation16_spill] sm:$0xff] %v7536_v14  ;;  %v7538_v17 = vadd.f32 %v797_v15, %v745_v10  ;;  %v7540_v18 = vadd.f32 %v851_v16, %v745_v10  ;;  %v7546_v23 = vpack.c.bf16 %v7536_v14, %v7534_v13  ;;  %v6622_v10 = vld [vmem:[#allocation2 + $0x2b4] ss:$24 sps:$4 sm:$0xff]   ;;  %v6620_v16 = vld [vmem:[#allocation2 + $0x2b0] ss:$24 sps:$4 sm:$0xff]  }
 0x11b   : > { %v799_v19 = vpop.f32.mrf.mxu0  ;;  %v853_v20 = vpop.f32.mrf.mxu1  ;;  %v7749_v15 = vld [vmem:[%s9730_s30 + $0x1e8] sm:$0xff]  ;;  %v7921_v14 = vld [vmem:[%s9730_s30 + $0x110] sm:$0xff]  ;;  %v7935_v13 = vld [vmem:[%s9730_s30 + $0x100] sm:$0xff] }
 0x11c   : > { %9733 = vst [vmem:[#allocation17_spill] sm:$0xff] %v7538_v17  ;;  %9734 = vst [vmem:[#allocation18_spill] sm:$0xff] %v7540_v18  ;;  %v921_v21 = vpack.c.bf16 %v7540_v18, %v7538_v17  ;;  %v7755_v19 = vld [vmem:[%s9730_s30 + $0x1e0] sm:$0xff]  ;;  %v6638_v18 = vld [vmem:[#allocation2 + $0x190] ss:$24 sps:$4 sm:$0xff]  }
 0x11d   : > { %v800_v24 = vpop.f32.mrf.mxu0  ;;  %v854_v25 = vpop.f32.mrf.mxu1  ;;  %v6625_v20 = vld [vmem:[#allocation2 + $0x284] ss:$24 sps:$4 sm:$0xff]   ;;  %9758 = vst [vmem:[#allocation42_spill] sm:$0xff] %v7921_v14  ;;  %v7928_v17 = vld [vmem:[%s9730_s30 + $0x108] sm:$0xff]  ;;  %9760 = vst [vmem:[#allocation44_spill] sm:$0xff] %v7935_v13 }
 0x11e   : > { %1562 = vmatprep.mubr.bf16.mxu0 %v921_v21  ;;  %1605 = vmatprep.mubr.bf16.mxu1 %v921_v21  ;;  %v7773_v24 = vld [vmem:[%s9730_s30 + $0x1c8] sm:$0xff]  ;;  %v6623_v25 = vld [vmem:[#allocation2 + $0x280] ss:$24 sps:$4 sm:$0xff]   ;;  %9759 = vst [vmem:[#allocation43_spill] sm:$0xff] %v7928_v17 }
 0x11f   : > { %1563 = vmatmul.mubr.bf16.vlgmr.msra.gmra.mxu0 %v7546_v23  ;;  %1606 = vmatmul.mubr.bf16.vlgmr.msra.gmra.mxu1 %v7546_v23  ;;  %9735 = vst [vmem:[#allocation19_spill] sm:$0xff] %v7773_v24 }
 0x120   : > { %1617 = vmatpush1.bf16.msra.mxu0 %v6593_v22  ;;  %1648 = vmatprep.mubr.bf16.mxu0 %v921_v21  ;;  %v7761_v21 = vld [vmem:[%s9730_s30 + $0x1d8] sm:$0xff]  ;;  %v7767_v22 = vld [vmem:[%s9730_s30 + $0x1d0] sm:$0xff] }
 0x121   : > { %1618 = vmatprep.subr.bf16.mxu0 %v6598_v26  ;;  %1666 = vmatpush1.msra.mxu1 %v7551_v27  ;;  %v7779_v26 = vld [vmem:[%s9730_s30 + $0x1c0] sm:$0xff] }
 0x122   : > { %1667 = vmatprep.subr.mxu1 %v7558_v28  ;;  %9736 = vst [vmem:[#allocation20_spill] sm:$0xff] %v7779_v26 }
 0x123   : > { %1668 = vmatpush1.msra.mxu1 %v7563_v30 }
 0x124   : > { %1619 = vmatpush1.bf16.msra.mxu0 %v6596_v29  ;;  %1669 = vmatprep.subr.mxu1 %v7569_v32  ;;  %v6628_v29 = vld [vmem:[#allocation2 + $0x254] ss:$24 sps:$4 sm:$0xff]  }
 0x125   : > { %1620 = vmatprep.subr.bf16.mxu0 %v6601_v31  ;;  %1670 = vmatpush1.msra.mxu1 %v7575_v33  ;;  %v7785_v31 = vld [vmem:[%s9730_s30 + $0x1b8] sm:$0xff] }
 0x126   : > { %1671 = vmatprep.subr.mxu1 %v7581_v34  ;;  %9737 = vst [vmem:[#allocation21_spill] sm:$0xff] %v7785_v31 }
 0x127   : > { %1672 = vmatpush1.msra.mxu1 %v7587_v36 }
 0x128   : > { %1621 = vmatpush1.bf16.msra.mxu0 %v6599_v35  ;;  %1673 = vmatprep.subr.mxu1 %v7593_v38  ;;  %v7791_v35 = vld [vmem:[%s9730_s30 + $0x1b0] sm:$0xff] }
 0x129   : > { %1622 = vmatprep.subr.bf16.mxu0 %v6604_v37  ;;  %1674 = vmatpush1.msra.mxu1 %v7599_v39  ;;  %9738 = vst [vmem:[#allocation22_spill] sm:$0xff] %v7791_v35  ;;  %v7797_v37 = vld [vmem:[%s9730_s30 + $0x1a8] sm:$0xff] }
 0x12a   : > { %1675 = vmatprep.subr.mxu1 %v7605_v40  ;;  %9739 = vst [vmem:[#allocation23_spill] sm:$0xff] %v7797_v37 }
 0x12b   : > { %1676 = vmatpush1.msra.mxu1 %v7611_v42 }
 0x12c   : > { %1623 = vmatpush1.bf16.msra.mxu0 %v6602_v41  ;;  %1677 = vmatprep.subr.mxu1 %v7617_v44  ;;  %v6626_v41 = vld [vmem:[#allocation2 + $0x250] ss:$24 sps:$4 sm:$0xff]  }
 0x12d   : > { %1624 = vmatprep.subr.bf16.mxu0 %v6607_v43  ;;  %1678 = vmatpush1.msra.mxu1 %v7623_v45  ;;  %v7803_v43 = vld [vmem:[%s9730_s30 + $0x1a0] sm:$0xff] }
 0x12e   : > { %1679 = vmatprep.subr.mxu1 %v7629_v46  ;;  %9740 = vst [vmem:[#allocation24_spill] sm:$0xff] %v7803_v43 }
 0x12f   : > { %1680 = vmatpush1.msra.mxu1 %v7635_v48 }
 0x130   : > { %1625 = vmatpush1.bf16.msra.mxu0 %v6605_v47  ;;  %1681 = vmatprep.subr.mxu1 %v7641_v50  ;;  %v6631_v47 = vld [vmem:[#allocation2 + $0x224] ss:$24 sps:$4 sm:$0xff]  }
 0x131   : > { %1626 = vmatprep.subr.bf16.mxu0 %v6610_v49  ;;  %1682 = vmatpush1.msra.mxu1 %v7647_v51  ;;  %v7809_v49 = vld [vmem:[%s9730_s30 + $0x198] sm:$0xff] }
 0x132   : > { %1683 = vmatprep.subr.mxu1 %v7653_v52  ;;  %9741 = vst [vmem:[#allocation25_spill] sm:$0xff] %v7809_v49 }
 0x133   : > { %1684 = vmatpush1.msra.mxu1 %v7659_v54 }
 0x134   : > { %1627 = vmatpush1.bf16.msra.mxu0 %v6608_v53  ;;  %1685 = vmatprep.subr.mxu1 %v7665_v56  ;;  %v7815_v53 = vld [vmem:[%s9730_s30 + $0x190] sm:$0xff] }
 0x135   : > { %1628 = vmatprep.subr.bf16.mxu0 %v6613_v55  ;;  %1686 = vmatpush1.msra.mxu1 %v7671_v57  ;;  %9742 = vst [vmem:[#allocation26_spill] sm:$0xff] %v7815_v53  ;;  %v7821_v55 = vld [vmem:[%s9730_s30 + $0x188] sm:$0xff] }
 0x136   : > { %1687 = vmatprep.subr.mxu1 %v7677_v58  ;;  %9743 = vst [vmem:[#allocation27_spill] sm:$0xff] %v7821_v55 }
 0x137   : > { %1688 = vmatpush1.msra.mxu1 %v7683_v60 }
 0x138   : > { %1629 = vmatpush1.bf16.msra.mxu0 %v6611_v59  ;;  %1689 = vmatprep.subr.mxu1 %v7689_v62  ;;  %v6629_v59 = vld [vmem:[#allocation2 + $0x220] ss:$24 sps:$4 sm:$0xff]  }
 0x139   : > { %1630 = vmatprep.subr.bf16.mxu0 %v6616_v61  ;;  %1690 = vmatpush1.msra.mxu1 %v7695_v63  ;;  %v7827_v61 = vld [vmem:[%s9730_s30 + $0x180] sm:$0xff] }
 0x13a   : > { %1691 = vmatprep.subr.mxu1 %v7701_v0  ;;  %9744 = vst [vmem:[#allocation28_spill] sm:$0xff] %v7827_v61 }
 0x13b   : > { %1692 = vmatpush1.msra.mxu1 %v7707_v2 }
 0x13c   : > { %1631 = vmatpush1.bf16.msra.mxu0 %v6614_v1  ;;  %1693 = vmatprep.subr.mxu1 %v7713_v4  ;;  %v6634_v1 = vld [vmem:[#allocation2 + $0x1f4] ss:$24 sps:$4 sm:$0xff]  }
 0x13d   : > { %1632 = vmatprep.subr.bf16.mxu0 %v6619_v3  ;;  %1694 = vmatpush1.msra.mxu1 %v7719_v5  ;;  %v7833_v3 = vld [vmem:[%s9730_s30 + $0x178] sm:$0xff] }
 0x13e   : > { %1695 = vmatprep.subr.mxu1 %v7725_v6  ;;  %9745 = vst [vmem:[#allocation29_spill] sm:$0xff] %v7833_v3 }
 0x13f   : > { %1696 = vmatpush1.msra.mxu1 %v7731_v8 }
 0x140   : > { %1633 = vmatpush2.bf16.msra.mxu0 %v6617_v7  ;;  %1697 = vmatprep.subr.mxu1 %v7737_v11  ;;  %v7839_v7 = vld [vmem:[%s9730_s30 + $0x170] sm:$0xff] }
 0x141   : > { %1634 = vmatprep.subr.bf16.mxu0 %v6622_v10  ;;  %1698 = vmatpush2.msra.mxu1 %v7743_v12  ;;  %9746 = vst [vmem:[#allocation30_spill] sm:$0xff] %v7839_v7  ;;  %v7845_v10 = vld [vmem:[%s9730_s30 + $0x168] sm:$0xff] }
 0x142   : > { %1699 = vmatprep.subr.mxu1 %v7749_v15  ;;  %9747 = vst [vmem:[#allocation31_spill] sm:$0xff] %v7845_v10 }
 0x143   : > { %1700 = vmatpush2.msra.mxu1 %v7755_v19 }
 0x144   : > { %1635 = vmatpush2.bf16.msra.mxu0 %v6620_v16  ;;  %1701 = vmatprep.subr.mxu1 %v7761_v21  ;;  %v6632_v16 = vld [vmem:[#allocation2 + $0x1f0] ss:$24 sps:$4 sm:$0xff]  }
 0x145   : > { %1636 = vmatprep.subr.bf16.mxu0 %v6625_v20  ;;  %1702 = vmatpush2.msra.mxu1 %v7767_v22  ;;  %v7851_v20 = vld [vmem:[%s9730_s30 + $0x160] sm:$0xff] }
 0x146   : > { %1703 = vmatprep.subr.mxu1 %v7773_v24  ;;  %9748 = vst [vmem:[#allocation32_spill] sm:$0xff] %v7851_v20 }
 0x147   : > { %1704 = vmatpush2.msra.mxu1 %v7779_v26 }
 0x148   : > { %1637 = vmatpush2.bf16.msra.mxu0 %v6623_v25  ;;  %1705 = vmatprep.subr.mxu1 %v7785_v31  ;;  %v6637_v25 = vld [vmem:[#allocation2 + $0x1c4] ss:$24 sps:$4 sm:$0xff]  }
 0x149   : > { %1638 = vmatprep.subr.bf16.mxu0 %v6628_v29  ;;  %1706 = vmatpush2.msra.mxu1 %v7791_v35  ;;  %v7857_v29 = vld [vmem:[%s9730_s30 + $0x158] sm:$0xff] }
 0x14a   : > { %1707 = vmatprep.subr.mxu1 %v7797_v37  ;;  %9749 = vst [vmem:[#allocation33_spill] sm:$0xff] %v7857_v29 }
 0x14b   : > { %1708 = vmatpush2.msra.mxu1 %v7803_v43 }
 0x14c   : > { %1639 = vmatpush2.bf16.msra.mxu0 %v6626_v41  ;;  %1709 = vmatprep.subr.mxu1 %v7809_v49  ;;  %v7863_v41 = vld [vmem:[%s9730_s30 + $0x150] sm:$0xff] }
 0x14d   : > { %1640 = vmatprep.subr.bf16.mxu0 %v6631_v47  ;;  %1710 = vmatpush2.msra.mxu1 %v7815_v53  ;;  %9750 = vst [vmem:[#allocation34_spill] sm:$0xff] %v7863_v41  ;;  %v7869_v47 = vld [vmem:[%s9730_s30 + $0x148] sm:$0xff] }
 0x14e   : > { %1711 = vmatprep.subr.mxu1 %v7821_v55  ;;  %9751 = vst [vmem:[#allocation35_spill] sm:$0xff] %v7869_v47 }
 0x14f   : > { %1712 = vmatpush2.msra.mxu1 %v7827_v61 }
 0x150   : > { %1641 = vmatpush2.bf16.msra.mxu0 %v6629_v59  ;;  %1713 = vmatprep.subr.mxu1 %v7833_v3  ;;  %v6635_v59 = vld [vmem:[#allocation2 + $0x1c0] ss:$24 sps:$4 sm:$0xff]  }
 0x151   : > { %1642 = vmatprep.subr.bf16.mxu0 %v6634_v1  ;;  %1714 = vmatpush2.msra.mxu1 %v7839_v7  ;;  %v6640_v1 = vld [vmem:[#allocation2 + $0x194] ss:$24 sps:$4 sm:$0xff]  }
 0x152   : > { %1715 = vmatprep.subr.mxu1 %v7845_v10 }
 0x153   : > { %1716 = vmatpush2.msra.mxu1 %v7851_v20 }
 0x154   : > { %1643 = vmatpush2.bf16.msra.mxu0 %v6632_v16  ;;  %1717 = vmatprep.subr.mxu1 %v7857_v29  ;;  %v7879_v16 = vld [vmem:[%s9730_s30 + $0x140] sm:$0xff] }
 0x155   : > { %1644 = vmatprep.subr.bf16.mxu0 %v6637_v25  ;;  %1718 = vmatpush2.msra.mxu1 %v7863_v41  ;;  %9752 = vst [vmem:[#allocation36_spill] sm:$0xff] %v7879_v16  ;;  %v7886_v25 = vld [vmem:[%s9730_s30 + $0x138] sm:$0xff] }
 0x156   : > { %1719 = vmatprep.subr.mxu1 %v7869_v47  ;;  %9753 = vst [vmem:[#allocation37_spill] sm:$0xff] %v7886_v25 }
 0x157   : > { %1720 = vmatpush2.msra.mxu1 %v7879_v16 }
 0x158   : > { %1645 = vmatpush2.bf16.msra.mxu0 %v6635_v59  ;;  %1721 = vmatprep.subr.mxu1 %v7886_v25  ;;  %v7907_v59 = vld [vmem:[%s9730_s30 + $0x120] sm:$0xff] }
 0x159   : > { %1646 = vmatprep.subr.bf16.mxu0 %v6640_v1  ;;  %9756 = vst [vmem:[#allocation40_spill] sm:$0xff] %v7907_v59  ;;  %v7914_v1 = vld [vmem:[%s9730_s30 + $0x118] sm:$0xff] }
 0x15a   : > { %9757 = vst [vmem:[#allocation41_spill] sm:$0xff] %v7914_v1 }
 0x15c   : > { %1647 = vmatpush2.bf16.msra.mxu0 %v6638_v18  ;;  %v7893_v18 = vld [vmem:[%s9730_s30 + $0x130] sm:$0xff] }
 0x15d   : > { %1738 = vmatprep.subr.mxu0 %v7531_v9  ;;  %9754 = vst [vmem:[#allocation38_spill] sm:$0xff] %v7893_v18  ;;  %1722 = vmatpush2.msra.mxu1 %v7893_v18 }
 0x15f   : > { %1649 = vmatmul.mubr.bf16.vlgmr.msra.gmra.mxu0 %v7546_v23  ;;  %v7900_v23 = vld [vmem:[%s9730_s30 + $0x128] sm:$0xff] }
 0x160   : > { %1739 = vmatpush1.msra.mxu0 %v7551_v27  ;;  %9755 = vst [vmem:[#allocation39_spill] sm:$0xff] %v7900_v23  ;;  %1723 = vmatprep.subr.mxu1 %v7900_v23 }
 0x161   : > { %1740 = vmatprep.subr.mxu0 %v7558_v28  ;;  %1724 = vmatpush2.msra.mxu1 %v7907_v59 }
 0x162   : > { %1741 = vmatpush1.msra.mxu0 %v7563_v30  ;;  %1725 = vmatprep.subr.mxu1 %v7914_v1 }
 0x163   : > { %1742 = vmatprep.subr.mxu0 %v7569_v32  ;;  %1726 = vmatpush2.msra.mxu1 %v7921_v14 }
 0x164   : > { %1743 = vmatpush1.msra.mxu0 %v7575_v33  ;;  %1727 = vmatprep.subr.mxu1 %v7928_v17 }
 0x165   : > { %1744 = vmatprep.subr.mxu0 %v7581_v34  ;;  %1728 = vmatpush2.msra.mxu1 %v7935_v13 }
 0x166   : > { %1745 = vmatpush1.msra.mxu0 %v7587_v36  ;;  %1837 = vmatprep.subr.mxu1 %v7531_v9 }
 0x167   : > { %1746 = vmatprep.subr.mxu0 %v7593_v38 }
 0x168   : > { %1747 = vmatpush1.msra.mxu0 %v7599_v39 }
 0x169   : > { %1748 = vmatprep.subr.mxu0 %v7605_v40 }
 0x16a   : > { %1749 = vmatpush1.msra.mxu0 %v7611_v42 }
 0x16b   : > { %1750 = vmatprep.subr.mxu0 %v7617_v44 }
 0x16c   : > { %1751 = vmatpush1.msra.mxu0 %v7623_v45 }
 0x16d   : > { %1752 = vmatprep.subr.mxu0 %v7629_v46 }
 0x16e   : > { %1753 = vmatpush1.msra.mxu0 %v7635_v48 }
 0x16f   : > { %1754 = vmatprep.subr.mxu0 %v7641_v50 }
 0x170   : > { %1755 = vmatpush1.msra.mxu0 %v7647_v51 }
 0x171   : > { %1756 = vmatprep.subr.mxu0 %v7653_v52 }
 0x172   : > { %1757 = vmatpush1.msra.mxu0 %v7659_v54 }
 0x173   : > { %1758 = vmatprep.subr.mxu0 %v7665_v56 }
 0x174   : > { %1759 = vmatpush1.msra.mxu0 %v7671_v57 }
 0x175   : > { %1760 = vmatprep.subr.mxu0 %v7677_v58 }
 0x176   : > { %1761 = vmatpush1.msra.mxu0 %v7683_v60 }
 0x177   : > { %1762 = vmatprep.subr.mxu0 %v7689_v62 }
 0x178   : > { %1763 = vmatpush1.msra.mxu0 %v7695_v63 }
 0x179   : > { %1764 = vmatprep.subr.mxu0 %v7701_v0 }
 0x17a   : > { %1765 = vmatpush1.msra.mxu0 %v7707_v2 }
 0x17b   : > { %1766 = vmatprep.subr.mxu0 %v7713_v4 }
 0x17c   : > { %1767 = vmatpush1.msra.mxu0 %v7719_v5 }
 0x17d   : > { %1768 = vmatprep.subr.mxu0 %v7725_v6 }
 0x17e   : > { %1769 = vmatpush1.msra.mxu0 %v7731_v8 }
 0x17f   : > { %1770 = vmatprep.subr.mxu0 %v7737_v11 }
 0x180   : > { %1771 = vmatpush2.msra.mxu0 %v7743_v12 }
 0x181   : > { %1772 = vmatprep.subr.mxu0 %v7749_v15 }
 0x182   : > { %1773 = vmatpush2.msra.mxu0 %v7755_v19 }
 0x183   : > { %1774 = vmatprep.subr.mxu0 %v7761_v21 }
 0x184   : > { %1775 = vmatpush2.msra.mxu0 %v7767_v22 }
 0x185   : > { %1776 = vmatprep.subr.mxu0 %v7773_v24 }
 0x186   : > { %1777 = vmatpush2.msra.mxu0 %v7779_v26 }
 0x187   : > { %1778 = vmatprep.subr.mxu0 %v7785_v31 }
 0x188   : > { %1779 = vmatpush2.msra.mxu0 %v7791_v35 }
 0x189   : > { %1780 = vmatprep.subr.mxu0 %v7797_v37 }
 0x18a   : > { %1781 = vmatpush2.msra.mxu0 %v7803_v43 }
 0x18b   : > { %1782 = vmatprep.subr.mxu0 %v7809_v49 }
 0x18c   : > { %1783 = vmatpush2.msra.mxu0 %v7815_v53 }
 0x18d   : > { %1784 = vmatprep.subr.mxu0 %v7821_v55 }
 0x18e   : > { %1785 = vmatpush2.msra.mxu0 %v7827_v61 }
 0x18f   : > { %1786 = vmatprep.subr.mxu0 %v7833_v3 }
 0x190   : > { %1787 = vmatpush2.msra.mxu0 %v7839_v7 }
 0x191   : > { %1788 = vmatprep.subr.mxu0 %v7845_v10 }
 0x192   : > { %1789 = vmatpush2.msra.mxu0 %v7851_v20 }
 0x193   : > { %1790 = vmatprep.subr.mxu0 %v7857_v29 }
 0x194   : > { %1791 = vmatpush2.msra.mxu0 %v7863_v41 }
 0x195   : > { %1792 = vmatprep.subr.mxu0 %v7869_v47  ;;  %v1020_v47 = vlaneseq }
 0x196   : > { %1793 = vmatpush2.msra.mxu0 %v7879_v16 }
 0x197   : > { %1794 = vmatprep.subr.mxu0 %v7886_v25  ;;  %v7995_v16 = vshrl.u32 %v1020_v47, 7 }
 0x198   : > { %1795 = vmatpush2.msra.mxu0 %v7893_v18 }
 0x199   : > { %1796 = vmatprep.subr.mxu0 %v7900_v23  ;;  %9761 = vst [vmem:[#allocation45_spill] sm:$0xff] %v7995_v16  ;;  %v7998_v25 = vsub.s32 0, %v7995_v16 }
 0x19a   : > { %1797 = vmatpush2.msra.mxu0 %v7907_v59  ;;  %v8003_v59 = vld [vmem:[%s9763_s25] sm:$0x3f] }
 0x19b   : > { %1798 = vmatprep.subr.mxu0 %v7914_v1  ;;  %9762 = vst [vmem:[#allocation46_spill] sm:$0xff] %v7998_v25  ;;  %v8006_v1 = vsub.s32 1, %v7995_v16 }
 0x19c   : > { %1799 = vmatpush2.msra.mxu0 %v7921_v14 }
 0x19d   : > { %1800 = vmatprep.subr.mxu0 %v7928_v17  ;;  %9764 = vst [vmem:[#allocation47_spill] sm:$0xff] %v8006_v1  ;;  %v1023_v17 = vrot.slane %v8003_v59, %v7998_v25  ;;  %v1027_v47 = vrot.slane %v8003_v59, %v8006_v1 }
 0x19e   : > { %1801 = vmatpush2.msra.mxu0 %v7935_v13  ;;  %v8011_v13 = vsub.s32 3, %v7995_v16 }
 0x19f   : > { %1910 = vmatprep.subr.mxu0 %v7531_v9  ;;  %v8014_v9 = vsub.s32 2, %v7995_v16 }
 0x1a0   : > { %9765 = vst [vmem:[#allocation48_spill] sm:$0xff] %v8011_v13  ;;  %v1035_v41 = vrot.slane %v8003_v59, %v8011_v13 }
 0x1a1   : > { %9766 = vst [vmem:[#allocation49_spill] sm:$0xff] %v8014_v9  ;;  %v1031_v29 = vrot.slane %v8003_v59, %v8014_v9 }
 0x1df   : > { %v1564_v14 = vpop.f32.mrf.mxu0  ;;  %v1607_v23 = vpop.f32.mrf.mxu1 }
 0x1e0   : > { %v1565_v18 = vadd.f32 %v1564_v14, %v1023_v17  ;;  %v1608_v49 = vadd.f32 %v1607_v23, %v1031_v29  ;;  %v6680_v23 = vld [vmem:[%s9793_s22 + $0xa0] ss:$8 sps:$4 sm:$0xff]  }
 0x1e1   : > { %v1566_v20 = vpop.f32.mrf.mxu0  ;;  %v1609_v25 = vpop.f32.mrf.mxu1 }
 0x1e2   : > { %v1567_v10 = vadd.f32 %v1566_v20, %v1027_v47  ;;  %v1659_v7 = vmul.f32 0.125, %v1565_v18  ;;  %v1610_v55 = vadd.f32 %v1609_v25, %v1035_v41 }
 0x1e3   : > { %v1568_v3 = vpop.f32.mrf.mxu0  ;;  %v1611_v61 = vpop.f32.mrf.mxu1 }
 0x1e4   : > { %v1660_v16 = vmul.f32 0.125, %v1567_v10  ;;  %v1569_v53 = vadd.f32 %v1568_v3, %v1023_v17  ;;  %v1612_v35 = vadd.f32 %v1611_v61, %v1031_v29  ;;  %v1663_v13 = vmul.f32 %v1659_v7, %v1608_v49  ;;  %v6671_v61 = vld [vmem:[%s9793_s22 + $0xd0] ss:$8 sps:$4 sm:$0xff]   ;;  %v6676_v3 = vld [vmem:[%s9793_s22 + $0xc4] ss:$8 sps:$4 sm:$0xff]  }
 0x1e5   : > { %v1570_v1 = vpop.f32.mrf.mxu0  ;;  %v1613_v43 = vpop.f32.mrf.mxu1  ;;  %v6677_v29 = vld [vmem:[%s9793_s22 + $0xb0] ss:$8 sps:$4 sm:$0xff]  }
 0x1e6   : > { %v1664_v37 = vmul.f32 %v1660_v16, %v1610_v55  ;;  %v1661_v14 = vmul.f32 0.125, %v1569_v53  ;;  %v1571_v31 = vadd.f32 %v1570_v1, %v1027_v47  ;;  %v1614_v26 = vadd.f32 %v1613_v43, %v1035_v41  ;;  %v6665_v43 = vld [vmem:[%s9793_s22 + $0xf0] ss:$8 sps:$4 sm:$0xff]   ;;  %v6668_v53 = vld [vmem:[%s9793_s22 + $0xe0] ss:$8 sps:$4 sm:$0xff]  }
 0x1e7   : > { %v1736_v10 = vmul.f32 %v1659_v7, %v1612_v35  ;;  %v6674_v7 = vld [vmem:[%s9793_s22 + $0xc0] ss:$8 sps:$4 sm:$0xff]   ;;  %v6679_v41 = vld [vmem:[%s9793_s22 + $0xb4] ss:$8 sps:$4 sm:$0xff]   ;;  %v6688_v47 = vld [vmem:[%s9793_s22 + $0x84] ss:$8 sps:$4 sm:$0xff]  }
 0x1e8   : > { %v8022_v24 = vmul.f32 %v1661_v14, %v1608_v49  ;;  %v8024_v9 = vmul.f32 %v1661_v14, %v1612_v35  ;;  %v1662_v20 = vmul.f32 0.125, %v1571_v31  ;;  %1729 = vmatprep.mubr.f32.mxu1 %v1664_v37  ;;  %v1737_v18 = vmul.f32 %v1660_v16, %v1614_v26  ;;  %v6664_v31 = vld [vmem:[%s9793_s22 + $0x4] ss:$8 sps:$4 sm:$0xff]   ;;  %v6662_v35 = vld [vmem:[%s9793_s22] ss:$8 sps:$4 sm:$0xff]  }
 0x1e9   : > { %1730 = vmatmul.mubr.f32.vlgmr.msra.gmra.mxu1 %v1663_v13  ;;  %v9767_v13 = vld [vmem:[#allocation19_spill] sm:$0xff]  ;;  %v6667_v37 = vld [vmem:[%s9793_s22 + $0xf4] ss:$8 sps:$4 sm:$0xff]  }
 0x1ea   : > { %v1836_v25 = vmul.f32 %v1662_v20, %v1610_v55  ;;  %1838 = vmatpush1.msra.mxu1 %v7551_v27  ;;  %v1909_v17 = vmul.f32 %v1662_v20, %v1614_v26  ;;  %1802 = vmatprep.mubr.f32.mxu0 %v1737_v18  ;;  %v6659_v26 = vld [vmem:[%s9793_s22 + $0x10] ss:$8 sps:$4 sm:$0xff]   ;;  %v6670_v49 = vld [vmem:[%s9793_s22 + $0xe4] ss:$8 sps:$4 sm:$0xff]   ;;  %v6673_v55 = vld [vmem:[%s9793_s22 + $0xd4] ss:$8 sps:$4 sm:$0xff]  }
 0x1eb   : > { %1839 = vmatprep.subr.mxu1 %v7558_v28  ;;  %1803 = vmatmul.mubr.f32.vlgmr.msra.gmra.mxu0 %v1736_v10  ;;  %v6682_v16 = vld [vmem:[%s9793_s22 + $0xa4] ss:$8 sps:$4 sm:$0xff]   ;;  %v6685_v1 = vld [vmem:[%s9793_s22 + $0x94] ss:$8 sps:$4 sm:$0xff]   ;;  %v6686_v14 = vld [vmem:[%s9793_s22 + $0x80] ss:$8 sps:$4 sm:$0xff]  }
 0x1ec   : > { %1840 = vmatpush1.msra.mxu1 %v7563_v30  ;;  %1911 = vmatpush1.msra.mxu0 %v7551_v27  ;;  %v9768_v27 = vld [vmem:[#allocation20_spill] sm:$0xff] }
 0x1ed   : > { %1841 = vmatprep.subr.mxu1 %v7569_v32  ;;  %1901 = vmatprep.mubr.f32.mxu1 %v1836_v25 }
 0x1ee   : > { %1912 = vmatprep.subr.mxu0 %v7558_v28  ;;  %1974 = vmatprep.mubr.f32.mxu0 %v1909_v17  ;;  %v9769_v28 = vld [vmem:[#allocation21_spill] sm:$0xff] }
 0x1ef   : > { %1842 = vmatpush1.msra.mxu1 %v7575_v33  ;;  %1913 = vmatpush1.msra.mxu0 %v7563_v30  ;;  %v9770_v30 = vld [vmem:[#allocation22_spill] sm:$0xff] }
 0x1f0   : > { %1843 = vmatprep.subr.mxu1 %v7581_v34  ;;  %1914 = vmatprep.subr.mxu0 %v7569_v32  ;;  %v9771_v32 = vld [vmem:[#allocation23_spill] sm:$0xff] }
 0x1f1   : > { %1844 = vmatpush1.msra.mxu1 %v7587_v36  ;;  %1915 = vmatpush1.msra.mxu0 %v7575_v33  ;;  %v9772_v33 = vld [vmem:[#allocation24_spill] sm:$0xff] }
 0x1f2   : > { %1845 = vmatprep.subr.mxu1 %v7593_v38  ;;  %1916 = vmatprep.subr.mxu0 %v7581_v34  ;;  %v9773_v34 = vld [vmem:[#allocation25_spill] sm:$0xff] }
 0x1f3   : > { %1846 = vmatpush1.msra.mxu1 %v7599_v39  ;;  %1917 = vmatpush1.msra.mxu0 %v7587_v36  ;;  %v9774_v36 = vld [vmem:[#allocation26_spill] sm:$0xff] }
 0x1f4   : > { %1847 = vmatprep.subr.mxu1 %v7605_v40  ;;  %1918 = vmatprep.subr.mxu0 %v7593_v38  ;;  %v9775_v38 = vld [vmem:[#allocation27_spill] sm:$0xff] }
 0x1f5   : > { %1848 = vmatpush1.msra.mxu1 %v7611_v42  ;;  %1919 = vmatpush1.msra.mxu0 %v7599_v39  ;;  %v9776_v39 = vld [vmem:[#allocation28_spill] sm:$0xff] }
 0x1f6   : > { %1849 = vmatprep.subr.mxu1 %v7617_v44  ;;  %1920 = vmatprep.subr.mxu0 %v7605_v40  ;;  %v9777_v40 = vld [vmem:[#allocation29_spill] sm:$0xff] }
 0x1f7   : > { %1850 = vmatpush1.msra.mxu1 %v7623_v45  ;;  %1921 = vmatpush1.msra.mxu0 %v7611_v42  ;;  %v9778_v42 = vld [vmem:[#allocation30_spill] sm:$0xff] }
 0x1f8   : > { %1851 = vmatprep.subr.mxu1 %v7629_v46  ;;  %1922 = vmatprep.subr.mxu0 %v7617_v44  ;;  %v9779_v44 = vld [vmem:[#allocation31_spill] sm:$0xff] }
 0x1f9   : > { %1852 = vmatpush1.msra.mxu1 %v7635_v48  ;;  %1923 = vmatpush1.msra.mxu0 %v7623_v45  ;;  %v9780_v45 = vld [vmem:[#allocation32_spill] sm:$0xff] }
 0x1fa   : > { %1853 = vmatprep.subr.mxu1 %v7641_v50  ;;  %1924 = vmatprep.subr.mxu0 %v7629_v46  ;;  %v9781_v46 = vld [vmem:[#allocation33_spill] sm:$0xff] }
 0x1fb   : > { %1854 = vmatpush1.msra.mxu1 %v7647_v51  ;;  %1925 = vmatpush1.msra.mxu0 %v7635_v48  ;;  %v9782_v48 = vld [vmem:[#allocation34_spill] sm:$0xff] }
 0x1fc   : > { %1855 = vmatprep.subr.mxu1 %v7653_v52  ;;  %1926 = vmatprep.subr.mxu0 %v7641_v50  ;;  %v9783_v50 = vld [vmem:[#allocation35_spill] sm:$0xff] }
 0x1fd   : > { %1856 = vmatpush1.msra.mxu1 %v7659_v54  ;;  %1927 = vmatpush1.msra.mxu0 %v7647_v51  ;;  %v9784_v51 = vld [vmem:[#allocation36_spill] sm:$0xff] }
 0x1fe   : > { %1857 = vmatprep.subr.mxu1 %v7665_v56  ;;  %1928 = vmatprep.subr.mxu0 %v7653_v52  ;;  %v9785_v52 = vld [vmem:[#allocation37_spill] sm:$0xff] }
 0x1ff   : > { %1858 = vmatpush1.msra.mxu1 %v7671_v57  ;;  %1929 = vmatpush1.msra.mxu0 %v7659_v54  ;;  %v9786_v54 = vld [vmem:[#allocation38_spill] sm:$0xff] }
 0x200   : > { %1859 = vmatprep.subr.mxu1 %v7677_v58  ;;  %1930 = vmatprep.subr.mxu0 %v7665_v56  ;;  %v9787_v56 = vld [vmem:[#allocation39_spill] sm:$0xff] }
 0x201   : > { %1860 = vmatpush1.msra.mxu1 %v7683_v60  ;;  %1931 = vmatpush1.msra.mxu0 %v7671_v57  ;;  %v9788_v57 = vld [vmem:[#allocation40_spill] sm:$0xff] }
 0x202   : > { %1861 = vmatprep.subr.mxu1 %v7689_v62  ;;  %1932 = vmatprep.subr.mxu0 %v7677_v58  ;;  %v9789_v58 = vld [vmem:[#allocation41_spill] sm:$0xff] }
 0x203   : > { %1862 = vmatpush1.msra.mxu1 %v7695_v63  ;;  %1933 = vmatpush1.msra.mxu0 %v7683_v60  ;;  %v9790_v60 = vld [vmem:[#allocation42_spill] sm:$0xff] }
 0x204   : > { %1863 = vmatprep.subr.mxu1 %v7701_v0  ;;  %1934 = vmatprep.subr.mxu0 %v7689_v62  ;;  %v9791_v62 = vld [vmem:[#allocation43_spill] sm:$0xff] }
 0x205   : > { %1864 = vmatpush1.msra.mxu1 %v7707_v2  ;;  %1935 = vmatpush1.msra.mxu0 %v7695_v63  ;;  %v9792_v63 = vld [vmem:[#allocation44_spill] sm:$0xff] }
 0x206   : > { %1865 = vmatprep.subr.mxu1 %v7713_v4  ;;  %1936 = vmatprep.subr.mxu0 %v7701_v0  ;;  %v6641_v0 = vld [vmem:[%s9793_s22 + $0x70] ss:$8 sps:$4 sm:$0xff]  }
 0x207   : > { %1866 = vmatpush1.msra.mxu1 %v7719_v5  ;;  %1937 = vmatpush1.msra.mxu0 %v7707_v2  ;;  %v6643_v2 = vld [vmem:[%s9793_s22 + $0x74] ss:$8 sps:$4 sm:$0xff]  }
 0x208   : > { %1867 = vmatprep.subr.mxu1 %v7725_v6  ;;  %1938 = vmatprep.subr.mxu0 %v7713_v4  ;;  %v6646_v4 = vld [vmem:[%s9793_s22 + $0x64] ss:$8 sps:$4 sm:$0xff]  }
 0x209   : > { %1868 = vmatpush1.msra.mxu1 %v7731_v8  ;;  %1939 = vmatpush1.msra.mxu0 %v7719_v5  ;;  %v6644_v5 = vld [vmem:[%s9793_s22 + $0x60] ss:$8 sps:$4 sm:$0xff]  }
 0x20a   : > { %1869 = vmatprep.subr.mxu1 %v7737_v11  ;;  %1940 = vmatprep.subr.mxu0 %v7725_v6  ;;  %v6649_v6 = vld [vmem:[%s9793_s22 + $0x54] ss:$8 sps:$4 sm:$0xff]  }
 0x20b   : > { %1870 = vmatpush2.msra.mxu1 %v7743_v12  ;;  %1941 = vmatpush1.msra.mxu0 %v7731_v8  ;;  %v6647_v8 = vld [vmem:[%s9793_s22 + $0x50] ss:$8 sps:$4 sm:$0xff]  }
 0x20c   : > { %1871 = vmatprep.subr.mxu1 %v7749_v15  ;;  %1942 = vmatprep.subr.mxu0 %v7737_v11  ;;  %v6652_v11 = vld [vmem:[%s9793_s22 + $0x44] ss:$8 sps:$4 sm:$0xff]  }
 0x20d   : > { %1872 = vmatpush2.msra.mxu1 %v7755_v19  ;;  %1943 = vmatpush2.msra.mxu0 %v7743_v12  ;;  %v6650_v12 = vld [vmem:[%s9793_s22 + $0x40] ss:$8 sps:$4 sm:$0xff]  }
 0x20e   : > { %1873 = vmatprep.subr.mxu1 %v7761_v21  ;;  %1944 = vmatprep.subr.mxu0 %v7749_v15  ;;  %v6655_v15 = vld [vmem:[%s9793_s22 + $0x34] ss:$8 sps:$4 sm:$0xff]  }
 0x20f   : > { %1874 = vmatpush2.msra.mxu1 %v7767_v22  ;;  %1945 = vmatpush2.msra.mxu0 %v7755_v19  ;;  %v6653_v19 = vld [vmem:[%s9793_s22 + $0x30] ss:$8 sps:$4 sm:$0xff]  }
 0x210   : > { %1875 = vmatprep.subr.mxu1 %v9767_v13  ;;  %1946 = vmatprep.subr.mxu0 %v7761_v21  ;;  %v6658_v21 = vld [vmem:[%s9793_s22 + $0x24] ss:$8 sps:$4 sm:$0xff]  }
 0x211   : > { %1876 = vmatpush2.msra.mxu1 %v9768_v27  ;;  %1947 = vmatpush2.msra.mxu0 %v7767_v22  ;;  %v6656_v22 = vld [vmem:[%s9793_s22 + $0x20] ss:$8 sps:$4 sm:$0xff]  }
 0x212   : > { %1877 = vmatprep.subr.mxu1 %v9769_v28  ;;  %1948 = vmatprep.subr.mxu0 %v9767_v13 }
 0x213   : > { %1878 = vmatpush2.msra.mxu1 %v9770_v30  ;;  %1949 = vmatpush2.msra.mxu0 %v9768_v27 }
 0x214   : > { %1879 = vmatprep.subr.mxu1 %v9771_v32  ;;  %1950 = vmatprep.subr.mxu0 %v9769_v28 }
 0x215   : > { %1880 = vmatpush2.msra.mxu1 %v9772_v33  ;;  %1951 = vmatpush2.msra.mxu0 %v9770_v30 }
 0x216   : > { %1881 = vmatprep.subr.mxu1 %v9773_v34  ;;  %1952 = vmatprep.subr.mxu0 %v9771_v32 }
 0x217   : > { %1882 = vmatpush2.msra.mxu1 %v9774_v36  ;;  %1953 = vmatpush2.msra.mxu0 %v9772_v33 }
 0x218   : > { %1883 = vmatprep.subr.mxu1 %v9775_v38  ;;  %1954 = vmatprep.subr.mxu0 %v9773_v34 }
 0x219   : > { %1884 = vmatpush2.msra.mxu1 %v9776_v39  ;;  %1955 = vmatpush2.msra.mxu0 %v9774_v36 }
 0x21a   : > { %1885 = vmatprep.subr.mxu1 %v9777_v40  ;;  %1956 = vmatprep.subr.mxu0 %v9775_v38 }
 0x21b   : > { %1886 = vmatpush2.msra.mxu1 %v9778_v42  ;;  %1957 = vmatpush2.msra.mxu0 %v9776_v39 }
 0x21c   : > { %1887 = vmatprep.subr.mxu1 %v9779_v44  ;;  %1958 = vmatprep.subr.mxu0 %v9777_v40 }
 0x21d   : > { %1888 = vmatpush2.msra.mxu1 %v9780_v45  ;;  %1959 = vmatpush2.msra.mxu0 %v9778_v42 }
 0x21e   : > { %1889 = vmatprep.subr.mxu1 %v9781_v46  ;;  %1960 = vmatprep.subr.mxu0 %v9779_v44 }
 0x21f   : > { %1890 = vmatpush2.msra.mxu1 %v9782_v48  ;;  %1961 = vmatpush2.msra.mxu0 %v9780_v45  ;;  %v1650_v20 = vpop.f32.mrf.mxu0 }
 0x220   : > { %1891 = vmatprep.subr.mxu1 %v9783_v50  ;;  %1962 = vmatprep.subr.mxu0 %v9781_v46 }
 0x221   : > { %1892 = vmatpush2.msra.mxu1 %v9784_v51  ;;  %1963 = vmatpush2.msra.mxu0 %v9782_v48  ;;  %v1652_v18 = vpop.f32.mrf.mxu0 }
 0x222   : > { %1893 = vmatprep.subr.mxu1 %v9785_v52  ;;  %1964 = vmatprep.subr.mxu0 %v9783_v50 }
 0x223   : > { %1894 = vmatpush2.msra.mxu1 %v9786_v54  ;;  %1965 = vmatpush2.msra.mxu0 %v9784_v51  ;;  %v1654_v10 = vpop.f32.mrf.mxu0 }
 0x224   : > { %1895 = vmatprep.subr.mxu1 %v9787_v56  ;;  %1966 = vmatprep.subr.mxu0 %v9785_v52 }
 0x225   : > { %1896 = vmatpush2.msra.mxu1 %v9788_v57  ;;  %1967 = vmatpush2.msra.mxu0 %v9786_v54  ;;  %v1656_v25 = vpop.f32.mrf.mxu0 }
 0x226   : > { %1897 = vmatprep.subr.mxu1 %v9789_v58  ;;  %1968 = vmatprep.subr.mxu0 %v9787_v56 }
 0x227   : > { %1898 = vmatpush2.msra.mxu1 %v9790_v60  ;;  %1969 = vmatpush2.msra.mxu0 %v9788_v57 }
 0x228   : > { %1899 = vmatprep.subr.mxu1 %v9791_v62  ;;  %1970 = vmatprep.subr.mxu0 %v9789_v58 }
 0x229   : > { %1900 = vmatpush2.msra.mxu1 %v9792_v63  ;;  %1971 = vmatpush2.msra.mxu0 %v9790_v60 }
 0x22a   : > { %1902 = vmatmul.mubr.f32.vlgmr.msra.gmra.mxu1 %v8022_v24  ;;  %1972 = vmatprep.subr.mxu0 %v9791_v62  ;;  %v6661_v24 = vld [vmem:[%s9793_s22 + $0x14] ss:$8 sps:$4 sm:$0xff]  }
 0x22b   : > { %1973 = vmatpush2.msra.mxu0 %v9792_v63  ;;  %2213 = vmatprep.subr.bf16.mxu1 %v6643_v2 }
 0x22c   : > { %1975 = vmatmul.mubr.f32.vlgmr.msra.gmra.mxu0 %v8024_v9  ;;  %2214 = vmatpush1.bf16.msra.mxu1 %v6641_v0  ;;  %v6683_v9 = vld [vmem:[%s9793_s22 + $0x90] ss:$8 sps:$4 sm:$0xff]  }
 0x22d   : > { %2215 = vmatprep.subr.bf16.mxu1 %v6646_v4 }
 0x230   : > { %2216 = vmatpush1.bf16.msra.mxu1 %v6644_v5 }
 0x231   : > { %2217 = vmatprep.subr.bf16.mxu1 %v6649_v6 }
 0x234   : > { %2218 = vmatpush1.bf16.msra.mxu1 %v6647_v8 }
 0x235   : > { %2219 = vmatprep.subr.bf16.mxu1 %v6652_v11 }
 0x238   : > { %2220 = vmatpush1.bf16.msra.mxu1 %v6650_v12 }
 0x239   : > { %2221 = vmatprep.subr.bf16.mxu1 %v6655_v15 }
 0x23c   : > { %2222 = vmatpush1.bf16.msra.mxu1 %v6653_v19 }
 0x23d   : > { %2223 = vmatprep.subr.bf16.mxu1 %v6658_v21 }
 0x240   : > { %2224 = vmatpush1.bf16.msra.mxu1 %v6656_v22 }
 0x241   : > { %2225 = vmatprep.subr.bf16.mxu1 %v6661_v24  ;;  %v9794_v24 = vld [vmem:[#allocation45_spill] sm:$0xff] }
 0x244   : > { %2226 = vmatpush1.bf16.msra.mxu1 %v6659_v26  ;;  %v8251_v26 = vsub.s32 4, %v9794_v24 }
 0x245   : > { %2227 = vmatprep.subr.bf16.mxu1 %v6664_v31  ;;  %v8254_v31 = vsub.s32 5, %v9794_v24  ;;  %v8640_v24 = vld [vmem:[%s9730_s30 + $0x160] sm:$0xff] }
 0x246   : > { %9795 = vst [vmem:[#allocation19_spill] sm:$0xff] %v8251_v26  ;;  %9820 = vst [vmem:[#allocation38_spill] sm:$0xff] %v8640_v24 }
 0x247   : > { %9796 = vst [vmem:[#allocation20_spill] sm:$0xff] %v8254_v31 }
 0x248   : > { %2228 = vmatpush1.bf16.msra.mxu1 %v6662_v35 }
 0x249   : > { %2229 = vmatprep.subr.bf16.mxu1 %v6667_v37  ;;  %v1039_v37 = vrot.slane %v8003_v59, %v8251_v26  ;;  %v8676_v26 = vld [vmem:[%s9730_s30 + $0x130] sm:$0xff] }
 0x24a   : > { %9826 = vst [vmem:[#allocation44_spill] sm:$0xff] %v8676_v26 }
 0x24c   : > { %2230 = vmatpush2.bf16.msra.mxu1 %v6665_v43  ;;  %v1043_v43 = vrot.slane %v8003_v59, %v8254_v31  ;;  %v8670_v31 = vld [vmem:[%s9730_s30 + $0x138] sm:$0xff] }
 0x24d   : > { %2231 = vmatprep.subr.bf16.mxu1 %v6670_v49  ;;  %v1651_v49 = vadd.f32 %v1650_v20, %v1039_v37  ;;  %9825 = vst [vmem:[#allocation43_spill] sm:$0xff] %v8670_v31 }
 0x250   : > { %2232 = vmatpush2.bf16.msra.mxu1 %v6668_v53  ;;  %v1655_v53 = vadd.f32 %v1654_v10, %v1039_v37  ;;  %v6701_v37 = vld [vmem:[#allocation4 + $0xf0] ss:$24 sps:$4 sm:$0xff]  }
 0x251   : > { %2233 = vmatprep.subr.bf16.mxu1 %v6673_v55  ;;  %v1653_v55 = vadd.f32 %v1652_v18, %v1043_v43 }
 0x254   : > { %2234 = vmatpush2.bf16.msra.mxu1 %v6671_v61  ;;  %v1657_v61 = vadd.f32 %v1656_v25, %v1043_v43  ;;  %v6704_v43 = vld [vmem:[#allocation4 + $0xf8] ss:$24 sps:$4 sm:$0xff]  }
 0x255   : > { %2235 = vmatprep.subr.bf16.mxu1 %v6676_v3 }
 0x258   : > { %2236 = vmatpush2.bf16.msra.mxu1 %v6674_v7 }
 0x259   : > { %2237 = vmatprep.subr.bf16.mxu1 %v6679_v41 }
 0x25c   : > { %2238 = vmatpush2.bf16.msra.mxu1 %v6677_v29 }
 0x25d   : > { %2239 = vmatprep.subr.bf16.mxu1 %v6682_v16 }
 0x260   : > { %2240 = vmatpush2.bf16.msra.mxu1 %v6680_v23 }
 0x261   : > { %2241 = vmatprep.subr.bf16.mxu1 %v6685_v1 }
 0x264   : > { %2242 = vmatpush2.bf16.msra.mxu1 %v6683_v9 }
 0x265   : > { %2243 = vmatprep.subr.bf16.mxu1 %v6688_v47 }
 0x268   : > { %2244 = vmatpush2.bf16.msra.mxu1 %v6686_v14 }
 0x2a9   : > { %v1731_v13 = vpop.f32.mrf.mxu1 }
 0x2ab   : > { %v1804_v17 = vpop.f32.mrf.mxu0  ;;  %v1733_v28 = vpop.f32.mrf.mxu1 }
 0x2ac   : > { %v1809_v30 = vmax.f32 %v1731_v13, %v1804_v17 }
 0x2ad   : > { %v1806_v27 = vpop.f32.mrf.mxu0 }
 0x2ae   : > { %v1810_v32 = vmax.f32 %v1733_v28, %v1806_v27  ;;  %v1811_v33 = vsub.f32 %v1731_v13, %v1809_v30  ;;  %v1817_v38 = vsub.f32 %v1804_v17, %v1809_v30 }
 0x2b0   : > { %v1812_v34 = vsub.f32 %v1733_v28, %v1810_v32  ;;  %v1818_v36 = vsub.f32 %v1806_v27, %v1810_v32  ;;  %v1813_v39 = vmul.f32 1.442695, %v1811_v33  ;;  %v1819_v45 = vmul.f32 1.442695, %v1817_v38 }
 0x2b2   : > { %v1815_v40 = vmul.f32 1.442695, %v1812_v34  ;;  %v1821_v44 = vmul.f32 1.442695, %v1818_v36  ;;  %7073 = vpow2.f32 %v1813_v39  ;;  %v2041_v34 = vld [vmem:[%s9548_s7] sm:$0x3] }
 0x2b3   : > { %v9797_v36 = vld [vmem:[#allocation46_spill] sm:$0xff]  ;;  %v9798_v39 = vld [vmem:[#allocation47_spill] sm:$0xff] }
 0x2b4   : > { %7075 = vpow2.f32 %v1815_v40  ;;  %v2046_v38 = vrot.slane %v2041_v34, %v9797_v36  ;;  %v2050_v40 = vrot.slane %v2041_v34, %v9798_v39 }
 0x2b5   : > { %7077 = vpow2.f32 %v1821_v44 }
 0x2b6   : > { %7079 = vpow2.f32 %v1819_v45 }
 0x2bf   : > { %v7074_v2 = vpop.eup %7073 }
 0x2c0   : > { %v1823_v1 = vmul.f32 %v7074_v2, %v1651_v49 }
 0x2c1   : > { %v7076_v4 = vpop.eup %7075 }
 0x2c2   : > { %v7078_v5 = vpop.eup %7077  ;;  %v1824_v29 = vmul.f32 %v7076_v4, %v1653_v55 }
 0x2c3   : > { %v7080_v6 = vpop.eup %7079  ;;  %v1830_v8 = vadd.f32 %v7078_v5, %v7076_v4  ;;  %v1826_v41 = vmul.f32 %v7078_v5, %v1657_v61  ;;  %v6689_v5 = vld [vmem:[#allocation4 + $0x150] ss:$24 sps:$4 sm:$0xff]  }
 0x2c4   : > { %v1829_v15 = vadd.f32 %v7080_v6, %v7074_v2  ;;  %v1825_v9 = vmul.f32 %v7080_v6, %v1655_v53  ;;  %v6691_v6 = vld [vmem:[#allocation4 + $0x154] ss:$24 sps:$4 sm:$0xff]  }
 0x2c5   : > { %v1828_v27 = vadd.f32 %v1826_v41, %v1824_v29  ;;  %2935 = vmatprep.subr.bf16.mxu0 %v6691_v6  ;;  %v6713_v29 = vld [vmem:[#allocation4 + $0x90] ss:$24 sps:$4 sm:$0xff]  }
 0x2c6   : > { %v1827_v59 = vadd.f32 %v1825_v9, %v1823_v1  ;;  %2936 = vmatpush1.bf16.msra.mxu0 %v6689_v5  ;;  %v6716_v41 = vld [vmem:[#allocation4 + $0x98] ss:$24 sps:$4 sm:$0xff]   ;;  %v6722_v9 = vld [vmem:[#allocation4 + $0x68] ss:$24 sps:$4 sm:$0xff]   ;;  %v6757_v5 = vld [vmem:[#allocation4 + $0x244] ss:$24 sps:$4 sm:$0xff]  }
 0x2c7   : > { %v6719_v1 = vld [vmem:[#allocation4 + $0x60] ss:$24 sps:$4 sm:$0xff]  }
 0x2c8   : > { %v6758_v6 = vld [vmem:[#allocation4 + $0x248] ss:$24 sps:$4 sm:$0xff]  }
 0x2ea   : > { %v1903_v42 = vpop.f32.mrf.mxu1 }
 0x2ec   : > { %v1976_v46 = vpop.f32.mrf.mxu0  ;;  %v1905_v50 = vpop.f32.mrf.mxu1 }
 0x2ed   : > { %v1981_v48 = vmax.f32 %v1903_v42, %v1976_v46 }
 0x2ee   : > { %v1978_v51 = vpop.f32.mrf.mxu0 }
 0x2ef   : > { %v1983_v52 = vsub.f32 %v1903_v42, %v1981_v48  ;;  %v1989_v54 = vsub.f32 %v1976_v46, %v1981_v48  ;;  %v1982_v56 = vmax.f32 %v1905_v50, %v1978_v51 }
 0x2f1   : > { %v1985_v57 = vmul.f32 1.442695, %v1983_v52  ;;  %v1991_v58 = vmul.f32 1.442695, %v1989_v54  ;;  %v1984_v60 = vsub.f32 %v1905_v50, %v1982_v56  ;;  %v1990_v62 = vsub.f32 %v1978_v51, %v1982_v56  ;;  %v9799_v50 = vld [vmem:[#allocation15_spill] sm:$0xff]  ;;  %v9800_v52 = vld [vmem:[#allocation17_spill] sm:$0xff] }
 0x2f3   : > { %7081 = vpow2.f32 %v1985_v57  ;;  %v1987_v63 = vmul.f32 1.442695, %v1984_v60  ;;  %v1993_v0 = vmul.f32 1.442695, %v1990_v62  ;;  %v9801_v62 = vld [vmem:[#allocation16_spill] sm:$0xff] }
 0x2f4   : > { %7083 = vpow2.f32 %v1991_v58 }
 0x2f5   : > { %7085 = vpow2.f32 %v1987_v63 }
 0x2f6   : > { %7087 = vpow2.f32 %v1993_v0  ;;  %v9802_v0 = vld [vmem:[#allocation18_spill] sm:$0xff] }
 0x2f7   : > { %7089 = vrcp.f32 %v1830_v8  ;;  %v6692_v8 = vld [vmem:[#allocation4 + $0x158] ss:$24 sps:$4 sm:$0xff]  }
 0x300   : > { %v7082_v11 = vpop.eup %7081 }
 0x301   : > { %v7084_v12 = vpop.eup %7083  ;;  %v1995_v3 = vmul.f32 %v7082_v11, %v1651_v49  ;;  %v6709_v49 = vld [vmem:[#allocation4 + $0xc4] ss:$24 sps:$4 sm:$0xff]  }
 0x302   : > { %v7086_v19 = vpop.eup %7085  ;;  %v2001_v21 = vadd.f32 %v7084_v12, %v7082_v11  ;;  %v1997_v7 = vmul.f32 %v7084_v12, %v1655_v53  ;;  %v6694_v11 = vld [vmem:[#allocation4 + $0x15c] ss:$24 sps:$4 sm:$0xff]   ;;  %v6712_v53 = vld [vmem:[#allocation4 + $0xcc] ss:$24 sps:$4 sm:$0xff]  }
 0x303   : > { %v7088_v22 = vpop.eup %7087  ;;  %v1996_v16 = vmul.f32 %v7086_v19, %v1653_v55  ;;  %v6697_v12 = vld [vmem:[#allocation4 + $0x124] ss:$24 sps:$4 sm:$0xff]   ;;  %2978 = vmatprep.subr.bf16.mxu1 %v6694_v11  ;;  %v6707_v55 = vld [vmem:[#allocation4 + $0xc0] ss:$24 sps:$4 sm:$0xff]   ;;  %v6763_v11 = vld [vmem:[#allocation4 + $0x214] ss:$24 sps:$4 sm:$0xff]  }
 0x304   : > { %7091 = vrcp.f32 %v2001_v21  ;;  %v2002_v35 = vadd.f32 %v7088_v22, %v7086_v19  ;;  %v1998_v23 = vmul.f32 %v7088_v22, %v1657_v61  ;;  %v7090_v47 = vpop.eup %7089  ;;  %v1999_v17 = vadd.f32 %v1997_v7, %v1995_v3  ;;  %v6695_v19 = vld [vmem:[#allocation4 + $0x120] ss:$24 sps:$4 sm:$0xff]   ;;  %2937 = vmatprep.subr.bf16.mxu0 %v6697_v12  ;;  %v6703_v22 = vld [vmem:[#allocation4 + $0xf4] ss:$24 sps:$4 sm:$0xff]  }
 0x305   : > { %7093 = vrcp.f32 %v1829_v15  ;;  %v1834_v10 = vmul.f32 %v7090_v47, %v1828_v27  ;;  %v6700_v15 = vld [vmem:[#allocation4 + $0x12c] ss:$24 sps:$4 sm:$0xff]   ;;  %v6698_v21 = vld [vmem:[#allocation4 + $0x128] ss:$24 sps:$4 sm:$0xff]   ;;  %2938 = vmatpush1.bf16.msra.mxu0 %v6695_v19  ;;  %v6718_v7 = vld [vmem:[#allocation4 + $0x9c] ss:$24 sps:$4 sm:$0xff]  }
 0x306   : > { %7095 = vrcp.f32 %v2002_v35  ;;  %v2000_v28 = vadd.f32 %v1998_v23, %v1996_v16  ;;  %v6706_v35 = vld [vmem:[#allocation4 + $0xfc] ss:$24 sps:$4 sm:$0xff]   ;;  %2939 = vmatprep.subr.bf16.mxu0 %v6703_v22  ;;  %v6710_v61 = vld [vmem:[#allocation4 + $0xc8] ss:$24 sps:$4 sm:$0xff]   ;;  %v6724_v23 = vld [vmem:[#allocation4 + $0x6c] ss:$24 sps:$4 sm:$0xff]  }
 0x307   : > { %v6715_v3 = vld [vmem:[#allocation4 + $0x94] ss:$24 sps:$4 sm:$0xff]   ;;  %v6721_v16 = vld [vmem:[#allocation4 + $0x64] ss:$24 sps:$4 sm:$0xff]   ;;  %v6764_v19 = vld [vmem:[#allocation4 + $0x218] ss:$24 sps:$4 sm:$0xff]  }
 0x308   : > { %v6727_v47 = vld [vmem:[#allocation4 + $0x34] ss:$24 sps:$4 sm:$0xff]   ;;  %v6733_v27 = vld [vmem:[#allocation4 + $0x4] ss:$24 sps:$4 sm:$0xff]  }
 0x309   : > { %2940 = vmatpush1.bf16.msra.mxu0 %v6701_v37  ;;  %v6766_v12 = vld [vmem:[#allocation4 + $0x21c] ss:$24 sps:$4 sm:$0xff]   ;;  %v6772_v22 = vld [vmem:[#allocation4 + $0x1ec] ss:$24 sps:$4 sm:$0xff]   ;;  %v6770_v37 = vld [vmem:[#allocation4 + $0x1e8] ss:$24 sps:$4 sm:$0xff]  }
 0x30a   : > { %2941 = vmatprep.subr.bf16.mxu0 %v6709_v49  ;;  %v6778_v49 = vld [vmem:[#allocation4 + $0x1bc] ss:$24 sps:$4 sm:$0xff]  }
 0x30d   : > { %2942 = vmatpush1.bf16.msra.mxu0 %v6707_v55  ;;  %v6776_v55 = vld [vmem:[#allocation4 + $0x1b8] ss:$24 sps:$4 sm:$0xff]  }
 0x30e   : > { %2943 = vmatprep.subr.bf16.mxu0 %v6715_v3  ;;  %v6784_v3 = vld [vmem:[#allocation4 + $0x18c] ss:$24 sps:$4 sm:$0xff]  }
 0x311   : > { %v7092_v14 = vpop.eup %7091  ;;  %2944 = vmatpush1.bf16.msra.mxu0 %v6713_v29  ;;  %v6782_v29 = vld [vmem:[#allocation4 + $0x188] ss:$24 sps:$4 sm:$0xff]  }
 0x312   : > { %v7094_v13 = vpop.eup %7093  ;;  %v2005_v20 = vmul.f32 %v7092_v14, %v1999_v17  ;;  %2945 = vmatprep.subr.bf16.mxu0 %v6721_v16  ;;  %v6730_v14 = vld [vmem:[#allocation4 + $0x3c] ss:$24 sps:$4 sm:$0xff]   ;;  %v6725_v17 = vld [vmem:[#allocation4 + $0x30] ss:$24 sps:$4 sm:$0xff]  }
 0x313   : > { %v7096_v30 = vpop.eup %7095  ;;  %v1833_v25 = vmul.f32 %v7094_v13, %v1827_v59  ;;  %v6728_v13 = vld [vmem:[#allocation4 + $0x38] ss:$24 sps:$4 sm:$0xff]   ;;  %v6734_v59 = vld [vmem:[#allocation4 + $0x8] ss:$24 sps:$4 sm:$0xff]  }
 0x314   : > { %v2006_v18 = vmul.f32 %v7096_v30, %v2000_v28  ;;  %v6736_v28 = vld [vmem:[#allocation4 + $0xc] ss:$24 sps:$4 sm:$0xff]   ;;  %v6731_v30 = vld [vmem:[#allocation4] ss:$24 sps:$4 sm:$0xff]  }
 0x315   : > { %v2007_v33 = vpack.c.bf16 %v2005_v20, %v1833_v25  ;;  %2946 = vmatpush1.bf16.msra.mxu0 %v6719_v1  ;;  %v6739_v20 = vld [vmem:[#allocation4 + $0x2d4] ss:$24 sps:$4 sm:$0xff]   ;;  %v6740_v25 = vld [vmem:[#allocation4 + $0x2d8] ss:$24 sps:$4 sm:$0xff]  }
 0x316   : > { %v2008_v32 = vpack.c.bf16 %v2006_v18, %v1834_v10  ;;  %2947 = vmatprep.subr.bf16.mxu0 %v6727_v47  ;;  %v6742_v10 = vld [vmem:[#allocation4 + $0x2dc] ss:$24 sps:$4 sm:$0xff]   ;;  %v6737_v18 = vld [vmem:[#allocation4 + $0x2d0] ss:$24 sps:$4 sm:$0xff]  }
 0x317   : > { %v8304_v16 = vld [vmem:[%s9730_s30 + $0xf8] sm:$0xff] }
 0x318   : > { %2245 = vmatprep.mubr.bf16.mxu1 %v2008_v32 }
 0x319   : > { %2246 = vmatmul.mubr.bf16.vlgmr.msra.gmra.mxu1 %v2007_v33  ;;  %2948 = vmatpush1.bf16.msra.mxu0 %v6725_v17 }
 0x31a   : > { %2979 = vmatpush1.bf16.msra.mxu1 %v6692_v8  ;;  %2949 = vmatprep.subr.bf16.mxu0 %v6733_v27  ;;  %v6760_v8 = vld [vmem:[#allocation4 + $0x24c] ss:$24 sps:$4 sm:$0xff]  }
 0x31b   : > { %2980 = vmatprep.subr.bf16.mxu1 %v6700_v15  ;;  %v6761_v15 = vld [vmem:[#allocation4 + $0x210] ss:$24 sps:$4 sm:$0xff]  }
 0x31d   : > { %2950 = vmatpush1.bf16.msra.mxu0 %v6731_v30 }
 0x31e   : > { %2981 = vmatpush1.bf16.msra.mxu1 %v6698_v21  ;;  %2951 = vmatprep.subr.bf16.mxu0 %v6739_v20  ;;  %v6769_v21 = vld [vmem:[#allocation4 + $0x1e4] ss:$24 sps:$4 sm:$0xff]   ;;  %v2309_v20 = vld [vmem:[%s9550_s9] sm:$0x3] }
 0x31f   : > { %2982 = vmatprep.subr.bf16.mxu1 %v6706_v35  ;;  %v6767_v35 = vld [vmem:[#allocation4 + $0x1e0] ss:$24 sps:$4 sm:$0xff]  }
 0x321   : > { %2952 = vmatpush2.bf16.msra.mxu0 %v6737_v18 }
 0x322   : > { %2983 = vmatpush1.bf16.msra.mxu1 %v6704_v43  ;;  %v6775_v43 = vld [vmem:[#allocation4 + $0x1b4] ss:$24 sps:$4 sm:$0xff]  }
 0x323   : > { %2984 = vmatprep.subr.bf16.mxu1 %v6712_v53  ;;  %v6773_v53 = vld [vmem:[#allocation4 + $0x1b0] ss:$24 sps:$4 sm:$0xff]  }
 0x326   : > { %2985 = vmatpush1.bf16.msra.mxu1 %v6710_v61  ;;  %v6781_v61 = vld [vmem:[#allocation4 + $0x184] ss:$24 sps:$4 sm:$0xff]  }
 0x327   : > { %2986 = vmatprep.subr.bf16.mxu1 %v6718_v7  ;;  %v6779_v7 = vld [vmem:[#allocation4 + $0x180] ss:$24 sps:$4 sm:$0xff]  }
 0x32a   : > { %2987 = vmatpush1.bf16.msra.mxu1 %v6716_v41  ;;  %v6787_v41 = vld [vmem:[#allocation4 + $0x164] ss:$24 sps:$4 sm:$0xff]  }
 0x32b   : > { %2988 = vmatprep.subr.bf16.mxu1 %v6724_v23 }
 0x32e   : > { %2989 = vmatpush1.bf16.msra.mxu1 %v6722_v9 }
 0x32f   : > { %2990 = vmatprep.subr.bf16.mxu1 %v6730_v14 }
 0x332   : > { %2991 = vmatpush1.bf16.msra.mxu1 %v6728_v13  ;;  %v2293_v13 = vld [vmem:[%s9549_s8] sm:$0x3] }
 0x333   : > { %2992 = vmatprep.subr.bf16.mxu1 %v6736_v28  ;;  %v2298_v30 = vrot.slane %v2293_v13, %v9797_v36 }
 0x336   : > { %2993 = vmatpush1.bf16.msra.mxu1 %v6734_v59  ;;  %v2302_v59 = vrot.slane %v2293_v13, %v9798_v39  ;;  %v8472_v13 = vld [vmem:[%s9730_s30 + $0x40] sm:$0xff] }
 0x337   : > { %2994 = vmatprep.subr.bf16.mxu1 %v6742_v10 }
 0x33a   : > { %2995 = vmatpush2.bf16.msra.mxu1 %v6740_v25  ;;  %v2314_v25 = vrot.slane %v2309_v20, %v9797_v36  ;;  %v8701_v36 = vld [vmem:[%s9730_s30 + $0x110] sm:$0xff] }
 0x33b   : > { %9830 = vst [vmem:[#allocation18_spill] sm:$0xff] %v8701_v36 }
 0x3d9   : > { %v2247_v42 = vpop.f32.mrf.mxu1 }
 0x3da   : > { %v2248_v44 = vadd.f32 %v2247_v42, %v2046_v38 }
 0x3db   : > { %v2249_v45 = vpop.f32.mrf.mxu1 }
 0x3dc   : > { %v2250_v46 = vadd.f32 %v2249_v45, %v2050_v40  ;;  %v8266_v51 = vadd.f32 %v2248_v44, %v9799_v50 }
 0x3dd   : > { %v2251_v48 = vpop.f32.mrf.mxu1 }
 0x3de   : > { %v8269_v54 = vadd.f32 %v2250_v46, %v9800_v52  ;;  %v2252_v56 = vadd.f32 %v2251_v48, %v2046_v38 }
 0x3df   : > { %v2253_v57 = vpop.f32.mrf.mxu1 }
 0x3e0   : > { %v2254_v58 = vadd.f32 %v2253_v57, %v2050_v40  ;;  %v2260_v60 = vadd.f32 %v8269_v54, %v8266_v51  ;;  %v8274_v63 = vadd.f32 %v2252_v56, %v9801_v62  ;;  %v6745_v56 = vld [vmem:[#allocation4 + $0x2a4] ss:$24 sps:$4 sm:$0xff]   ;;  %v6743_v57 = vld [vmem:[#allocation4 + $0x2a0] ss:$24 sps:$4 sm:$0xff]   ;;  %v6751_v62 = vld [vmem:[#allocation4 + $0x274] ss:$24 sps:$4 sm:$0xff]  }
 0x3e1   : > { %2953 = vmatprep.subr.bf16.mxu0 %v6745_v56  ;;  %v6785_v56 = vld [vmem:[#allocation4 + $0x160] ss:$24 sps:$4 sm:$0xff]  }
 0x3e2   : > { %2261 = vadd.xlane.f32.xlu0 %v2260_v60  ;;  %v8277_v2 = vadd.f32 %v2254_v58, %v9802_v0  ;;  %v6748_v58 = vld [vmem:[#allocation4 + $0x2ac] ss:$24 sps:$4 sm:$0xff]   ;;  %v6746_v60 = vld [vmem:[#allocation4 + $0x2a8] ss:$24 sps:$4 sm:$0xff]   ;;  %2954 = vmatpush2.bf16.msra.mxu0 %v6743_v57  ;;  %v6754_v0 = vld [vmem:[#allocation4 + $0x27c] ss:$24 sps:$4 sm:$0xff]  }
 0x3e3   : > { %2996 = vmatprep.subr.bf16.mxu1 %v6748_v58  ;;  %2955 = vmatprep.subr.bf16.mxu0 %v6751_v62  ;;  %v6788_v57 = vld [vmem:[#allocation4 + $0x130] ss:$24 sps:$4 sm:$0xff]   ;;  %v6793_v58 = vld [vmem:[#allocation4 + $0x104] ss:$24 sps:$4 sm:$0xff]  }
 0x3e4   : > { %v2263_v4 = vadd.f32 %v8277_v2, %v8274_v63  ;;  %2997 = vmatpush2.bf16.msra.mxu1 %v6746_v60  ;;  %v8340_v60 = vld [vmem:[%s9730_s30 + $0xf0] sm:$0xff]  ;;  %v8346_v62 = vld [vmem:[%s9730_s30 + $0xe8] sm:$0xff] }
 0x3e5   : > { %2998 = vmatprep.subr.bf16.mxu1 %v6754_v0  ;;  %v6791_v0 = vld [vmem:[#allocation4 + $0x100] ss:$24 sps:$4 sm:$0xff]  }
 0x3e6   : > { %2264 = vadd.xlane.f32.xlu1 %v2263_v4  ;;  %v6755_v4 = vld [vmem:[#allocation4 + $0x240] ss:$24 sps:$4 sm:$0xff]  }
 0x46b   : > { %v2262_v32 = vpop.xlane.xlu0 %2261 }
 0x46c   : > { %v2267_v33 = vmul.f32 0.00390625, %v2262_v32  ;;  %v2318_v32 = vrot.slane %v2309_v20, %v9798_v39  ;;  %v8490_v20 = vld [vmem:[%s9730_s30 + $0x28] sm:$0xff]  ;;  %v8688_v39 = vld [vmem:[%s9730_s30 + $0x120] sm:$0xff] }
 0x46d   : > { %9828 = vst [vmem:[#allocation17_spill] sm:$0xff] %v8688_v39 }
 0x46e   : > { %v8282_v34 = vsub.f32 %v8266_v51, %v2267_v33  ;;  %v8285_v38 = vsub.f32 %v8269_v54, %v2267_v33 }
 0x46f   : > { %v2265_v40 = vpop.xlane.xlu1 %2264 }
 0x470   : > { %v2268_v42 = vmul.f32 0.00390625, %v2265_v40  ;;  %v2273_v44 = vmul.f32 %v8282_v34, %v8282_v34  ;;  %v2274_v45 = vmul.f32 %v8285_v38, %v8285_v38 }
 0x472   : > { %v8292_v46 = vsub.f32 %v8274_v63, %v2268_v42  ;;  %v8295_v48 = vsub.f32 %v8277_v2, %v2268_v42  ;;  %v2277_v50 = vadd.f32 %v2274_v45, %v2273_v44  ;;  %v6749_v63 = vld [vmem:[#allocation4 + $0x270] ss:$24 sps:$4 sm:$0xff]  }
 0x473   : > { %v6752_v2 = vld [vmem:[#allocation4 + $0x278] ss:$24 sps:$4 sm:$0xff]   ;;  %2956 = vmatpush2.bf16.msra.mxu0 %v6749_v63  ;;  %v8352_v63 = vld [vmem:[%s9730_s30 + $0xe0] sm:$0xff] }
 0x474   : > { %2278 = vadd.xlane.f32.xlu1 %v2277_v50  ;;  %v2275_v51 = vmul.f32 %v8292_v46, %v8292_v46  ;;  %v2276_v52 = vmul.f32 %v8295_v48, %v8295_v48  ;;  %2999 = vmatpush2.bf16.msra.mxu1 %v6752_v2  ;;  %v8358_v2 = vld [vmem:[%s9730_s30 + $0xd8] sm:$0xff] }
 0x475   : > { %2957 = vmatprep.subr.bf16.mxu0 %v6757_v5  ;;  %3000 = vmatprep.subr.bf16.mxu1 %v6760_v8  ;;  %v8364_v5 = vld [vmem:[%s9730_s30 + $0xd0] sm:$0xff]  ;;  %v8376_v8 = vld [vmem:[%s9730_s30 + $0xc0] sm:$0xff] }
 0x476   : > { %v2280_v54 = vadd.f32 %v2276_v52, %v2275_v51 }
 0x477   : > { %2958 = vmatpush2.bf16.msra.mxu0 %v6755_v4  ;;  %v6796_v4 = vld [vmem:[#allocation4 + $0xd4] ss:$24 sps:$4 sm:$0xff]  }
 0x478   : > { %2281 = vadd.xlane.f32.xlu1 %v2280_v54  ;;  %3001 = vmatpush2.bf16.msra.mxu1 %v6758_v6  ;;  %v8370_v6 = vld [vmem:[%s9730_s30 + $0xc8] sm:$0xff] }
 0x479   : > { %2959 = vmatprep.subr.bf16.mxu0 %v6763_v11  ;;  %3002 = vmatprep.subr.bf16.mxu1 %v6766_v12  ;;  %v6794_v11 = vld [vmem:[#allocation4 + $0xd0] ss:$24 sps:$4 sm:$0xff]   ;;  %v8382_v12 = vld [vmem:[%s9730_s30 + $0xb8] sm:$0xff] }
 0x47b   : > { %2960 = vmatpush2.bf16.msra.mxu0 %v6761_v15  ;;  %v6799_v15 = vld [vmem:[#allocation4 + $0xa4] ss:$24 sps:$4 sm:$0xff]  }
 0x47c   : > { %3003 = vmatpush2.bf16.msra.mxu1 %v6764_v19  ;;  %2961 = vmatprep.subr.bf16.mxu0 %v6769_v21  ;;  %v8388_v19 = vld [vmem:[%s9730_s30 + $0xb0] sm:$0xff]  ;;  %v8394_v21 = vld [vmem:[%s9730_s30 + $0xa8] sm:$0xff] }
 0x47d   : > { %3004 = vmatprep.subr.bf16.mxu1 %v6772_v22  ;;  %v8400_v22 = vld [vmem:[%s9730_s30 + $0xa0] sm:$0xff] }
 0x47f   : > { %2962 = vmatpush2.bf16.msra.mxu0 %v6767_v35  ;;  %v6797_v35 = vld [vmem:[#allocation4 + $0xa0] ss:$24 sps:$4 sm:$0xff]  }
 0x480   : > { %3005 = vmatpush2.bf16.msra.mxu1 %v6770_v37  ;;  %2963 = vmatprep.subr.bf16.mxu0 %v6775_v43  ;;  %v8406_v37 = vld [vmem:[%s9730_s30 + $0x98] sm:$0xff]  ;;  %v6802_v43 = vld [vmem:[#allocation4 + $0x74] ss:$24 sps:$4 sm:$0xff]  }
 0x481   : > { %3006 = vmatprep.subr.bf16.mxu1 %v6778_v49  ;;  %v8412_v49 = vld [vmem:[%s9730_s30 + $0x90] sm:$0xff] }
 0x483   : > { %2964 = vmatpush2.bf16.msra.mxu0 %v6773_v53  ;;  %v8418_v53 = vld [vmem:[%s9730_s30 + $0x88] sm:$0xff] }
 0x484   : > { %3007 = vmatpush2.bf16.msra.mxu1 %v6776_v55  ;;  %2965 = vmatprep.subr.bf16.mxu0 %v6781_v61  ;;  %v8424_v55 = vld [vmem:[%s9730_s30 + $0x80] sm:$0xff]  ;;  %v6800_v61 = vld [vmem:[#allocation4 + $0x70] ss:$24 sps:$4 sm:$0xff]  }
 0x485   : > { %3008 = vmatprep.subr.bf16.mxu1 %v6784_v3  ;;  %v8430_v3 = vld [vmem:[%s9730_s30 + $0x78] sm:$0xff] }
 0x487   : > { %2966 = vmatpush2.bf16.msra.mxu0 %v6779_v7  ;;  %v6805_v7 = vld [vmem:[#allocation4 + $0x44] ss:$24 sps:$4 sm:$0xff]  }
 0x488   : > { %3009 = vmatpush2.bf16.msra.mxu1 %v6782_v29  ;;  %3021 = vmatprep.subr.bf16.mxu0 %v6787_v41  ;;  %v8436_v29 = vld [vmem:[%s9730_s30 + $0x70] sm:$0xff]  ;;  %v8442_v41 = vld [vmem:[%s9730_s30 + $0x68] sm:$0xff] }
 0x489   : > { %3070 = vmatprep.subr.mxu1 %v8304_v16 }
 0x4fd   : > { %v2279_v23 = vpop.xlane.xlu1 %2278 }
 0x4fe   : > { %v2283_v1 = vmul.f32 0.00390625, %v2279_v23  ;;  %v8448_v23 = vld [vmem:[%s9730_s30 + $0x60] sm:$0xff] }
 0x500   : > { %v2285_v9 = vadd.f32 1e-05, %v2283_v1  ;;  %v6803_v1 = vld [vmem:[#allocation4 + $0x40] ss:$24 sps:$4 sm:$0xff]  }
 0x501   : > { %v2282_v47 = vpop.xlane.xlu1 %2281 }
 0x502   : > { %7097 = vrsqrt.f32 %v2285_v9  ;;  %v2284_v14 = vmul.f32 0.00390625, %v2282_v47  ;;  %v8454_v9 = vld [vmem:[%s9730_s30 + $0x58] sm:$0xff]  ;;  %v6808_v47 = vld [vmem:[#allocation4 + $0x14] ss:$24 sps:$4 sm:$0xff]  }
 0x504   : > { %v2286_v17 = vadd.f32 1e-05, %v2284_v14  ;;  %v8460_v14 = vld [vmem:[%s9730_s30 + $0x50] sm:$0xff] }
 0x506   : > { %7099 = vrsqrt.f32 %v2286_v17  ;;  %v8466_v17 = vld [vmem:[%s9730_s30 + $0x48] sm:$0xff] }
 0x50f   : > { %v7098_v27 = vpop.eup %7097 }
 0x510   : > { %v2290_v28 = vmul.f32 %v7098_v27, %v8285_v38  ;;  %v2289_v10 = vmul.f32 %v7098_v27, %v8282_v34  ;;  %v6806_v27 = vld [vmem:[#allocation4 + $0x10] ss:$24 sps:$4 sm:$0xff]  }
 0x512   : > { %v2306_v40 = vmul.f32 %v2302_v59, %v2290_v28  ;;  %v2305_v42 = vmul.f32 %v2298_v30, %v2289_v10  ;;  %v8478_v28 = vld [vmem:[%s9730_s30 + $0x38] sm:$0xff]  ;;  %v8496_v10 = vld [vmem:[%s9730_s30 + $0x20] sm:$0xff] }
 0x513   : > { %v7100_v18 = vpop.eup %7099 }
 0x514   : > { %v2292_v33 = vmul.f32 %v7100_v18, %v8295_v48  ;;  %v2291_v38 = vmul.f32 %v7100_v18, %v8292_v46  ;;  %v8321_v50 = vadd.f32 %v2318_v32, %v2306_v40  ;;  %v8325_v52 = vadd.f32 %v2314_v25, %v2305_v42  ;;  %v6790_v46 = vld [vmem:[#allocation4 + $0x134] ss:$24 sps:$4 sm:$0xff]   ;;  %v6809_v18 = vld [vmem:[#allocation4 + $0x2e0] ss:$24 sps:$4 sm:$0xff]   ;;  %v6812_v42 = vld [vmem:[#allocation4 + $0x2b0] ss:$24 sps:$4 sm:$0xff]  }
 0x515   : > { %v8514_v40 = vld [vmem:[%s9730_s30 + $0x8] sm:$0xff] }
 0x516   : > { %v2308_v44 = vmul.f32 %v2302_v59, %v2292_v33  ;;  %v2307_v45 = vmul.f32 %v2298_v30, %v2291_v38  ;;  %9803 = vst [vmem:[#allocation21_spill] sm:$0xff] %v8321_v50  ;;  %9805 = vst [vmem:[#allocation23_spill] sm:$0xff] %v8325_v52  ;;  %v6811_v30 = vld [vmem:[#allocation4 + $0x2e4] ss:$24 sps:$4 sm:$0xff]   ;;  %v8484_v59 = vld [vmem:[%s9730_s30 + $0x30] sm:$0xff] }
 0x517   : > { %v8508_v33 = vld [vmem:[%s9730_s30 + $0x10] sm:$0xff]  ;;  %v8520_v38 = vld [vmem:[%s9730_s30] sm:$0xff] }
 0x518   : > { %v8323_v51 = vadd.f32 %v2318_v32, %v2308_v44  ;;  %v8327_v34 = vadd.f32 %v2314_v25, %v2307_v45  ;;  %v8502_v25 = vld [vmem:[%s9730_s30 + $0x18] sm:$0xff]  ;;  %v6814_v32 = vld [vmem:[#allocation4 + $0x2b4] ss:$24 sps:$4 sm:$0xff]  }
 0x519   : > { %v8526_v44 = vld [vmem:[%s9730_s30 + $0x1f8] sm:$0xff] }
 0x51a   : > { %9804 = vst [vmem:[#allocation22_spill] sm:$0xff] %v8323_v51  ;;  %9806 = vst [vmem:[#allocation24_spill] sm:$0xff] %v8327_v34  ;;  %v2326_v54 = vpack.c.bf16 %v8323_v51, %v8321_v50  ;;  %v8333_v48 = vpack.c.bf16 %v8327_v34, %v8325_v52  ;;  %v6817_v45 = vld [vmem:[#allocation4 + $0x284] ss:$24 sps:$4 sm:$0xff]   ;;  %v6832_v34 = vld [vmem:[#allocation4 + $0x194] ss:$24 sps:$4 sm:$0xff]  }
 0x51b   : > { %v8646_v51 = vld [vmem:[%s9730_s30 + $0x158] sm:$0xff]  ;;  %v8652_v50 = vld [vmem:[%s9730_s30 + $0x150] sm:$0xff]  ;;  %v8664_v52 = vld [vmem:[%s9730_s30 + $0x140] sm:$0xff] }
 0x51c   : > { %2967 = vmatprep.mubr.bf16.mxu0 %v2326_v54  ;;  %3010 = vmatprep.mubr.bf16.mxu1 %v2326_v54  ;;  %9821 = vst [vmem:[#allocation39_spill] sm:$0xff] %v8646_v51  ;;  %9822 = vst [vmem:[#allocation40_spill] sm:$0xff] %v8652_v50 }
 0x51d   : > { %2968 = vmatmul.mubr.bf16.vlgmr.msra.gmra.mxu0 %v8333_v48  ;;  %3011 = vmatmul.mubr.bf16.vlgmr.msra.gmra.mxu1 %v8333_v48  ;;  %9824 = vst [vmem:[#allocation42_spill] sm:$0xff] %v8664_v52 }
 0x51e   : > { %3022 = vmatpush1.bf16.msra.mxu0 %v6785_v56  ;;  %3053 = vmatprep.mubr.bf16.mxu0 %v2326_v54  ;;  %v8532_v54 = vld [vmem:[%s9730_s30 + $0x1f0] sm:$0xff]  ;;  %v8538_v56 = vld [vmem:[%s9730_s30 + $0x1e8] sm:$0xff] }
 0x51f   : > { %3023 = vmatprep.subr.bf16.mxu0 %v6790_v46  ;;  %3071 = vmatpush1.msra.mxu1 %v8340_v60  ;;  %v8544_v46 = vld [vmem:[%s9730_s30 + $0x1e0] sm:$0xff] }
 0x520   : > { %3072 = vmatprep.subr.mxu1 %v8346_v62 }
 0x521   : > { %3073 = vmatpush1.msra.mxu1 %v8352_v63 }
 0x522   : > { %3024 = vmatpush1.bf16.msra.mxu0 %v6788_v57  ;;  %3074 = vmatprep.subr.mxu1 %v8358_v2  ;;  %v6815_v57 = vld [vmem:[#allocation4 + $0x280] ss:$24 sps:$4 sm:$0xff]  }
 0x523   : > { %3025 = vmatprep.subr.bf16.mxu0 %v6793_v58  ;;  %3075 = vmatpush1.msra.mxu1 %v8364_v5  ;;  %v8550_v58 = vld [vmem:[%s9730_s30 + $0x1d8] sm:$0xff] }
 0x524   : > { %3076 = vmatprep.subr.mxu1 %v8370_v6 }
 0x525   : > { %3077 = vmatpush1.msra.mxu1 %v8376_v8 }
 0x526   : > { %3026 = vmatpush1.bf16.msra.mxu0 %v6791_v0  ;;  %3078 = vmatprep.subr.mxu1 %v8382_v12  ;;  %v6820_v0 = vld [vmem:[#allocation4 + $0x254] ss:$24 sps:$4 sm:$0xff]  }
 0x527   : > { %3027 = vmatprep.subr.bf16.mxu0 %v6796_v4  ;;  %3079 = vmatpush1.msra.mxu1 %v8388_v19  ;;  %v8556_v4 = vld [vmem:[%s9730_s30 + $0x1d0] sm:$0xff] }
 0x528   : > { %3080 = vmatprep.subr.mxu1 %v8394_v21 }
 0x529   : > { %3081 = vmatpush1.msra.mxu1 %v8400_v22 }
 0x52a   : > { %3028 = vmatpush1.bf16.msra.mxu0 %v6794_v11  ;;  %3082 = vmatprep.subr.mxu1 %v8406_v37  ;;  %v8562_v11 = vld [vmem:[%s9730_s30 + $0x1c8] sm:$0xff] }
 0x52b   : > { %3029 = vmatprep.subr.bf16.mxu0 %v6799_v15  ;;  %3083 = vmatpush1.msra.mxu1 %v8412_v49  ;;  %9807 = vst [vmem:[#allocation25_spill] sm:$0xff] %v8562_v11  ;;  %v8568_v15 = vld [vmem:[%s9730_s30 + $0x1c0] sm:$0xff] }
 0x52c   : > { %3084 = vmatprep.subr.mxu1 %v8418_v53  ;;  %9808 = vst [vmem:[#allocation26_spill] sm:$0xff] %v8568_v15 }
 0x52d   : > { %3085 = vmatpush1.msra.mxu1 %v8424_v55 }
 0x52e   : > { %3030 = vmatpush1.bf16.msra.mxu0 %v6797_v35  ;;  %3086 = vmatprep.subr.mxu1 %v8430_v3  ;;  %v6818_v35 = vld [vmem:[#allocation4 + $0x250] ss:$24 sps:$4 sm:$0xff]  }
 0x52f   : > { %3031 = vmatprep.subr.bf16.mxu0 %v6802_v43  ;;  %3087 = vmatpush1.msra.mxu1 %v8436_v29  ;;  %v8574_v43 = vld [vmem:[%s9730_s30 + $0x1b8] sm:$0xff] }
 0x530   : > { %3088 = vmatprep.subr.mxu1 %v8442_v41  ;;  %9809 = vst [vmem:[#allocation27_spill] sm:$0xff] %v8574_v43 }
 0x531   : > { %3089 = vmatpush1.msra.mxu1 %v8448_v23 }
 0x532   : > { %3032 = vmatpush1.bf16.msra.mxu0 %v6800_v61  ;;  %3090 = vmatprep.subr.mxu1 %v8454_v9  ;;  %v6823_v61 = vld [vmem:[#allocation4 + $0x224] ss:$24 sps:$4 sm:$0xff]  }
 0x533   : > { %3033 = vmatprep.subr.bf16.mxu0 %v6805_v7  ;;  %3091 = vmatpush1.msra.mxu1 %v8460_v14  ;;  %v8580_v7 = vld [vmem:[%s9730_s30 + $0x1b0] sm:$0xff] }
 0x534   : > { %3092 = vmatprep.subr.mxu1 %v8466_v17  ;;  %9810 = vst [vmem:[#allocation28_spill] sm:$0xff] %v8580_v7 }
 0x535   : > { %3093 = vmatpush1.msra.mxu1 %v8472_v13 }
 0x536   : > { %3034 = vmatpush1.bf16.msra.mxu0 %v6803_v1  ;;  %3094 = vmatprep.subr.mxu1 %v8478_v28  ;;  %v8586_v1 = vld [vmem:[%s9730_s30 + $0x1a8] sm:$0xff] }
 0x537   : > { %3035 = vmatprep.subr.bf16.mxu0 %v6808_v47  ;;  %3095 = vmatpush1.msra.mxu1 %v8484_v59  ;;  %9811 = vst [vmem:[#allocation29_spill] sm:$0xff] %v8586_v1  ;;  %v8592_v47 = vld [vmem:[%s9730_s30 + $0x1a0] sm:$0xff] }
 0x538   : > { %3096 = vmatprep.subr.mxu1 %v8490_v20  ;;  %9812 = vst [vmem:[#allocation30_spill] sm:$0xff] %v8592_v47 }
 0x539   : > { %3097 = vmatpush1.msra.mxu1 %v8496_v10 }
 0x53a   : > { %3036 = vmatpush1.bf16.msra.mxu0 %v6806_v27  ;;  %3098 = vmatprep.subr.mxu1 %v8502_v25  ;;  %v6821_v27 = vld [vmem:[#allocation4 + $0x220] ss:$24 sps:$4 sm:$0xff]  }
 0x53b   : > { %3037 = vmatprep.subr.bf16.mxu0 %v6811_v30  ;;  %3099 = vmatpush1.msra.mxu1 %v8508_v33  ;;  %v8598_v30 = vld [vmem:[%s9730_s30 + $0x198] sm:$0xff] }
 0x53c   : > { %3100 = vmatprep.subr.mxu1 %v8514_v40  ;;  %9813 = vst [vmem:[#allocation31_spill] sm:$0xff] %v8598_v30 }
 0x53d   : > { %3101 = vmatpush1.msra.mxu1 %v8520_v38 }
 0x53e   : > { %3038 = vmatpush2.bf16.msra.mxu0 %v6809_v18  ;;  %3102 = vmatprep.subr.mxu1 %v8526_v44  ;;  %v6826_v18 = vld [vmem:[#allocation4 + $0x1f4] ss:$24 sps:$4 sm:$0xff]  }
 0x53f   : > { %3039 = vmatprep.subr.bf16.mxu0 %v6814_v32  ;;  %3103 = vmatpush2.msra.mxu1 %v8532_v54  ;;  %v8604_v32 = vld [vmem:[%s9730_s30 + $0x190] sm:$0xff] }
 0x540   : > { %3104 = vmatprep.subr.mxu1 %v8538_v56  ;;  %9814 = vst [vmem:[#allocation32_spill] sm:$0xff] %v8604_v32 }
 0x541   : > { %3105 = vmatpush2.msra.mxu1 %v8544_v46 }
 0x542   : > { %3040 = vmatpush2.bf16.msra.mxu0 %v6812_v42  ;;  %3106 = vmatprep.subr.mxu1 %v8550_v58  ;;  %v8610_v42 = vld [vmem:[%s9730_s30 + $0x188] sm:$0xff] }
 0x543   : > { %3041 = vmatprep.subr.bf16.mxu0 %v6817_v45  ;;  %3107 = vmatpush2.msra.mxu1 %v8556_v4  ;;  %9815 = vst [vmem:[#allocation33_spill] sm:$0xff] %v8610_v42  ;;  %v8616_v45 = vld [vmem:[%s9730_s30 + $0x180] sm:$0xff] }
 0x544   : > { %3108 = vmatprep.subr.mxu1 %v8562_v11  ;;  %9816 = vst [vmem:[#allocation34_spill] sm:$0xff] %v8616_v45 }
 0x545   : > { %3109 = vmatpush2.msra.mxu1 %v8568_v15 }
 0x546   : > { %3042 = vmatpush2.bf16.msra.mxu0 %v6815_v57  ;;  %3110 = vmatprep.subr.mxu1 %v8574_v43  ;;  %v6824_v57 = vld [vmem:[#allocation4 + $0x1f0] ss:$24 sps:$4 sm:$0xff]  }
 0x547   : > { %3043 = vmatprep.subr.bf16.mxu0 %v6820_v0  ;;  %3111 = vmatpush2.msra.mxu1 %v8580_v7  ;;  %v8622_v0 = vld [vmem:[%s9730_s30 + $0x178] sm:$0xff] }
 0x548   : > { %3112 = vmatprep.subr.mxu1 %v8586_v1  ;;  %9817 = vst [vmem:[#allocation35_spill] sm:$0xff] %v8622_v0 }
 0x549   : > { %3113 = vmatpush2.msra.mxu1 %v8592_v47 }
 0x54a   : > { %3044 = vmatpush2.bf16.msra.mxu0 %v6818_v35  ;;  %3114 = vmatprep.subr.mxu1 %v8598_v30  ;;  %v6829_v35 = vld [vmem:[#allocation4 + $0x1c4] ss:$24 sps:$4 sm:$0xff]  }
 0x54b   : > { %3045 = vmatprep.subr.bf16.mxu0 %v6823_v61  ;;  %3115 = vmatpush2.msra.mxu1 %v8604_v32  ;;  %v8628_v61 = vld [vmem:[%s9730_s30 + $0x170] sm:$0xff] }
 0x54c   : > { %3116 = vmatprep.subr.mxu1 %v8610_v42  ;;  %9818 = vst [vmem:[#allocation36_spill] sm:$0xff] %v8628_v61 }
 0x54d   : > { %3117 = vmatpush2.msra.mxu1 %v8616_v45 }
 0x54e   : > { %3046 = vmatpush2.bf16.msra.mxu0 %v6821_v27  ;;  %3118 = vmatprep.subr.mxu1 %v8622_v0  ;;  %v8634_v27 = vld [vmem:[%s9730_s30 + $0x168] sm:$0xff] }
 0x54f   : > { %3047 = vmatprep.subr.bf16.mxu0 %v6826_v18  ;;  %3119 = vmatpush2.msra.mxu1 %v8628_v61  ;;  %9819 = vst [vmem:[#allocation37_spill] sm:$0xff] %v8634_v27  ;;  %v6827_v18 = vld [vmem:[#allocation4 + $0x1c0] ss:$24 sps:$4 sm:$0xff]  }
 0x550   : > { %3120 = vmatprep.subr.mxu1 %v8634_v27 }
 0x551   : > { %3121 = vmatpush2.msra.mxu1 %v8640_v24 }
 0x552   : > { %3048 = vmatpush2.bf16.msra.mxu0 %v6824_v57  ;;  %3122 = vmatprep.subr.mxu1 %v8646_v51  ;;  %v8658_v57 = vld [vmem:[%s9730_s30 + $0x148] sm:$0xff] }
 0x553   : > { %3049 = vmatprep.subr.bf16.mxu0 %v6829_v35  ;;  %3123 = vmatpush2.msra.mxu1 %v8652_v50  ;;  %9823 = vst [vmem:[#allocation41_spill] sm:$0xff] %v8658_v57  ;;  %v6830_v35 = vld [vmem:[#allocation4 + $0x190] ss:$24 sps:$4 sm:$0xff]  }
 0x554   : > { %3124 = vmatprep.subr.mxu1 %v8658_v57 }
 0x555   : > { %3125 = vmatpush2.msra.mxu1 %v8664_v52 }
 0x556   : > { %3050 = vmatpush2.bf16.msra.mxu0 %v6827_v18  ;;  %3126 = vmatprep.subr.mxu1 %v8670_v31  ;;  %v8682_v18 = vld [vmem:[%s9730_s30 + $0x128] sm:$0xff] }
 0x557   : > { %3051 = vmatprep.subr.bf16.mxu0 %v6832_v34  ;;  %3127 = vmatpush2.msra.mxu1 %v8676_v26  ;;  %9827 = vst [vmem:[#allocation15_spill] sm:$0xff] %v8682_v18  ;;  %v8694_v34 = vld [vmem:[%s9730_s30 + $0x118] sm:$0xff] }
 0x558   : > { %3128 = vmatprep.subr.mxu1 %v8682_v18  ;;  %9829 = vst [vmem:[#allocation16_spill] sm:$0xff] %v8694_v34 }
 0x559   : > { %3129 = vmatpush2.msra.mxu1 %v8688_v39 }
 0x55a   : > { %3052 = vmatpush2.bf16.msra.mxu0 %v6830_v35  ;;  %3130 = vmatprep.subr.mxu1 %v8694_v34  ;;  %v8707_v35 = vld [vmem:[%s9730_s30 + $0x108] sm:$0xff]  ;;  %v8714_v34 = vld [vmem:[%s9730_s30 + $0x100] sm:$0xff] }
 0x55b   : > { %3143 = vmatprep.subr.mxu0 %v8304_v16  ;;  %3131 = vmatpush2.msra.mxu1 %v8701_v36  ;;  %9831 = vst [vmem:[#allocation50_spill] sm:$0xff] %v8707_v35  ;;  %9832 = vst [vmem:[#allocation51_spill] sm:$0xff] %v8714_v34 }
 0x55c   : > { %3132 = vmatprep.subr.mxu1 %v8707_v35 }
 0x55d   : > { %3054 = vmatmul.mubr.bf16.vlgmr.msra.gmra.mxu0 %v8333_v48  ;;  %3133 = vmatpush2.msra.mxu1 %v8714_v34 }
 0x55e   : > { %3144 = vmatpush1.msra.mxu0 %v8340_v60  ;;  %3242 = vmatprep.subr.mxu1 %v8304_v16 }
 0x55f   : > { %3145 = vmatprep.subr.mxu0 %v8346_v62  ;;  %v9833_v48 = vld [vmem:[#allocation16_spill] sm:$0xff] }
 0x560   : > { %3146 = vmatpush1.msra.mxu0 %v8352_v63 }
 0x561   : > { %3147 = vmatprep.subr.mxu0 %v8358_v2 }
 0x562   : > { %3148 = vmatpush1.msra.mxu0 %v8364_v5 }
 0x563   : > { %3149 = vmatprep.subr.mxu0 %v8370_v6 }
 0x564   : > { %3150 = vmatpush1.msra.mxu0 %v8376_v8 }
 0x565   : > { %3151 = vmatprep.subr.mxu0 %v8382_v12 }
 0x566   : > { %3152 = vmatpush1.msra.mxu0 %v8388_v19 }
 0x567   : > { %3153 = vmatprep.subr.mxu0 %v8394_v21 }
 0x568   : > { %3154 = vmatpush1.msra.mxu0 %v8400_v22 }
 0x569   : > { %3155 = vmatprep.subr.mxu0 %v8406_v37 }
 0x56a   : > { %3156 = vmatpush1.msra.mxu0 %v8412_v49 }
 0x56b   : > { %3157 = vmatprep.subr.mxu0 %v8418_v53 }
 0x56c   : > { %3158 = vmatpush1.msra.mxu0 %v8424_v55 }
 0x56d   : > { %3159 = vmatprep.subr.mxu0 %v8430_v3 }
 0x56e   : > { %3160 = vmatpush1.msra.mxu0 %v8436_v29 }
 0x56f   : > { %3161 = vmatprep.subr.mxu0 %v8442_v41 }
 0x570   : > { %3162 = vmatpush1.msra.mxu0 %v8448_v23 }
 0x571   : > { %3163 = vmatprep.subr.mxu0 %v8454_v9 }
 0x572   : > { %3164 = vmatpush1.msra.mxu0 %v8460_v14 }
 0x573   : > { %3165 = vmatprep.subr.mxu0 %v8466_v17 }
 0x574   : > { %3166 = vmatpush1.msra.mxu0 %v8472_v13 }
 0x575   : > { %3167 = vmatprep.subr.mxu0 %v8478_v28 }
 0x576   : > { %3168 = vmatpush1.msra.mxu0 %v8484_v59 }
 0x577   : > { %3169 = vmatprep.subr.mxu0 %v8490_v20 }
 0x578   : > { %3170 = vmatpush1.msra.mxu0 %v8496_v10 }
 0x579   : > { %3171 = vmatprep.subr.mxu0 %v8502_v25 }
 0x57a   : > { %3172 = vmatpush1.msra.mxu0 %v8508_v33 }
 0x57b   : > { %3173 = vmatprep.subr.mxu0 %v8514_v40 }
 0x57c   : > { %3174 = vmatpush1.msra.mxu0 %v8520_v38 }
 0x57d   : > { %3175 = vmatprep.subr.mxu0 %v8526_v44 }
 0x57e   : > { %3176 = vmatpush2.msra.mxu0 %v8532_v54 }
 0x57f   : > { %3177 = vmatprep.subr.mxu0 %v8538_v56 }
 0x580   : > { %3178 = vmatpush2.msra.mxu0 %v8544_v46 }
 0x581   : > { %3179 = vmatprep.subr.mxu0 %v8550_v58 }
 0x582   : > { %3180 = vmatpush2.msra.mxu0 %v8556_v4 }
 0x583   : > { %3181 = vmatprep.subr.mxu0 %v8562_v11 }
 0x584   : > { %3182 = vmatpush2.msra.mxu0 %v8568_v15 }
 0x585   : > { %3183 = vmatprep.subr.mxu0 %v8574_v43 }
 0x586   : > { %3184 = vmatpush2.msra.mxu0 %v8580_v7 }
 0x587   : > { %3185 = vmatprep.subr.mxu0 %v8586_v1 }
 0x588   : > { %3186 = vmatpush2.msra.mxu0 %v8592_v47 }
 0x589   : > { %3187 = vmatprep.subr.mxu0 %v8598_v30 }
 0x58a   : > { %3188 = vmatpush2.msra.mxu0 %v8604_v32 }
 0x58b   : > { %3189 = vmatprep.subr.mxu0 %v8610_v42 }
 0x58c   : > { %3190 = vmatpush2.msra.mxu0 %v8616_v45 }
 0x58d   : > { %3191 = vmatprep.subr.mxu0 %v8622_v0 }
 0x58e   : > { %3192 = vmatpush2.msra.mxu0 %v8628_v61 }
 0x58f   : > { %3193 = vmatprep.subr.mxu0 %v8634_v27 }
 0x590   : > { %3194 = vmatpush2.msra.mxu0 %v8640_v24 }
 0x591   : > { %3195 = vmatprep.subr.mxu0 %v8646_v51 }
 0x592   : > { %3196 = vmatpush2.msra.mxu0 %v8652_v50  ;;  %v9836_v50 = vld [vmem:[#allocation48_spill] sm:$0xff] }
 0x593   : > { %3197 = vmatprep.subr.mxu0 %v8658_v57 }
 0x594   : > { %3198 = vmatpush2.msra.mxu0 %v8664_v52  ;;  %v9835_v52 = vld [vmem:[#allocation47_spill] sm:$0xff] }
 0x595   : > { %3199 = vmatprep.subr.mxu0 %v8670_v31  ;;  %v8785_v31 = vld [vmem:[%s9552_s11] sm:$0x3f] }
 0x596   : > { %3200 = vmatpush2.msra.mxu0 %v8676_v26  ;;  %v9834_v26 = vld [vmem:[#allocation46_spill] sm:$0xff] }
 0x597   : > { %3201 = vmatprep.subr.mxu0 %v8682_v18  ;;  %v2428_v18 = vrot.slane %v8785_v31, %v9834_v26 }
 0x598   : > { %3202 = vmatpush2.msra.mxu0 %v8688_v39  ;;  %v2432_v39 = vrot.slane %v8785_v31, %v9835_v52 }
 0x599   : > { %3203 = vmatprep.subr.mxu0 %v9833_v48 }
 0x59a   : > { %3204 = vmatpush2.msra.mxu0 %v8701_v36 }
 0x59b   : > { %3205 = vmatprep.subr.mxu0 %v8707_v35  ;;  %v2440_v35 = vrot.slane %v8785_v31, %v9836_v50 }
 0x59c   : > { %3206 = vmatpush2.msra.mxu0 %v8714_v34  ;;  %v9837_v34 = vld [vmem:[#allocation49_spill] sm:$0xff] }
 0x59d   : > { %3315 = vmatprep.subr.mxu0 %v8304_v16  ;;  %v2436_v16 = vrot.slane %v8785_v31, %v9837_v34 }
 0x5dd   : > { %v2969_v48 = vpop.f32.mrf.mxu0  ;;  %v3012_v57 = vpop.f32.mrf.mxu1 }
 0x5de   : > { %v2970_v36 = vadd.f32 %v2969_v48, %v2428_v18  ;;  %v3013_v30 = vadd.f32 %v3012_v57, %v2436_v16  ;;  %v6874_v57 = vld [vmem:[%s9553_s12 + $0xa4] ss:$8 sps:$4 sm:$0xff]  }
 0x5df   : > { %v2971_v51 = vpop.f32.mrf.mxu0  ;;  %v3014_v24 = vpop.f32.mrf.mxu1 }
 0x5e0   : > { %v2972_v27 = vadd.f32 %v2971_v51, %v2432_v39  ;;  %v3064_v61 = vmul.f32 0.125, %v2970_v36  ;;  %v3015_v26 = vadd.f32 %v3014_v24, %v2440_v35 }
 0x5e1   : > { %v2973_v0 = vpop.f32.mrf.mxu0  ;;  %v3016_v45 = vpop.f32.mrf.mxu1 }
 0x5e2   : > { %v3065_v42 = vmul.f32 0.125, %v2972_v27  ;;  %v2974_v32 = vadd.f32 %v2973_v0, %v2428_v18  ;;  %v3017_v7 = vadd.f32 %v3016_v45, %v2436_v16  ;;  %v3068_v50 = vmul.f32 %v3064_v61, %v3013_v30  ;;  %v6869_v45 = vld [vmem:[%s9553_s12 + $0xb0] ss:$8 sps:$4 sm:$0xff]   ;;  %v6872_v18 = vld [vmem:[%s9553_s12 + $0xa0] ss:$8 sps:$4 sm:$0xff]  }
 0x5e3   : > { %v2975_v52 = vpop.f32.mrf.mxu0  ;;  %v3018_v47 = vpop.f32.mrf.mxu1  ;;  %v6880_v16 = vld [vmem:[%s9553_s12 + $0x84] ss:$8 sps:$4 sm:$0xff]  }
 0x5e4   : > { %v3069_v1 = vmul.f32 %v3065_v42, %v3015_v26  ;;  %v3066_v48 = vmul.f32 0.125, %v2974_v32  ;;  %v2976_v43 = vadd.f32 %v2975_v52, %v2432_v39  ;;  %v3019_v15 = vadd.f32 %v3018_v47, %v2440_v35  ;;  %v9839_v39 = vld [vmem:[#allocation26_spill] sm:$0xff]  ;;  %v9841_v52 = vld [vmem:[#allocation28_spill] sm:$0xff] }
 0x5e5   : > { %v3141_v27 = vmul.f32 %v3064_v61, %v3017_v7  ;;  %v6865_v47 = vld [vmem:[%s9553_s12 + $0xd4] ss:$8 sps:$4 sm:$0xff]   ;;  %v6868_v32 = vld [vmem:[%s9553_s12 + $0xc4] ss:$8 sps:$4 sm:$0xff]   ;;  %v6875_v35 = vld [vmem:[%s9553_s12 + $0x90] ss:$8 sps:$4 sm:$0xff]  }
 0x5e6   : > { %v8795_v11 = vmul.f32 %v3066_v48, %v3013_v30  ;;  %v8797_v34 = vmul.f32 %v3066_v48, %v3017_v7  ;;  %v3067_v51 = vmul.f32 0.125, %v2976_v43  ;;  %3134 = vmatprep.mubr.f32.mxu1 %v3069_v1  ;;  %v3142_v36 = vmul.f32 %v3065_v42, %v3019_v15  ;;  %v6857_v43 = vld [vmem:[%s9553_s12 + $0xf0] ss:$8 sps:$4 sm:$0xff]   ;;  %v6862_v7 = vld [vmem:[%s9553_s12 + $0xe4] ss:$8 sps:$4 sm:$0xff]  }
 0x5e7   : > { %3135 = vmatmul.mubr.f32.vlgmr.msra.gmra.mxu1 %v3068_v50  ;;  %v9840_v50 = vld [vmem:[#allocation27_spill] sm:$0xff]  ;;  %v6863_v30 = vld [vmem:[%s9553_s12 + $0xd0] ss:$8 sps:$4 sm:$0xff]   ;;  %v6871_v61 = vld [vmem:[%s9553_s12 + $0xb4] ss:$8 sps:$4 sm:$0xff]  }
 0x5e8   : > { %v3241_v24 = vmul.f32 %v3067_v51, %v3015_v26  ;;  %3243 = vmatpush1.msra.mxu1 %v8340_v60  ;;  %v3314_v0 = vmul.f32 %v3067_v51, %v3019_v15  ;;  %3207 = vmatprep.mubr.f32.mxu0 %v3142_v36  ;;  %v9838_v26 = vld [vmem:[#allocation25_spill] sm:$0xff]  ;;  %v6860_v1 = vld [vmem:[%s9553_s12 + $0xe0] ss:$8 sps:$4 sm:$0xff]  }
 0x5e9   : > { %3244 = vmatprep.subr.mxu1 %v8346_v62  ;;  %3208 = vmatmul.mubr.f32.vlgmr.msra.gmra.mxu0 %v3141_v27  ;;  %v6859_v15 = vld [vmem:[%s9553_s12 + $0xf4] ss:$8 sps:$4 sm:$0xff]   ;;  %v6866_v42 = vld [vmem:[%s9553_s12 + $0xc0] ss:$8 sps:$4 sm:$0xff]  }
 0x5ea   : > { %3245 = vmatpush1.msra.mxu1 %v8352_v63  ;;  %3316 = vmatpush1.msra.mxu0 %v8340_v60  ;;  %v9842_v60 = vld [vmem:[#allocation29_spill] sm:$0xff]  ;;  %v6878_v48 = vld [vmem:[%s9553_s12 + $0x80] ss:$8 sps:$4 sm:$0xff]  }
 0x5eb   : > { %3246 = vmatprep.subr.mxu1 %v8358_v2  ;;  %3306 = vmatprep.mubr.f32.mxu1 %v3241_v24 }
 0x5ec   : > { %3317 = vmatprep.subr.mxu0 %v8346_v62  ;;  %3379 = vmatprep.mubr.f32.mxu0 %v3314_v0  ;;  %v9843_v62 = vld [vmem:[#allocation30_spill] sm:$0xff] }
 0x5ed   : > { %3247 = vmatpush1.msra.mxu1 %v8364_v5  ;;  %3318 = vmatpush1.msra.mxu0 %v8352_v63  ;;  %v9844_v63 = vld [vmem:[#allocation31_spill] sm:$0xff] }
 0x5ee   : > { %3248 = vmatprep.subr.mxu1 %v8370_v6  ;;  %3319 = vmatprep.subr.mxu0 %v8358_v2  ;;  %v9845_v2 = vld [vmem:[#allocation32_spill] sm:$0xff] }
 0x5ef   : > { %3249 = vmatpush1.msra.mxu1 %v8376_v8  ;;  %3320 = vmatpush1.msra.mxu0 %v8364_v5  ;;  %v9846_v5 = vld [vmem:[#allocation33_spill] sm:$0xff] }
 0x5f0   : > { %3250 = vmatprep.subr.mxu1 %v8382_v12  ;;  %3321 = vmatprep.subr.mxu0 %v8370_v6  ;;  %v9847_v6 = vld [vmem:[#allocation34_spill] sm:$0xff] }
 0x5f1   : > { %3251 = vmatpush1.msra.mxu1 %v8388_v19  ;;  %3322 = vmatpush1.msra.mxu0 %v8376_v8  ;;  %v9848_v8 = vld [vmem:[#allocation35_spill] sm:$0xff] }
 0x5f2   : > { %3252 = vmatprep.subr.mxu1 %v8394_v21  ;;  %3323 = vmatprep.subr.mxu0 %v8382_v12  ;;  %v9849_v12 = vld [vmem:[#allocation36_spill] sm:$0xff] }
 0x5f3   : > { %3253 = vmatpush1.msra.mxu1 %v8400_v22  ;;  %3324 = vmatpush1.msra.mxu0 %v8388_v19  ;;  %v9850_v19 = vld [vmem:[#allocation37_spill] sm:$0xff] }
 0x5f4   : > { %3254 = vmatprep.subr.mxu1 %v8406_v37  ;;  %3325 = vmatprep.subr.mxu0 %v8394_v21  ;;  %v9851_v21 = vld [vmem:[#allocation38_spill] sm:$0xff] }
 0x5f5   : > { %3255 = vmatpush1.msra.mxu1 %v8412_v49  ;;  %3326 = vmatpush1.msra.mxu0 %v8400_v22  ;;  %v9852_v22 = vld [vmem:[#allocation39_spill] sm:$0xff] }
 0x5f6   : > { %3256 = vmatprep.subr.mxu1 %v8418_v53  ;;  %3327 = vmatprep.subr.mxu0 %v8406_v37  ;;  %v9853_v37 = vld [vmem:[#allocation40_spill] sm:$0xff] }
 0x5f7   : > { %3257 = vmatpush1.msra.mxu1 %v8424_v55  ;;  %3328 = vmatpush1.msra.mxu0 %v8412_v49  ;;  %v9854_v49 = vld [vmem:[#allocation41_spill] sm:$0xff] }
 0x5f8   : > { %3258 = vmatprep.subr.mxu1 %v8430_v3  ;;  %3329 = vmatprep.subr.mxu0 %v8418_v53  ;;  %v9855_v53 = vld [vmem:[#allocation42_spill] sm:$0xff] }
 0x5f9   : > { %3259 = vmatpush1.msra.mxu1 %v8436_v29  ;;  %3330 = vmatpush1.msra.mxu0 %v8424_v55  ;;  %v9856_v55 = vld [vmem:[#allocation43_spill] sm:$0xff] }
 0x5fa   : > { %3260 = vmatprep.subr.mxu1 %v8442_v41  ;;  %3331 = vmatprep.subr.mxu0 %v8430_v3  ;;  %v9857_v3 = vld [vmem:[#allocation44_spill] sm:$0xff] }
 0x5fb   : > { %3261 = vmatpush1.msra.mxu1 %v8448_v23  ;;  %3332 = vmatpush1.msra.mxu0 %v8436_v29  ;;  %v9858_v29 = vld [vmem:[#allocation15_spill] sm:$0xff] }
 0x5fc   : > { %3262 = vmatprep.subr.mxu1 %v8454_v9  ;;  %3333 = vmatprep.subr.mxu0 %v8442_v41  ;;  %v9859_v41 = vld [vmem:[#allocation17_spill] sm:$0xff] }
 0x5fd   : > { %3263 = vmatpush1.msra.mxu1 %v8460_v14  ;;  %3334 = vmatpush1.msra.mxu0 %v8448_v23  ;;  %v9860_v23 = vld [vmem:[#allocation16_spill] sm:$0xff] }
 0x5fe   : > { %3264 = vmatprep.subr.mxu1 %v8466_v17  ;;  %3335 = vmatprep.subr.mxu0 %v8454_v9  ;;  %v9861_v9 = vld [vmem:[#allocation18_spill] sm:$0xff] }
 0x5ff   : > { %3265 = vmatpush1.msra.mxu1 %v8472_v13  ;;  %3336 = vmatpush1.msra.mxu0 %v8460_v14  ;;  %v9862_v14 = vld [vmem:[#allocation50_spill] sm:$0xff] }
 0x600   : > { %3266 = vmatprep.subr.mxu1 %v8478_v28  ;;  %3337 = vmatprep.subr.mxu0 %v8466_v17  ;;  %v9863_v17 = vld [vmem:[#allocation51_spill] sm:$0xff] }
 0x601   : > { %3267 = vmatpush1.msra.mxu1 %v8484_v59  ;;  %3338 = vmatpush1.msra.mxu0 %v8472_v13  ;;  %v6833_v13 = vld [vmem:[%s9553_s12 + $0x70] ss:$8 sps:$4 sm:$0xff]  }
 0x602   : > { %3268 = vmatprep.subr.mxu1 %v8490_v20  ;;  %3339 = vmatprep.subr.mxu0 %v8478_v28  ;;  %v6835_v28 = vld [vmem:[%s9553_s12 + $0x74] ss:$8 sps:$4 sm:$0xff]  }
 0x603   : > { %3269 = vmatpush1.msra.mxu1 %v8496_v10  ;;  %3340 = vmatpush1.msra.mxu0 %v8484_v59  ;;  %v6838_v59 = vld [vmem:[%s9553_s12 + $0x64] ss:$8 sps:$4 sm:$0xff]  }
 0x604   : > { %3270 = vmatprep.subr.mxu1 %v8502_v25  ;;  %3341 = vmatprep.subr.mxu0 %v8490_v20  ;;  %v6836_v20 = vld [vmem:[%s9553_s12 + $0x60] ss:$8 sps:$4 sm:$0xff]  }
 0x605   : > { %3271 = vmatpush1.msra.mxu1 %v8508_v33  ;;  %3342 = vmatpush1.msra.mxu0 %v8496_v10  ;;  %v6841_v10 = vld [vmem:[%s9553_s12 + $0x54] ss:$8 sps:$4 sm:$0xff]  }
 0x606   : > { %3272 = vmatprep.subr.mxu1 %v8514_v40  ;;  %3343 = vmatprep.subr.mxu0 %v8502_v25  ;;  %v6839_v25 = vld [vmem:[%s9553_s12 + $0x50] ss:$8 sps:$4 sm:$0xff]  }
 0x607   : > { %3273 = vmatpush1.msra.mxu1 %v8520_v38  ;;  %3344 = vmatpush1.msra.mxu0 %v8508_v33  ;;  %v6844_v33 = vld [vmem:[%s9553_s12 + $0x44] ss:$8 sps:$4 sm:$0xff]  }
 0x608   : > { %3274 = vmatprep.subr.mxu1 %v8526_v44  ;;  %3345 = vmatprep.subr.mxu0 %v8514_v40  ;;  %v6842_v40 = vld [vmem:[%s9553_s12 + $0x40] ss:$8 sps:$4 sm:$0xff]  }
 0x609   : > { %3275 = vmatpush2.msra.mxu1 %v8532_v54  ;;  %3346 = vmatpush1.msra.mxu0 %v8520_v38  ;;  %v6847_v38 = vld [vmem:[%s9553_s12 + $0x34] ss:$8 sps:$4 sm:$0xff]  }
 0x60a   : > { %3276 = vmatprep.subr.mxu1 %v8538_v56  ;;  %3347 = vmatprep.subr.mxu0 %v8526_v44  ;;  %v6845_v44 = vld [vmem:[%s9553_s12 + $0x30] ss:$8 sps:$4 sm:$0xff]  }
 0x60b   : > { %3277 = vmatpush2.msra.mxu1 %v8544_v46  ;;  %3348 = vmatpush2.msra.mxu0 %v8532_v54  ;;  %v6850_v54 = vld [vmem:[%s9553_s12 + $0x24] ss:$8 sps:$4 sm:$0xff]  }
 0x60c   : > { %3278 = vmatprep.subr.mxu1 %v8550_v58  ;;  %3349 = vmatprep.subr.mxu0 %v8538_v56  ;;  %v6848_v56 = vld [vmem:[%s9553_s12 + $0x20] ss:$8 sps:$4 sm:$0xff]  }
 0x60d   : > { %3279 = vmatpush2.msra.mxu1 %v8556_v4  ;;  %3350 = vmatpush2.msra.mxu0 %v8544_v46  ;;  %v6853_v46 = vld [vmem:[%s9553_s12 + $0x14] ss:$8 sps:$4 sm:$0xff]  }
 0x60e   : > { %3280 = vmatprep.subr.mxu1 %v9838_v26  ;;  %3351 = vmatprep.subr.mxu0 %v8550_v58  ;;  %v6851_v58 = vld [vmem:[%s9553_s12 + $0x10] ss:$8 sps:$4 sm:$0xff]  }
 0x60f   : > { %3281 = vmatpush2.msra.mxu1 %v9839_v39  ;;  %3352 = vmatpush2.msra.mxu0 %v8556_v4  ;;  %v6856_v4 = vld [vmem:[%s9553_s12 + $0x4] ss:$8 sps:$4 sm:$0xff]  }
 0x610   : > { %3282 = vmatprep.subr.mxu1 %v9840_v50  ;;  %3353 = vmatprep.subr.mxu0 %v9838_v26 }
 0x611   : > { %3283 = vmatpush2.msra.mxu1 %v9841_v52  ;;  %3354 = vmatpush2.msra.mxu0 %v9839_v39 }
 0x612   : > { %3284 = vmatprep.subr.mxu1 %v9842_v60  ;;  %3355 = vmatprep.subr.mxu0 %v9840_v50 }
 0x613   : > { %3285 = vmatpush2.msra.mxu1 %v9843_v62  ;;  %3356 = vmatpush2.msra.mxu0 %v9841_v52 }
 0x614   : > { %3286 = vmatprep.subr.mxu1 %v9844_v63  ;;  %3357 = vmatprep.subr.mxu0 %v9842_v60 }
 0x615   : > { %3287 = vmatpush2.msra.mxu1 %v9845_v2  ;;  %3358 = vmatpush2.msra.mxu0 %v9843_v62 }
 0x616   : > { %3288 = vmatprep.subr.mxu1 %v9846_v5  ;;  %3359 = vmatprep.subr.mxu0 %v9844_v63 }
 0x617   : > { %3289 = vmatpush2.msra.mxu1 %v9847_v6  ;;  %3360 = vmatpush2.msra.mxu0 %v9845_v2 }
 0x618   : > { %3290 = vmatprep.subr.mxu1 %v9848_v8  ;;  %3361 = vmatprep.subr.mxu0 %v9846_v5 }
 0x619   : > { %3291 = vmatpush2.msra.mxu1 %v9849_v12  ;;  %3362 = vmatpush2.msra.mxu0 %v9847_v6 }
 0x61a   : > { %3292 = vmatprep.subr.mxu1 %v9850_v19  ;;  %3363 = vmatprep.subr.mxu0 %v9848_v8 }
 0x61b   : > { %3293 = vmatpush2.msra.mxu1 %v9851_v21  ;;  %3364 = vmatpush2.msra.mxu0 %v9849_v12 }
 0x61c   : > { %3294 = vmatprep.subr.mxu1 %v9852_v22  ;;  %3365 = vmatprep.subr.mxu0 %v9850_v19 }
 0x61d   : > { %3295 = vmatpush2.msra.mxu1 %v9853_v37  ;;  %3366 = vmatpush2.msra.mxu0 %v9851_v21  ;;  %v3055_v51 = vpop.f32.mrf.mxu0 }
 0x61e   : > { %3296 = vmatprep.subr.mxu1 %v9854_v49  ;;  %3367 = vmatprep.subr.mxu0 %v9852_v22 }
 0x61f   : > { %3297 = vmatpush2.msra.mxu1 %v9855_v53  ;;  %3368 = vmatpush2.msra.mxu0 %v9853_v37  ;;  %v3057_v36 = vpop.f32.mrf.mxu0 }
 0x620   : > { %3298 = vmatprep.subr.mxu1 %v9856_v55  ;;  %3369 = vmatprep.subr.mxu0 %v9854_v49 }
 0x621   : > { %3299 = vmatpush2.msra.mxu1 %v9857_v3  ;;  %3370 = vmatpush2.msra.mxu0 %v9855_v53  ;;  %v3059_v27 = vpop.f32.mrf.mxu0 }
 0x622   : > { %3300 = vmatprep.subr.mxu1 %v9858_v29  ;;  %3371 = vmatprep.subr.mxu0 %v9856_v55 }
 0x623   : > { %3301 = vmatpush2.msra.mxu1 %v9859_v41  ;;  %3372 = vmatpush2.msra.mxu0 %v9857_v3  ;;  %v3061_v24 = vpop.f32.mrf.mxu0 }
 0x624   : > { %3302 = vmatprep.subr.mxu1 %v9860_v23  ;;  %3373 = vmatprep.subr.mxu0 %v9858_v29 }
 0x625   : > { %3303 = vmatpush2.msra.mxu1 %v9861_v9  ;;  %3374 = vmatpush2.msra.mxu0 %v9859_v41 }
 0x626   : > { %3304 = vmatprep.subr.mxu1 %v9862_v14  ;;  %3375 = vmatprep.subr.mxu0 %v9860_v23 }
 0x627   : > { %3305 = vmatpush2.msra.mxu1 %v9863_v17  ;;  %3376 = vmatpush2.msra.mxu0 %v9861_v9 }
 0x628   : > { %3307 = vmatmul.mubr.f32.vlgmr.msra.gmra.mxu1 %v8795_v11  ;;  %3377 = vmatprep.subr.mxu0 %v9862_v14  ;;  %v6854_v11 = vld [vmem:[%s9553_s12] ss:$8 sps:$4 sm:$0xff]  }
 0x629   : > { %3378 = vmatpush2.msra.mxu0 %v9863_v17  ;;  %3618 = vmatprep.subr.bf16.mxu1 %v6835_v28 }
 0x62a   : > { %3380 = vmatmul.mubr.f32.vlgmr.msra.gmra.mxu0 %v8797_v34  ;;  %3619 = vmatpush1.bf16.msra.mxu1 %v6833_v13  ;;  %v6877_v34 = vld [vmem:[%s9553_s12 + $0x94] ss:$8 sps:$4 sm:$0xff]  }
 0x62b   : > { %3620 = vmatprep.subr.bf16.mxu1 %v6838_v59 }
 0x62e   : > { %3621 = vmatpush1.bf16.msra.mxu1 %v6836_v20 }
 0x62f   : > { %3622 = vmatprep.subr.bf16.mxu1 %v6841_v10 }
 0x632   : > { %3623 = vmatpush1.bf16.msra.mxu1 %v6839_v25 }
 0x633   : > { %3624 = vmatprep.subr.bf16.mxu1 %v6844_v33 }
 0x636   : > { %3625 = vmatpush1.bf16.msra.mxu1 %v6842_v40 }
 0x637   : > { %3626 = vmatprep.subr.bf16.mxu1 %v6847_v38 }
 0x63a   : > { %3627 = vmatpush1.bf16.msra.mxu1 %v6845_v44 }
 0x63b   : > { %3628 = vmatprep.subr.bf16.mxu1 %v6850_v54 }
 0x63e   : > { %3629 = vmatpush1.bf16.msra.mxu1 %v6848_v56 }
 0x63f   : > { %3630 = vmatprep.subr.bf16.mxu1 %v6853_v46 }
 0x642   : > { %3631 = vmatpush1.bf16.msra.mxu1 %v6851_v58  ;;  %v9864_v58 = vld [vmem:[#allocation19_spill] sm:$0xff] }
 0x643   : > { %3632 = vmatprep.subr.bf16.mxu1 %v6856_v4  ;;  %v2444_v4 = vrot.slane %v8785_v31, %v9864_v58 }
 0x646   : > { %3633 = vmatpush1.bf16.msra.mxu1 %v6854_v11  ;;  %v9865_v11 = vld [vmem:[#allocation20_spill] sm:$0xff] }
 0x647   : > { %3634 = vmatprep.subr.bf16.mxu1 %v6859_v15  ;;  %v2448_v15 = vrot.slane %v8785_v31, %v9865_v11 }
 0x64a   : > { %3635 = vmatpush2.bf16.msra.mxu1 %v6857_v43  ;;  %v3056_v43 = vadd.f32 %v3055_v51, %v2444_v4 }
 0x64b   : > { %3636 = vmatprep.subr.bf16.mxu1 %v6862_v7  ;;  %v3060_v7 = vadd.f32 %v3059_v27, %v2444_v4  ;;  %v3780_v4 = vld [vmem:[#allocation6 + $0x188] sm:$0xff] }
 0x64e   : > { %3637 = vmatpush2.bf16.msra.mxu1 %v6860_v1  ;;  %v3058_v1 = vadd.f32 %v3057_v36, %v2448_v15 }
 0x64f   : > { %3638 = vmatprep.subr.bf16.mxu1 %v6865_v47  ;;  %v3062_v47 = vadd.f32 %v3061_v24, %v2448_v15  ;;  %v3784_v15 = vld [vmem:[#allocation6 + $0x1a8] sm:$0xff] }
 0x652   : > { %3639 = vmatpush2.bf16.msra.mxu1 %v6863_v30 }
 0x653   : > { %3640 = vmatprep.subr.bf16.mxu1 %v6868_v32 }
 0x656   : > { %3641 = vmatpush2.bf16.msra.mxu1 %v6866_v42 }
 0x657   : > { %3642 = vmatprep.subr.bf16.mxu1 %v6871_v61 }
 0x65a   : > { %3643 = vmatpush2.bf16.msra.mxu1 %v6869_v45 }
 0x65b   : > { %3644 = vmatprep.subr.bf16.mxu1 %v6874_v57 }
 0x65e   : > { %3645 = vmatpush2.bf16.msra.mxu1 %v6872_v18 }
 0x65f   : > { %3646 = vmatprep.subr.bf16.mxu1 %v6877_v34 }
 0x662   : > { %3647 = vmatpush2.bf16.msra.mxu1 %v6875_v35 }
 0x663   : > { %3648 = vmatprep.subr.bf16.mxu1 %v6880_v16 }
 0x666   : > { %3649 = vmatpush2.bf16.msra.mxu1 %v6878_v48 }
 0x6a7   : > { %v3136_v26 = vpop.f32.mrf.mxu1 }
 0x6a9   : > { %v3209_v0 = vpop.f32.mrf.mxu0  ;;  %v3138_v50 = vpop.f32.mrf.mxu1 }
 0x6aa   : > { %v3214_v52 = vmax.f32 %v3136_v26, %v3209_v0 }
 0x6ab   : > { %v3211_v39 = vpop.f32.mrf.mxu0 }
 0x6ac   : > { %v3215_v60 = vmax.f32 %v3138_v50, %v3211_v39  ;;  %v3216_v62 = vsub.f32 %v3136_v26, %v3214_v52  ;;  %v3222_v5 = vsub.f32 %v3209_v0, %v3214_v52 }
 0x6ae   : > { %v3217_v63 = vsub.f32 %v3138_v50, %v3215_v60  ;;  %v3223_v2 = vsub.f32 %v3211_v39, %v3215_v60  ;;  %v3218_v6 = vmul.f32 1.442695, %v3216_v62  ;;  %v3224_v21 = vmul.f32 1.442695, %v3222_v5  ;;  %v3446_v62 = vld [vmem:[%s9554_s13] sm:$0x3] }
 0x6af   : > { %v9867_v5 = vld [vmem:[#allocation47_spill] sm:$0xff] }
 0x6b0   : > { %v3220_v8 = vmul.f32 1.442695, %v3217_v63  ;;  %v3226_v19 = vmul.f32 1.442695, %v3223_v2  ;;  %7101 = vpow2.f32 %v3218_v6  ;;  %v9866_v63 = vld [vmem:[#allocation46_spill] sm:$0xff]  ;;  %v3455_v6 = vrot.slane %v3446_v62, %v9867_v5 }
 0x6b1   : > { %v3451_v2 = vrot.slane %v3446_v62, %v9866_v63  ;;  %v3751_v62 = vld [vmem:[#allocation6 + $0xa0] sm:$0xff] }
 0x6b2   : > { %7103 = vpow2.f32 %v3220_v8 }
 0x6b3   : > { %7105 = vpow2.f32 %v3226_v19 }
 0x6b4   : > { %7107 = vpow2.f32 %v3224_v21 }
 0x6bd   : > { %v7102_v28 = vpop.eup %7101 }
 0x6be   : > { %v3228_v18 = vmul.f32 %v7102_v28, %v3056_v43 }
 0x6bf   : > { %v7104_v59 = vpop.eup %7103 }
 0x6c0   : > { %v7106_v20 = vpop.eup %7105  ;;  %v3229_v42 = vmul.f32 %v7104_v59, %v3058_v1 }
 0x6c1   : > { %v7108_v10 = vpop.eup %7107  ;;  %v3235_v25 = vadd.f32 %v7106_v20, %v7104_v59  ;;  %v3231_v45 = vmul.f32 %v7106_v20, %v3062_v47  ;;  %v3787_v59 = vld [vmem:[#allocation6 + $0x1c0] sm:$0xff] }
 0x6c2   : > { %v3234_v38 = vadd.f32 %v7108_v10, %v7102_v28  ;;  %v3230_v34 = vmul.f32 %v7108_v10, %v3060_v7  ;;  %v3791_v20 = vld [vmem:[#allocation6 + $0x1e0] sm:$0xff]  ;;  %v3788_v10 = vld [vmem:[#allocation6 + $0x1c8] sm:$0xff] }
 0x6c3   : > { %v3233_v26 = vadd.f32 %v3231_v45, %v3229_v42  ;;  %v6216_v42 = vcombine.low %v3780_v4, %v3784_v15 }
 0x6c4   : > { %v3232_v31 = vadd.f32 %v3230_v34, %v3228_v18  ;;  %v3767_v18 = vld [vmem:[#allocation6 + $0x120] sm:$0xff]  ;;  %v3764_v34 = vld [vmem:[#allocation6 + $0x108] sm:$0xff] }
 0x6e8   : > { %v3308_v12 = vpop.f32.mrf.mxu1 }
 0x6ea   : > { %v3381_v22 = vpop.f32.mrf.mxu0  ;;  %v3310_v49 = vpop.f32.mrf.mxu1 }
 0x6eb   : > { %v3386_v37 = vmax.f32 %v3308_v12, %v3381_v22 }
 0x6ec   : > { %v3383_v53 = vpop.f32.mrf.mxu0 }
 0x6ed   : > { %v3388_v55 = vsub.f32 %v3308_v12, %v3386_v37  ;;  %v3394_v3 = vsub.f32 %v3381_v22, %v3386_v37  ;;  %v3387_v29 = vmax.f32 %v3310_v49, %v3383_v53  ;;  %v9868_v37 = vld [vmem:[#allocation23_spill] sm:$0xff] }
 0x6ef   : > { %v3390_v41 = vmul.f32 1.442695, %v3388_v55  ;;  %v3396_v23 = vmul.f32 1.442695, %v3394_v3  ;;  %v3389_v9 = vsub.f32 %v3310_v49, %v3387_v29  ;;  %v3395_v14 = vsub.f32 %v3383_v53, %v3387_v29  ;;  %v9869_v53 = vld [vmem:[#allocation21_spill] sm:$0xff] }
 0x6f1   : > { %7109 = vpow2.f32 %v3390_v41  ;;  %v3392_v17 = vmul.f32 1.442695, %v3389_v9  ;;  %v3398_v13 = vmul.f32 1.442695, %v3395_v14  ;;  %v9870_v9 = vld [vmem:[#allocation24_spill] sm:$0xff] }
 0x6f2   : > { %7111 = vpow2.f32 %v3396_v23 }
 0x6f3   : > { %7113 = vpow2.f32 %v3392_v17  ;;  %v9871_v17 = vld [vmem:[#allocation22_spill] sm:$0xff] }
 0x6f4   : > { %7115 = vpow2.f32 %v3398_v13 }
 0x6f5   : > { %7117 = vrcp.f32 %v3235_v25  ;;  %v6222_v25 = vcombine.low %v3787_v59, %v3791_v20 }
 0x6fe   : > { %v7110_v33 = vpop.eup %7109 }
 0x6ff   : > { %v7112_v40 = vpop.eup %7111  ;;  %v3400_v30 = vmul.f32 %v7110_v33, %v3056_v43  ;;  %v3771_v43 = vld [vmem:[#allocation6 + $0x140] sm:$0xff] }
 0x700   : > { %v7114_v44 = vpop.eup %7113  ;;  %v3406_v54 = vadd.f32 %v7112_v40, %v7110_v33  ;;  %v3402_v32 = vmul.f32 %v7112_v40, %v3060_v7  ;;  %v6223_v33 = vcombine.high %v3787_v59, %v3791_v20  ;;  %v3792_v40 = vld [vmem:[#allocation6 + $0x1e8] sm:$0xff]  ;;  %v6217_v7 = vcombine.high %v3780_v4, %v3784_v15 }
 0x701   : > { %v7116_v56 = vpop.eup %7115  ;;  %v3401_v61 = vmul.f32 %v7114_v44, %v3058_v1  ;;  %v3775_v1 = vld [vmem:[#allocation6 + $0x160] sm:$0xff]  ;;  %v3732_v59 = vld [vmem:[#allocation6 + $0x8] sm:$0xff] }
 0x702   : > { %7119 = vrcp.f32 %v3406_v54  ;;  %v3407_v46 = vadd.f32 %v7116_v56, %v7114_v44  ;;  %v3403_v57 = vmul.f32 %v7116_v56, %v3062_v47  ;;  %v7118_v35 = vpop.eup %7117  ;;  %v3404_v48 = vadd.f32 %v3402_v32, %v3400_v30  ;;  %v3783_v44 = vld [vmem:[#allocation6 + $0x1a0] sm:$0xff]  ;;  %4541 = vmatprep.subr.bf16.mxu0 %v6223_v33  ;;  %v3772_v47 = vld [vmem:[#allocation6 + $0x148] sm:$0xff] }
 0x703   : > { %7121 = vrcp.f32 %v3234_v38  ;;  %v3239_v27 = vmul.f32 %v7118_v35, %v3233_v26  ;;  %v3779_v38 = vld [vmem:[#allocation6 + $0x180] sm:$0xff]  ;;  %v6224_v54 = vcombine.low %v3788_v10, %v3792_v40  ;;  %v6225_v56 = vcombine.high %v3788_v10, %v3792_v40  ;;  %v3776_v30 = vld [vmem:[#allocation6 + $0x168] sm:$0xff]  ;;  %4542 = vmatpush1.bf16.msra.mxu0 %v6222_v25 }
 0x704   : > { %7123 = vrcp.f32 %v3407_v46  ;;  %v3405_v39 = vadd.f32 %v3403_v57, %v3401_v61  ;;  %v6215_v46 = vcombine.high %v3779_v38, %v3783_v44  ;;  %v6214_v32 = vcombine.low %v3779_v38, %v3783_v44  ;;  %v3763_v57 = vld [vmem:[#allocation6 + $0x100] sm:$0xff]  ;;  %v3768_v35 = vld [vmem:[#allocation6 + $0x128] sm:$0xff] }
 0x705   : > { %4584 = vmatprep.subr.bf16.mxu1 %v6225_v56  ;;  %v6207_v45 = vcombine.high %v3771_v43, %v3775_v1  ;;  %v6209_v61 = vcombine.high %v3772_v47, %v3776_v30  ;;  %v6201_v26 = vcombine.high %v3764_v34, %v3768_v35  ;;  %v3736_v20 = vld [vmem:[#allocation6 + $0x28] sm:$0xff]  ;;  %v3851_v38 = vld [vmem:[#allocation6 + $0x3c0] sm:$0xff] }
 0x706   : > { %4543 = vmatprep.subr.bf16.mxu0 %v6215_v46  ;;  %v6169_v40 = vcombine.high %v3732_v59, %v3736_v20  ;;  %v3855_v44 = vld [vmem:[#allocation6 + $0x3e0] sm:$0xff]  ;;  %v3856_v56 = vld [vmem:[#allocation6 + $0x3e8] sm:$0xff]  ;;  %v6168_v4 = vcombine.low %v3732_v59, %v3736_v20 }
 0x707   : > { %4544 = vmatpush1.bf16.msra.mxu0 %v6214_v32  ;;  %v6287_v15 = vcombine.high %v3851_v38, %v3855_v44  ;;  %v3815_v20 = vld [vmem:[#allocation6 + $0x2a0] sm:$0xff] }
 0x708   : > { %4545 = vmatprep.subr.bf16.mxu0 %v6207_v45 }
 0x70f   : > { %v7120_v16 = vpop.eup %7119 }
 0x710   : > { %v7122_v0 = vpop.eup %7121  ;;  %v3410_v51 = vmul.f32 %v7120_v16, %v3404_v48  ;;  %v6206_v16 = vcombine.low %v3771_v43, %v3775_v1  ;;  %v6208_v48 = vcombine.low %v3772_v47, %v3776_v30 }
 0x711   : > { %v7124_v50 = vpop.eup %7123  ;;  %v3238_v24 = vmul.f32 %v7122_v0, %v3232_v31  ;;  %v6199_v0 = vcombine.high %v3763_v57, %v3767_v18  ;;  %v3756_v31 = vld [vmem:[#allocation6 + $0xc8] sm:$0xff] }
 0x712   : > { %v3411_v36 = vmul.f32 %v7124_v50, %v3405_v39  ;;  %v3755_v39 = vld [vmem:[#allocation6 + $0xc0] sm:$0xff]  ;;  %4546 = vmatpush1.bf16.msra.mxu0 %v6206_v16 }
 0x713   : > { %v3412_v60 = vpack.c.bf16 %v3410_v51, %v3238_v24  ;;  %v3759_v50 = vld [vmem:[#allocation6 + $0xe0] sm:$0xff]  ;;  %v3760_v51 = vld [vmem:[#allocation6 + $0xe8] sm:$0xff]  ;;  %4547 = vmatprep.subr.bf16.mxu0 %v6199_v0 }
 0x714   : > { %v3413_v52 = vpack.c.bf16 %v3411_v36, %v3239_v27  ;;  %v6198_v27 = vcombine.low %v3763_v57, %v3767_v18  ;;  %v6200_v36 = vcombine.low %v3764_v34, %v3768_v35  ;;  %v6191_v24 = vcombine.high %v3755_v39, %v3759_v50  ;;  %v3843_v0 = vld [vmem:[#allocation6 + $0x380] sm:$0xff] }
 0x716   : > { %3650 = vmatprep.mubr.bf16.mxu1 %v3413_v52  ;;  %v6193_v52 = vcombine.high %v3756_v31, %v3760_v51  ;;  %4548 = vmatpush1.bf16.msra.mxu0 %v6198_v27 }
 0x717   : > { %3651 = vmatmul.mubr.bf16.vlgmr.msra.gmra.mxu1 %v3412_v60  ;;  %v3747_v60 = vld [vmem:[#allocation6 + $0x80] sm:$0xff]  ;;  %4549 = vmatprep.subr.bf16.mxu0 %v6191_v24  ;;  %v3836_v24 = vld [vmem:[#allocation6 + $0x348] sm:$0xff] }
 0x718   : > { %4585 = vmatpush1.bf16.msra.mxu1 %v6224_v54  ;;  %v3852_v54 = vld [vmem:[#allocation6 + $0x3c8] sm:$0xff] }
 0x719   : > { %4586 = vmatprep.subr.bf16.mxu1 %v6217_v7  ;;  %v6289_v43 = vcombine.high %v3852_v54, %v3856_v56  ;;  %v6286_v7 = vcombine.low %v3851_v38, %v3855_v44  ;;  %v6288_v1 = vcombine.low %v3852_v54, %v3856_v56  ;;  %v3803_v54 = vld [vmem:[#allocation6 + $0x240] sm:$0xff] }
 0x71a   : > { %v3807_v56 = vld [vmem:[#allocation6 + $0x260] sm:$0xff] }
 0x71c   : > { %4587 = vmatpush1.bf16.msra.mxu1 %v6216_v42 }
 0x71d   : > { %4588 = vmatprep.subr.bf16.mxu1 %v6209_v61 }
 0x720   : > { %4589 = vmatpush1.bf16.msra.mxu1 %v6208_v48 }
 0x721   : > { %4590 = vmatprep.subr.bf16.mxu1 %v6201_v26  ;;  %v3847_v26 = vld [vmem:[#allocation6 + $0x3a0] sm:$0xff] }
 0x724   : > { %4591 = vmatpush1.bf16.msra.mxu1 %v6200_v36  ;;  %v3839_v36 = vld [vmem:[#allocation6 + $0x360] sm:$0xff] }
 0x725   : > { %4592 = vmatprep.subr.bf16.mxu1 %v6193_v52 }
 0x7d7   : > { %v3652_v8 = vpop.f32.mrf.mxu1 }
 0x7d8   : > { %v3653_v12 = vadd.f32 %v3652_v8, %v3451_v2  ;;  %v6190_v8 = vcombine.low %v3755_v39, %v3759_v50  ;;  %v3844_v39 = vld [vmem:[#allocation6 + $0x388] sm:$0xff]  ;;  %v6279_v50 = vcombine.high %v3843_v0, %v3847_v26 }
 0x7d9   : > { %v3654_v19 = vpop.f32.mrf.mxu1 }
 0x7da   : > { %v3655_v21 = vadd.f32 %v3654_v19, %v3455_v6  ;;  %v9033_v49 = vadd.f32 %v3653_v12, %v9868_v37  ;;  %v6192_v12 = vcombine.low %v3756_v31, %v3760_v51  ;;  %v6183_v19 = vcombine.high %v3747_v60, %v3751_v62  ;;  %v3743_v37 = vld [vmem:[#allocation6 + $0x60] sm:$0xff]  ;;  %4550 = vmatpush1.bf16.msra.mxu0 %v6190_v8  ;;  %v3848_v31 = vld [vmem:[#allocation6 + $0x3a8] sm:$0xff] }
 0x7db   : > { %v3656_v22 = vpop.f32.mrf.mxu1  ;;  %v6280_v51 = vcombine.low %v3844_v39, %v3848_v31  ;;  %v6281_v27 = vcombine.high %v3844_v39, %v3848_v31  ;;  %v3827_v8 = vld [vmem:[#allocation6 + $0x300] sm:$0xff]  ;;  %v3790_v39 = vld [vmem:[#allocation6 + $0x1d8] sm:$0xff] }
 0x7dc   : > { %v9036_v55 = vadd.f32 %v3655_v21, %v9869_v53  ;;  %v3657_v3 = vadd.f32 %v3656_v22, %v3451_v2  ;;  %v3748_v2 = vld [vmem:[#allocation6 + $0x88] sm:$0xff]  ;;  %v3739_v22 = vld [vmem:[#allocation6 + $0x40] sm:$0xff]  ;;  %4593 = vmatpush1.bf16.msra.mxu1 %v6192_v12  ;;  %4551 = vmatprep.subr.bf16.mxu0 %v6183_v19  ;;  %v3794_v31 = vld [vmem:[#allocation6 + $0x1f8] sm:$0xff] }
 0x7dd   : > { %v3658_v29 = vpop.f32.mrf.mxu1  ;;  %v3740_v53 = vld [vmem:[#allocation6 + $0x48] sm:$0xff]  ;;  %v6174_v10 = vcombine.low %v3739_v22, %v3743_v37  ;;  %v3831_v12 = vld [vmem:[#allocation6 + $0x320] sm:$0xff] }
 0x7de   : > { %v3659_v41 = vadd.f32 %v3658_v29, %v3455_v6  ;;  %v3665_v23 = vadd.f32 %v9036_v55, %v9033_v49  ;;  %v9041_v14 = vadd.f32 %v3657_v3, %v9870_v9  ;;  %v3752_v6 = vld [vmem:[#allocation6 + $0xa8] sm:$0xff]  ;;  %v6182_v29 = vcombine.low %v3747_v60, %v3751_v62 }
 0x7df   : > { %v6185_v21 = vcombine.high %v3748_v2, %v3752_v6  ;;  %v3744_v3 = vld [vmem:[#allocation6 + $0x68] sm:$0xff] }
 0x7e0   : > { %v9044_v13 = vadd.f32 %v3659_v41, %v9871_v17  ;;  %3666 = vadd.xlane.f32.xlu1 %v3665_v23  ;;  %v6184_v41 = vcombine.low %v3748_v2, %v3752_v6  ;;  %v6175_v23 = vcombine.high %v3739_v22, %v3743_v37  ;;  %v6177_v9 = vcombine.high %v3740_v53, %v3744_v3  ;;  %v3731_v17 = vld [vmem:[#allocation6] sm:$0xff]  ;;  %v3840_v60 = vld [vmem:[#allocation6 + $0x368] sm:$0xff] }
 0x7e1   : > { %4594 = vmatprep.subr.bf16.mxu1 %v6185_v21  ;;  %4552 = vmatpush1.bf16.msra.mxu0 %v6182_v29  ;;  %v6176_v25 = vcombine.low %v3740_v53, %v3744_v3  ;;  %v6272_v2 = vcombine.low %v3836_v24, %v3840_v60  ;;  %v6273_v6 = vcombine.high %v3836_v24, %v3840_v60  ;;  %v3828_v19 = vld [vmem:[#allocation6 + $0x308] sm:$0xff]  ;;  %v3819_v53 = vld [vmem:[#allocation6 + $0x2c0] sm:$0xff] }
 0x7e2   : > { %v3668_v28 = vadd.f32 %v9044_v13, %v9041_v14  ;;  %4595 = vmatpush1.bf16.msra.mxu1 %v6184_v41  ;;  %4553 = vmatprep.subr.bf16.mxu0 %v6175_v23  ;;  %v6262_v21 = vcombine.low %v3827_v8, %v3831_v12  ;;  %v6263_v22 = vcombine.high %v3827_v8, %v3831_v12  ;;  %v3832_v37 = vld [vmem:[#allocation6 + $0x328] sm:$0xff]  ;;  %v3823_v3 = vld [vmem:[#allocation6 + $0x2e0] sm:$0xff] }
 0x7e3   : > { %4596 = vmatprep.subr.bf16.mxu1 %v6177_v9  ;;  %v6264_v29 = vcombine.low %v3828_v19, %v3832_v37  ;;  %v6265_v41 = vcombine.high %v3828_v19, %v3832_v37  ;;  %v6255_v23 = vcombine.high %v3819_v53, %v3823_v3  ;;  %v3820_v9 = vld [vmem:[#allocation6 + $0x2c8] sm:$0xff]  ;;  %v3713_v19 = vld [vmem:[%s9556_s15] sm:$0x3] }
 0x7e4   : > { %3669 = vadd.xlane.f32.xlu1 %v3668_v28  ;;  %v3735_v28 = vld [vmem:[#allocation6 + $0x20] sm:$0xff] }
 0x7e5   : > { %v6167_v33 = vcombine.high %v3731_v17, %v3735_v28  ;;  %4554 = vmatpush1.bf16.msra.mxu0 %v6174_v10  ;;  %v6166_v46 = vcombine.low %v3731_v17, %v3735_v28  ;;  %v3824_v17 = vld [vmem:[#allocation6 + $0x2e8] sm:$0xff]  ;;  %v3811_v28 = vld [vmem:[#allocation6 + $0x280] sm:$0xff] }
 0x7e6   : > { %4597 = vmatpush1.bf16.msra.mxu1 %v6176_v25  ;;  %v6257_v59 = vcombine.high %v3820_v9, %v3824_v17  ;;  %v3812_v10 = vld [vmem:[#allocation6 + $0x288] sm:$0xff]  ;;  %v6247_v38 = vcombine.high %v3811_v28, %v3815_v20 }
 0x7e7   : > { %4555 = vmatprep.subr.bf16.mxu0 %v6167_v33  ;;  %4598 = vmatprep.subr.bf16.mxu1 %v6169_v40  ;;  %v3816_v25 = vld [vmem:[#allocation6 + $0x2a8] sm:$0xff]  ;;  %v6254_v33 = vcombine.low %v3819_v53, %v3823_v3  ;;  %v6256_v40 = vcombine.low %v3820_v9, %v3824_v17  ;;  %v3722_v53 = vrot.slane %v3713_v19, %v9867_v5 }
 0x7e8   : > { %v6249_v44 = vcombine.high %v3812_v10, %v3816_v25  ;;  %v3718_v3 = vrot.slane %v3713_v19, %v9866_v63 }
 0x7e9   : > { %4556 = vmatpush1.bf16.msra.mxu0 %v6166_v46  ;;  %v3804_v46 = vld [vmem:[#allocation6 + $0x248] sm:$0xff] }
 0x7ea   : > { %4599 = vmatpush1.bf16.msra.mxu1 %v6168_v4  ;;  %4557 = vmatprep.subr.bf16.mxu0 %v6287_v15  ;;  %v3808_v4 = vld [vmem:[#allocation6 + $0x268] sm:$0xff]  ;;  %v6246_v15 = vcombine.low %v3811_v28, %v3815_v20 }
 0x7eb   : > { %4600 = vmatprep.subr.bf16.mxu1 %v6289_v43  ;;  %v6248_v43 = vcombine.low %v3812_v10, %v3816_v25  ;;  %v3781_v10 = vld [vmem:[#allocation6 + $0x190] sm:$0xff] }
 0x7ec   : > { %v3785_v25 = vld [vmem:[#allocation6 + $0x1b0] sm:$0xff] }
 0x7ed   : > { %4558 = vmatpush2.bf16.msra.mxu0 %v6286_v7  ;;  %v6239_v7 = vcombine.high %v3803_v54, %v3807_v56 }
 0x7ee   : > { %4601 = vmatpush2.bf16.msra.mxu1 %v6288_v1  ;;  %4559 = vmatprep.subr.bf16.mxu0 %v6279_v50  ;;  %v6241_v1 = vcombine.high %v3804_v46, %v3808_v4 }
 0x7ef   : > { %4602 = vmatprep.subr.bf16.mxu1 %v6281_v27  ;;  %v6229_v27 = vcombine.high %v3790_v39, %v3794_v31 }
 0x7f2   : > { %4603 = vmatpush2.bf16.msra.mxu1 %v6280_v51  ;;  %v6228_v51 = vcombine.low %v3790_v39, %v3794_v31 }
 0x7f3   : > { %4604 = vmatprep.subr.bf16.mxu1 %v6273_v6 }
 0x7f6   : > { %4605 = vmatpush2.bf16.msra.mxu1 %v6272_v2  ;;  %v3697_v2 = vld [vmem:[%s9555_s14] sm:$0x3] }
 0x7f7   : > { %4606 = vmatprep.subr.bf16.mxu1 %v6265_v41  ;;  %v3706_v12 = vrot.slane %v3697_v2, %v9867_v5 }
 0x7fa   : > { %4607 = vmatpush2.bf16.msra.mxu1 %v6264_v29 }
 0x7fb   : > { %4608 = vmatprep.subr.bf16.mxu1 %v6257_v59 }
 0x7fe   : > { %4609 = vmatpush2.bf16.msra.mxu1 %v6256_v40  ;;  %v3786_v40 = vld [vmem:[#allocation6 + $0x1b8] sm:$0xff] }
 0x7ff   : > { %4610 = vmatprep.subr.bf16.mxu1 %v6249_v44  ;;  %v6219_v44 = vcombine.high %v3781_v10, %v3785_v25 }
 0x802   : > { %4611 = vmatpush2.bf16.msra.mxu1 %v6248_v43 }
 0x803   : > { %4612 = vmatprep.subr.bf16.mxu1 %v6241_v1 }
 0x869   : > { %v3667_v47 = vpop.xlane.xlu1 %3666 }
 0x86a   : > { %v3671_v30 = vmul.f32 0.00390625, %v3667_v47  ;;  %v3795_v47 = vld [vmem:[#allocation6 + $0x200] sm:$0xff] }
 0x86c   : > { %v9049_v32 = vsub.f32 %v9033_v49, %v3671_v30  ;;  %v9052_v42 = vsub.f32 %v9036_v55, %v3671_v30  ;;  %v3799_v30 = vld [vmem:[#allocation6 + $0x220] sm:$0xff] }
 0x86d   : > { %v3670_v45 = vpop.xlane.xlu1 %3669 }
 0x86e   : > { %v3672_v61 = vmul.f32 0.00390625, %v3670_v45  ;;  %v3677_v57 = vmul.f32 %v9049_v32, %v9049_v32  ;;  %v3678_v18 = vmul.f32 %v9052_v42, %v9052_v42  ;;  %v3796_v45 = vld [vmem:[#allocation6 + $0x208] sm:$0xff] }
 0x870   : > { %v9059_v34 = vsub.f32 %v9041_v14, %v3672_v61  ;;  %v9062_v35 = vsub.f32 %v9044_v13, %v3672_v61  ;;  %v3681_v16 = vadd.f32 %v3678_v18, %v3677_v57  ;;  %v6278_v14 = vcombine.low %v3843_v0, %v3847_v26  ;;  %v3835_v13 = vld [vmem:[#allocation6 + $0x340] sm:$0xff]  ;;  %v3800_v61 = vld [vmem:[#allocation6 + $0x228] sm:$0xff]  ;;  %v3789_v0 = vld [vmem:[#allocation6 + $0x1d0] sm:$0xff] }
 0x871   : > { %v6271_v52 = vcombine.high %v3835_v13, %v3839_v36  ;;  %v6270_v62 = vcombine.low %v3835_v13, %v3839_v36  ;;  %v6238_v57 = vcombine.low %v3803_v54, %v3807_v56  ;;  %v6240_v18 = vcombine.low %v3804_v46, %v3808_v4  ;;  %v3793_v26 = vld [vmem:[#allocation6 + $0x1f0] sm:$0xff]  ;;  %v3774_v46 = vld [vmem:[#allocation6 + $0x158] sm:$0xff] }
 0x872   : > { %3682 = vadd.xlane.f32.xlu1 %v3681_v16  ;;  %v3679_v49 = vmul.f32 %v9059_v34, %v9059_v34  ;;  %v3680_v55 = vmul.f32 %v9062_v35, %v9062_v35  ;;  %4560 = vmatpush2.bf16.msra.mxu0 %v6278_v14  ;;  %v6231_v16 = vcombine.high %v3795_v47, %v3799_v30  ;;  %v3777_v56 = vld [vmem:[#allocation6 + $0x170] sm:$0xff]  ;;  %v3778_v4 = vld [vmem:[#allocation6 + $0x178] sm:$0xff] }
 0x873   : > { %4561 = vmatprep.subr.bf16.mxu0 %v6271_v52  ;;  %4613 = vmatpush2.bf16.msra.mxu1 %v6240_v18  ;;  %v6227_v50 = vcombine.high %v3789_v0, %v3793_v26  ;;  %v6226_v14 = vcombine.low %v3789_v0, %v3793_v26  ;;  %v6213_v1 = vcombine.high %v3774_v46, %v3778_v4  ;;  %v3758_v0 = vld [vmem:[#allocation6 + $0xd8] sm:$0xff] }
 0x874   : > { %v3684_v48 = vadd.f32 %v3680_v55, %v3679_v49  ;;  %v6233_v49 = vcombine.high %v3796_v45, %v3800_v61  ;;  %v6230_v55 = vcombine.low %v3795_v47, %v3799_v30  ;;  %v3765_v47 = vld [vmem:[#allocation6 + $0x110] sm:$0xff]  ;;  %v6212_v18 = vcombine.low %v3774_v46, %v3778_v4  ;;  %v3762_v26 = vld [vmem:[#allocation6 + $0xf8] sm:$0xff] }
 0x875   : > { %v3769_v30 = vld [vmem:[#allocation6 + $0x130] sm:$0xff]  ;;  %v3846_v4 = vld [vmem:[#allocation6 + $0x398] sm:$0xff] }
 0x876   : > { %3685 = vadd.xlane.f32.xlu1 %v3684_v48  ;;  %4562 = vmatpush2.bf16.msra.mxu0 %v6270_v62  ;;  %v6232_v48 = vcombine.low %v3796_v45, %v3800_v61  ;;  %v3766_v45 = vld [vmem:[#allocation6 + $0x118] sm:$0xff]  ;;  %v6202_v39 = vcombine.low %v3765_v47, %v3769_v30  ;;  %v3849_v46 = vld [vmem:[#allocation6 + $0x3b0] sm:$0xff] }
 0x877   : > { %4563 = vmatprep.subr.bf16.mxu0 %v6263_v22  ;;  %4614 = vmatprep.subr.bf16.mxu1 %v6233_v49  ;;  %v3702_v22 = vrot.slane %v3697_v2, %v9866_v63  ;;  %v3770_v61 = vld [vmem:[#allocation6 + $0x138] sm:$0xff]  ;;  %v3741_v2 = vld [vmem:[#allocation6 + $0x50] sm:$0xff] }
 0x878   : > { %4615 = vmatpush2.bf16.msra.mxu1 %v6232_v48  ;;  %v6205_v49 = vcombine.high %v3766_v45, %v3770_v61  ;;  %v3761_v48 = vld [vmem:[#allocation6 + $0xf0] sm:$0xff] }
 0x879   : > { %4670 = vmatprep.subr.bf16.mxu1 %v6229_v27  ;;  %v3753_v27 = vld [vmem:[#allocation6 + $0xb0] sm:$0xff] }
 0x87a   : > { %4564 = vmatpush2.bf16.msra.mxu0 %v6262_v21 }
 0x87b   : > { %4565 = vmatprep.subr.bf16.mxu0 %v6255_v23 }
 0x87e   : > { %4566 = vmatpush2.bf16.msra.mxu0 %v6254_v33  ;;  %v3782_v33 = vld [vmem:[#allocation6 + $0x198] sm:$0xff] }
 0x87f   : > { %4567 = vmatprep.subr.bf16.mxu0 %v6247_v38  ;;  %v3773_v38 = vld [vmem:[#allocation6 + $0x150] sm:$0xff]  ;;  %v6221_v54 = vcombine.high %v3782_v33, %v3786_v40  ;;  %v6220_v43 = vcombine.low %v3782_v33, %v3786_v40  ;;  %v3854_v33 = vld [vmem:[#allocation6 + $0x3d8] sm:$0xff] }
 0x880   : > { %v3858_v40 = vld [vmem:[#allocation6 + $0x3f8] sm:$0xff] }
 0x882   : > { %4568 = vmatpush2.bf16.msra.mxu0 %v6246_v15  ;;  %v6218_v15 = vcombine.low %v3781_v10, %v3785_v25  ;;  %v3853_v10 = vld [vmem:[#allocation6 + $0x3d0] sm:$0xff] }
 0x883   : > { %4569 = vmatprep.subr.bf16.mxu0 %v6239_v7  ;;  %v6211_v7 = vcombine.high %v3773_v38, %v3777_v56  ;;  %v3857_v25 = vld [vmem:[#allocation6 + $0x3f0] sm:$0xff] }
 0x886   : > { %4570 = vmatpush2.bf16.msra.mxu0 %v6238_v57  ;;  %v6210_v57 = vcombine.low %v3773_v38, %v3777_v56  ;;  %v3845_v56 = vld [vmem:[#allocation6 + $0x390] sm:$0xff] }
 0x887   : > { %4571 = vmatprep.subr.bf16.mxu0 %v6231_v16  ;;  %v6203_v16 = vcombine.high %v3765_v47, %v3769_v30  ;;  %v3837_v30 = vld [vmem:[#allocation6 + $0x350] sm:$0xff] }
 0x88a   : > { %4572 = vmatpush2.bf16.msra.mxu0 %v6230_v55  ;;  %v3757_v55 = vld [vmem:[#allocation6 + $0xd0] sm:$0xff] }
 0x88b   : > { %4627 = vmatprep.subr.bf16.mxu0 %v6227_v50  ;;  %v6204_v50 = vcombine.low %v3766_v45, %v3770_v61  ;;  %v6195_v31 = vcombine.high %v3757_v55, %v3761_v48  ;;  %v3841_v45 = vld [vmem:[#allocation6 + $0x370] sm:$0xff]  ;;  %v3838_v61 = vld [vmem:[#allocation6 + $0x358] sm:$0xff] }
 0x8fb   : > { %v3683_v13 = vpop.xlane.xlu1 %3682 }
 0x8fc   : > { %v3687_v36 = vmul.f32 0.00390625, %v3683_v13  ;;  %v3750_v13 = vld [vmem:[#allocation6 + $0x98] sm:$0xff] }
 0x8fe   : > { %v3689_v24 = vadd.f32 1e-05, %v3687_v36  ;;  %v3754_v36 = vld [vmem:[#allocation6 + $0xb8] sm:$0xff] }
 0x8ff   : > { %v3686_v52 = vpop.xlane.xlu1 %3685 }
 0x900   : > { %7125 = vrsqrt.f32 %v3689_v24  ;;  %v3688_v60 = vmul.f32 0.00390625, %v3686_v52  ;;  %v6194_v24 = vcombine.low %v3757_v55, %v3761_v48  ;;  %v6196_v52 = vcombine.low %v3758_v0, %v3762_v26  ;;  %v3829_v48 = vld [vmem:[#allocation6 + $0x310] sm:$0xff] }
 0x902   : > { %v3690_v62 = vadd.f32 1e-05, %v3688_v60 }
 0x904   : > { %7127 = vrsqrt.f32 %v3690_v62  ;;  %v6189_v62 = vcombine.high %v3750_v13, %v3754_v36 }
 0x90d   : > { %v7126_v6 = vpop.eup %7125 }
 0x90e   : > { %v3694_v8 = vmul.f32 %v7126_v6, %v9052_v42  ;;  %v3693_v21 = vmul.f32 %v7126_v6, %v9049_v32  ;;  %v3745_v6 = vld [vmem:[#allocation6 + $0x70] sm:$0xff] }
 0x910   : > { %v3710_v41 = vmul.f32 %v3706_v12, %v3694_v8  ;;  %v3709_v23 = vmul.f32 %v3702_v22, %v3693_v21  ;;  %v3742_v8 = vld [vmem:[#allocation6 + $0x58] sm:$0xff]  ;;  %v6188_v21 = vcombine.low %v3750_v13, %v3754_v36  ;;  %v3825_v13 = vld [vmem:[#allocation6 + $0x2f0] sm:$0xff] }
 0x911   : > { %v7128_v37 = vpop.eup %7127  ;;  %v3822_v36 = vld [vmem:[#allocation6 + $0x2d8] sm:$0xff] }
 0x912   : > { %v3696_v29 = vmul.f32 %v7128_v37, %v9062_v35  ;;  %v3695_v42 = vmul.f32 %v7128_v37, %v9059_v34  ;;  %v9082_v28 = vadd.f32 %v3722_v53, %v3710_v41  ;;  %v9086_v32 = vadd.f32 %v3718_v3, %v3709_v23  ;;  %v3738_v41 = vld [vmem:[#allocation6 + $0x38] sm:$0xff] }
 0x914   : > { %v3712_v9 = vmul.f32 %v3706_v12, %v3696_v29  ;;  %v3711_v17 = vmul.f32 %v3702_v22, %v3695_v42  ;;  %v3746_v12 = vld [vmem:[#allocation6 + $0x78] sm:$0xff]  ;;  %v6179_v22 = vcombine.high %v3741_v2, %v3745_v6  ;;  %v6178_v42 = vcombine.low %v3741_v2, %v3745_v6  ;;  %v3813_v6 = vld [vmem:[#allocation6 + $0x290] sm:$0xff] }
 0x915   : > { %v6181_v37 = vcombine.high %v3742_v8, %v3746_v12  ;;  %v3734_v29 = vld [vmem:[#allocation6 + $0x18] sm:$0xff]  ;;  %v6180_v23 = vcombine.low %v3742_v8, %v3746_v12  ;;  %v3817_v8 = vld [vmem:[#allocation6 + $0x2b0] sm:$0xff] }
 0x916   : > { %v9084_v59 = vadd.f32 %v3722_v53, %v3712_v9  ;;  %v9088_v20 = vadd.f32 %v3718_v3, %v3711_v17  ;;  %v3733_v53 = vld [vmem:[#allocation6 + $0x10] sm:$0xff]  ;;  %v6173_v17 = vcombine.high %v3734_v29, %v3738_v41  ;;  %v6172_v38 = vcombine.low %v3734_v29, %v3738_v41  ;;  %v3814_v12 = vld [vmem:[#allocation6 + $0x298] sm:$0xff] }
 0x917   : > { %v3737_v3 = vld [vmem:[#allocation6 + $0x30] sm:$0xff]  ;;  %v3806_v41 = vld [vmem:[#allocation6 + $0x258] sm:$0xff] }
 0x918   : > { %v3730_v35 = vpack.c.bf16 %v9084_v59, %v9082_v28  ;;  %v9094_v34 = vpack.c.bf16 %v9088_v20, %v9086_v32  ;;  %v6171_v9 = vcombine.high %v3733_v53, %v3737_v3  ;;  %v3809_v29 = vld [vmem:[#allocation6 + $0x270] sm:$0xff] }
 0x91a   : > { %4573 = vmatprep.mubr.bf16.mxu0 %v3730_v35  ;;  %4616 = vmatprep.mubr.bf16.mxu1 %v3730_v35 }
 0x91b   : > { %4574 = vmatmul.mubr.bf16.vlgmr.msra.gmra.mxu0 %v9094_v34  ;;  %4617 = vmatmul.mubr.bf16.vlgmr.msra.gmra.mxu1 %v9094_v34 }
 0x91c   : > { %4628 = vmatpush1.bf16.msra.mxu0 %v6226_v14  ;;  %4671 = vmatpush1.bf16.msra.mxu1 %v6228_v51  ;;  %v6197_v14 = vcombine.high %v3758_v0, %v3762_v26  ;;  %v3749_v51 = vld [vmem:[#allocation6 + $0x90] sm:$0xff]  ;;  %v3830_v26 = vld [vmem:[#allocation6 + $0x318] sm:$0xff] }
 0x91d   : > { %4659 = vmatprep.mubr.bf16.mxu0 %v3730_v35  ;;  %4702 = vmatprep.mubr.bf16.mxu1 %v3730_v35  ;;  %v6187_v60 = vcombine.high %v3749_v51, %v3753_v27  ;;  %v6186_v19 = vcombine.low %v3749_v51, %v3753_v27  ;;  %v6170_v35 = vcombine.low %v3733_v53, %v3737_v3  ;;  %v3833_v0 = vld [vmem:[#allocation6 + $0x330] sm:$0xff] }
 0x91e   : > { %4629 = vmatprep.subr.bf16.mxu0 %v6219_v44  ;;  %4672 = vmatprep.subr.bf16.mxu1 %v6221_v54  ;;  %v6291_v44 = vcombine.high %v3853_v10, %v3857_v25  ;;  %v6293_v54 = vcombine.high %v3854_v33, %v3858_v40  ;;  %v3821_v27 = vld [vmem:[#allocation6 + $0x2d0] sm:$0xff] }
 0x91f   : > { %v3805_v3 = vld [vmem:[#allocation6 + $0x250] sm:$0xff] }
 0x920   : > { %4630 = vmatpush1.bf16.msra.mxu0 %v6218_v15  ;;  %4673 = vmatpush1.bf16.msra.mxu1 %v6220_v43  ;;  %v3850_v15 = vld [vmem:[#allocation6 + $0x3b8] sm:$0xff]  ;;  %v6290_v43 = vcombine.low %v3853_v10, %v3857_v25  ;;  %v3797_v25 = vld [vmem:[#allocation6 + $0x210] sm:$0xff] }
 0x921   : > { %4631 = vmatprep.subr.bf16.mxu0 %v6211_v7  ;;  %4674 = vmatprep.subr.bf16.mxu1 %v6213_v1  ;;  %v6292_v7 = vcombine.low %v3854_v33, %v3858_v40  ;;  %v6283_v1 = vcombine.high %v3845_v56, %v3849_v46  ;;  %v6285_v47 = vcombine.high %v3846_v4, %v3850_v15  ;;  %v3801_v33 = vld [vmem:[#allocation6 + $0x230] sm:$0xff]  ;;  %v3798_v40 = vld [vmem:[#allocation6 + $0x218] sm:$0xff] }
 0x924   : > { %4632 = vmatpush1.bf16.msra.mxu0 %v6210_v57  ;;  %4675 = vmatpush1.bf16.msra.mxu1 %v6212_v18  ;;  %v3842_v57 = vld [vmem:[#allocation6 + $0x378] sm:$0xff]  ;;  %v6282_v18 = vcombine.low %v3845_v56, %v3849_v46  ;;  %v6234_v46 = vcombine.low %v3797_v25, %v3801_v33 }
 0x925   : > { %4633 = vmatprep.subr.bf16.mxu0 %v6203_v16  ;;  %4676 = vmatprep.subr.bf16.mxu1 %v6205_v49  ;;  %v6284_v16 = vcombine.low %v3846_v4, %v3850_v15  ;;  %v6275_v49 = vcombine.high %v3837_v30, %v3841_v45  ;;  %v6277_v55 = vcombine.high %v3838_v61, %v3842_v57  ;;  %v6883_v15 = vld [vmem:[%s9559_s18 + $0x74] ss:$8 sps:$4 sm:$0xff]  }
 0x928   : > { %4634 = vmatpush1.bf16.msra.mxu0 %v6202_v39  ;;  %4677 = vmatpush1.bf16.msra.mxu1 %v6204_v50  ;;  %v3834_v39 = vld [vmem:[#allocation6 + $0x338] sm:$0xff]  ;;  %v6274_v50 = vcombine.low %v3837_v30, %v3841_v45  ;;  %v6892_v30 = vld [vmem:[%s9559_s18 + $0x164] ss:$8 sps:$4 sm:$0xff]   ;;  %v6887_v45 = vld [vmem:[%s9559_s18 + $0x60] ss:$8 sps:$4 sm:$0xff]  }
 0x929   : > { %4635 = vmatprep.subr.bf16.mxu0 %v6195_v31  ;;  %4678 = vmatprep.subr.bf16.mxu1 %v6197_v14  ;;  %v6276_v31 = vcombine.low %v3838_v61, %v3842_v57  ;;  %v6267_v14 = vcombine.high %v3829_v48, %v3833_v0  ;;  %v6269_v51 = vcombine.high %v3830_v26, %v3834_v39  ;;  %v6890_v61 = vld [vmem:[%s9559_s18 + $0x160] ss:$8 sps:$4 sm:$0xff]   ;;  %v6895_v57 = vld [vmem:[%s9559_s18 + $0x54] ss:$8 sps:$4 sm:$0xff]  }
 0x92c   : > { %4636 = vmatpush1.bf16.msra.mxu0 %v6194_v24  ;;  %4679 = vmatpush1.bf16.msra.mxu1 %v6196_v52  ;;  %v3826_v24 = vld [vmem:[#allocation6 + $0x2f8] sm:$0xff]  ;;  %v6266_v52 = vcombine.low %v3829_v48, %v3833_v0  ;;  %v6899_v48 = vld [vmem:[%s9559_s18 + $0x40] ss:$8 sps:$4 sm:$0xff]  }
 0x92d   : > { %4637 = vmatprep.subr.bf16.mxu0 %v6187_v60  ;;  %4680 = vmatprep.subr.bf16.mxu1 %v6189_v62  ;;  %v6268_v60 = vcombine.low %v3830_v26, %v3834_v39  ;;  %v6259_v62 = vcombine.high %v3821_v27, %v3825_v13  ;;  %v6261_v2 = vcombine.high %v3822_v36, %v3826_v24  ;;  %v6902_v0 = vld [vmem:[%s9559_s18 + $0x140] ss:$8 sps:$4 sm:$0xff]   ;;  %v6907_v26 = vld [vmem:[%s9559_s18 + $0x34] ss:$8 sps:$4 sm:$0xff]  }
 0x92e   : > { %v6910_v39 = vld [vmem:[%s9559_s18 + $0x134] ss:$8 sps:$4 sm:$0xff]  }
 0x930   : > { %4638 = vmatpush1.bf16.msra.mxu0 %v6186_v19  ;;  %4681 = vmatpush1.bf16.msra.mxu1 %v6188_v21  ;;  %v3818_v19 = vld [vmem:[#allocation6 + $0x2b8] sm:$0xff]  ;;  %v6258_v21 = vcombine.low %v3821_v27, %v3825_v13  ;;  %v6911_v27 = vld [vmem:[%s9559_s18 + $0x20] ss:$8 sps:$4 sm:$0xff]  }
 0x931   : > { %4639 = vmatprep.subr.bf16.mxu0 %v6179_v22  ;;  %4682 = vmatprep.subr.bf16.mxu1 %v6181_v37  ;;  %v6260_v22 = vcombine.low %v3822_v36, %v3826_v24  ;;  %v6251_v37 = vcombine.high %v3813_v6, %v3817_v8  ;;  %v6253_v53 = vcombine.high %v3814_v12, %v3818_v19  ;;  %v6914_v13 = vld [vmem:[%s9559_s18 + $0x120] ss:$8 sps:$4 sm:$0xff]   ;;  %v6919_v36 = vld [vmem:[%s9559_s18 + $0x14] ss:$8 sps:$4 sm:$0xff]  }
 0x932   : > { %v6922_v24 = vld [vmem:[%s9559_s18 + $0x114] ss:$8 sps:$4 sm:$0xff]  }
 0x934   : > { %4640 = vmatpush1.bf16.msra.mxu0 %v6178_v42  ;;  %4683 = vmatpush1.bf16.msra.mxu1 %v6180_v23  ;;  %v3810_v42 = vld [vmem:[#allocation6 + $0x278] sm:$0xff]  ;;  %v6250_v23 = vcombine.low %v3813_v6, %v3817_v8  ;;  %v6923_v6 = vld [vmem:[%s9559_s18] ss:$8 sps:$4 sm:$0xff]  }
 0x935   : > { %4641 = vmatprep.subr.bf16.mxu0 %v6171_v9  ;;  %4684 = vmatprep.subr.bf16.mxu1 %v6173_v17  ;;  %v6252_v9 = vcombine.low %v3814_v12, %v3818_v19  ;;  %v6243_v17 = vcombine.high %v3805_v3, %v3809_v29  ;;  %v6245_v10 = vcombine.high %v3806_v41, %v3810_v42  ;;  %v6926_v8 = vld [vmem:[%s9559_s18 + $0x100] ss:$8 sps:$4 sm:$0xff]   ;;  %v6931_v12 = vld [vmem:[%s9559_s18 + $0xf4] ss:$8 sps:$4 sm:$0xff]  }
 0x936   : > { %v6934_v19 = vld [vmem:[%s9559_s18 + $0x1f4] ss:$8 sps:$4 sm:$0xff]  }
 0x938   : > { %4642 = vmatpush1.bf16.msra.mxu0 %v6170_v35  ;;  %4685 = vmatpush1.bf16.msra.mxu1 %v6172_v38  ;;  %v3802_v35 = vld [vmem:[#allocation6 + $0x238] sm:$0xff]  ;;  %v6242_v38 = vcombine.low %v3805_v3, %v3809_v29  ;;  %v6935_v3 = vld [vmem:[%s9559_s18 + $0xe0] ss:$8 sps:$4 sm:$0xff]  }
 0x939   : > { %4643 = vmatprep.subr.bf16.mxu0 %v6291_v44  ;;  %4686 = vmatprep.subr.bf16.mxu1 %v6293_v54  ;;  %v6244_v44 = vcombine.low %v3806_v41, %v3810_v42  ;;  %v6235_v54 = vcombine.high %v3797_v25, %v3801_v33  ;;  %v6237_v56 = vcombine.high %v3798_v40, %v3802_v35  ;;  %v6938_v29 = vld [vmem:[%s9559_s18 + $0x1e0] ss:$8 sps:$4 sm:$0xff]   ;;  %v6943_v41 = vld [vmem:[%s9559_s18 + $0xd4] ss:$8 sps:$4 sm:$0xff]  }
 0x93a   : > { %v6236_v4 = vcombine.low %v3798_v40, %v3802_v35  ;;  %v6946_v42 = vld [vmem:[%s9559_s18 + $0x1d4] ss:$8 sps:$4 sm:$0xff]   ;;  %v6947_v25 = vld [vmem:[%s9559_s18 + $0xc0] ss:$8 sps:$4 sm:$0xff]  }
 0x93b   : > { %v6950_v33 = vld [vmem:[%s9559_s18 + $0x1c0] ss:$8 sps:$4 sm:$0xff]   ;;  %v6955_v40 = vld [vmem:[%s9559_s18 + $0xb4] ss:$8 sps:$4 sm:$0xff]  }
 0x93c   : > { %4644 = vmatpush2.bf16.msra.mxu0 %v6290_v43  ;;  %4687 = vmatpush2.bf16.msra.mxu1 %v6292_v7  ;;  %v6886_v43 = vld [vmem:[%s9559_s18 + $0x174] ss:$8 sps:$4 sm:$0xff]   ;;  %v6881_v7 = vld [vmem:[%s9559_s18 + $0x70] ss:$8 sps:$4 sm:$0xff]  }
 0x93d   : > { %4645 = vmatprep.subr.bf16.mxu0 %v6283_v1  ;;  %4688 = vmatprep.subr.bf16.mxu1 %v6285_v47  ;;  %v6884_v1 = vld [vmem:[%s9559_s18 + $0x170] ss:$8 sps:$4 sm:$0xff]   ;;  %v6889_v47 = vld [vmem:[%s9559_s18 + $0x64] ss:$8 sps:$4 sm:$0xff]   ;;  %v6958_v35 = vld [vmem:[%s9559_s18 + $0x1b4] ss:$8 sps:$4 sm:$0xff]  }
 0x940   : > { %4646 = vmatpush2.bf16.msra.mxu0 %v6282_v18  ;;  %4689 = vmatpush2.bf16.msra.mxu1 %v6284_v16  ;;  %v6893_v18 = vld [vmem:[%s9559_s18 + $0x50] ss:$8 sps:$4 sm:$0xff]  }
 0x941   : > { %4647 = vmatprep.subr.bf16.mxu0 %v6275_v49  ;;  %4690 = vmatprep.subr.bf16.mxu1 %v6277_v55  ;;  %v6896_v16 = vld [vmem:[%s9559_s18 + $0x150] ss:$8 sps:$4 sm:$0xff]   ;;  %v6901_v49 = vld [vmem:[%s9559_s18 + $0x44] ss:$8 sps:$4 sm:$0xff]  }
 0x942   : > { %v6904_v55 = vld [vmem:[%s9559_s18 + $0x144] ss:$8 sps:$4 sm:$0xff]  }
 0x944   : > { %4648 = vmatpush2.bf16.msra.mxu0 %v6274_v50  ;;  %4691 = vmatpush2.bf16.msra.mxu1 %v6276_v31  ;;  %v6905_v50 = vld [vmem:[%s9559_s18 + $0x30] ss:$8 sps:$4 sm:$0xff]  }
 0x945   : > { %4649 = vmatprep.subr.bf16.mxu0 %v6267_v14  ;;  %4692 = vmatprep.subr.bf16.mxu1 %v6269_v51  ;;  %v6908_v31 = vld [vmem:[%s9559_s18 + $0x130] ss:$8 sps:$4 sm:$0xff]   ;;  %v6913_v14 = vld [vmem:[%s9559_s18 + $0x24] ss:$8 sps:$4 sm:$0xff]  }
 0x946   : > { %v6916_v51 = vld [vmem:[%s9559_s18 + $0x124] ss:$8 sps:$4 sm:$0xff]  }
 0x948   : > { %4650 = vmatpush2.bf16.msra.mxu0 %v6266_v52  ;;  %4693 = vmatpush2.bf16.msra.mxu1 %v6268_v60  ;;  %v6917_v52 = vld [vmem:[%s9559_s18 + $0x10] ss:$8 sps:$4 sm:$0xff]  }
 0x949   : > { %4651 = vmatprep.subr.bf16.mxu0 %v6259_v62  ;;  %4694 = vmatprep.subr.bf16.mxu1 %v6261_v2  ;;  %v6920_v60 = vld [vmem:[%s9559_s18 + $0x110] ss:$8 sps:$4 sm:$0xff]   ;;  %v6925_v62 = vld [vmem:[%s9559_s18 + $0x4] ss:$8 sps:$4 sm:$0xff]  }
 0x94a   : > { %v6928_v2 = vld [vmem:[%s9559_s18 + $0x104] ss:$8 sps:$4 sm:$0xff]  }
 0x94c   : > { %4652 = vmatpush2.bf16.msra.mxu0 %v6258_v21  ;;  %4695 = vmatpush2.bf16.msra.mxu1 %v6260_v22  ;;  %v6929_v21 = vld [vmem:[%s9559_s18 + $0xf0] ss:$8 sps:$4 sm:$0xff]  }
 0x94d   : > { %4653 = vmatprep.subr.bf16.mxu0 %v6251_v37  ;;  %4696 = vmatprep.subr.bf16.mxu1 %v6253_v53  ;;  %v6932_v22 = vld [vmem:[%s9559_s18 + $0x1f0] ss:$8 sps:$4 sm:$0xff]   ;;  %v6937_v37 = vld [vmem:[%s9559_s18 + $0xe4] ss:$8 sps:$4 sm:$0xff]  }
 0x94e   : > { %v6940_v53 = vld [vmem:[%s9559_s18 + $0x1e4] ss:$8 sps:$4 sm:$0xff]  }
 0x950   : > { %4654 = vmatpush2.bf16.msra.mxu0 %v6250_v23  ;;  %4697 = vmatpush2.bf16.msra.mxu1 %v6252_v9  ;;  %v6941_v23 = vld [vmem:[%s9559_s18 + $0xd0] ss:$8 sps:$4 sm:$0xff]  }
 0x951   : > { %4655 = vmatprep.subr.bf16.mxu0 %v6243_v17  ;;  %4698 = vmatprep.subr.bf16.mxu1 %v6245_v10  ;;  %v6944_v9 = vld [vmem:[%s9559_s18 + $0x1d0] ss:$8 sps:$4 sm:$0xff]   ;;  %v6949_v17 = vld [vmem:[%s9559_s18 + $0xc4] ss:$8 sps:$4 sm:$0xff]  }
 0x952   : > { %v6952_v10 = vld [vmem:[%s9559_s18 + $0x1c4] ss:$8 sps:$4 sm:$0xff]  }
 0x954   : > { %4656 = vmatpush2.bf16.msra.mxu0 %v6242_v38  ;;  %4699 = vmatpush2.bf16.msra.mxu1 %v6244_v44  ;;  %v6953_v38 = vld [vmem:[%s9559_s18 + $0xb0] ss:$8 sps:$4 sm:$0xff]  }
 0x955   : > { %4657 = vmatprep.subr.bf16.mxu0 %v6235_v54  ;;  %4700 = vmatprep.subr.bf16.mxu1 %v6237_v56  ;;  %v6956_v44 = vld [vmem:[%s9559_s18 + $0x1b0] ss:$8 sps:$4 sm:$0xff]   ;;  %v6961_v54 = vld [vmem:[%s9559_s18 + $0xa4] ss:$8 sps:$4 sm:$0xff]  }
 0x956   : > { %v6964_v56 = vld [vmem:[%s9559_s18 + $0x1a4] ss:$8 sps:$4 sm:$0xff]  }
 0x958   : > { %4658 = vmatpush2.bf16.msra.mxu0 %v6234_v46  ;;  %4701 = vmatpush2.bf16.msra.mxu1 %v6236_v4  ;;  %v6959_v46 = vld [vmem:[%s9559_s18 + $0xa0] ss:$8 sps:$4 sm:$0xff]  }
 0x959   : > { %5517 = vmatprep.subr.bf16.mxu0 %v6883_v15  ;;  %5560 = vmatprep.subr.bf16.mxu1 %v6886_v43  ;;  %v6962_v4 = vld [vmem:[%s9559_s18 + $0x1a0] ss:$8 sps:$4 sm:$0xff]   ;;  %v6967_v15 = vld [vmem:[%s9559_s18 + $0x94] ss:$8 sps:$4 sm:$0xff]  }
 0x95a   : > { %v6970_v43 = vld [vmem:[%s9559_s18 + $0x194] ss:$8 sps:$4 sm:$0xff]  }
 0x95b   : > { %4660 = vmatmul.mubr.bf16.vlgmr.msra.gmra.mxu0 %v9094_v34  ;;  %4703 = vmatmul.mubr.bf16.vlgmr.msra.gmra.mxu1 %v9094_v34  ;;  %v6898_v34 = vld [vmem:[%s9559_s18 + $0x154] ss:$8 sps:$4 sm:$0xff]  }
 0x95c   : > { %5518 = vmatpush1.bf16.msra.mxu0 %v6881_v7  ;;  %5561 = vmatpush1.bf16.msra.mxu1 %v6884_v1  ;;  %v6965_v7 = vld [vmem:[%s9559_s18 + $0x90] ss:$8 sps:$4 sm:$0xff]  }
 0x95d   : > { %5519 = vmatprep.subr.bf16.mxu0 %v6889_v47  ;;  %5562 = vmatprep.subr.bf16.mxu1 %v6892_v30  ;;  %v6968_v1 = vld [vmem:[%s9559_s18 + $0x190] ss:$8 sps:$4 sm:$0xff]   ;;  %v6973_v47 = vld [vmem:[%s9559_s18 + $0x84] ss:$8 sps:$4 sm:$0xff]  }
 0x95e   : > { %v6976_v30 = vld [vmem:[%s9559_s18 + $0x184] ss:$8 sps:$4 sm:$0xff]  }
 0x960   : > { %5520 = vmatpush1.bf16.msra.mxu0 %v6887_v45  ;;  %5563 = vmatpush1.bf16.msra.mxu1 %v6890_v61  ;;  %v6971_v45 = vld [vmem:[%s9559_s18 + $0x80] ss:$8 sps:$4 sm:$0xff]  }
 0x961   : > { %5521 = vmatprep.subr.bf16.mxu0 %v6895_v57  ;;  %5564 = vmatprep.subr.bf16.mxu1 %v6898_v34  ;;  %v6974_v61 = vld [vmem:[%s9559_s18 + $0x180] ss:$8 sps:$4 sm:$0xff]   ;;  %v6979_v57 = vld [vmem:[%s9559_s18 + $0x274] ss:$8 sps:$4 sm:$0xff]  }
 0x962   : > { %v6982_v34 = vld [vmem:[%s9559_s18 + $0x374] ss:$8 sps:$4 sm:$0xff]  }
 0x964   : > { %5522 = vmatpush1.bf16.msra.mxu0 %v6893_v18  ;;  %5565 = vmatpush1.bf16.msra.mxu1 %v6896_v16  ;;  %v9301_v18 = vld [vmem:[%s9558_s17] sm:$0xff] }
 0x965   : > { %5523 = vmatprep.subr.bf16.mxu0 %v6901_v49  ;;  %5566 = vmatprep.subr.bf16.mxu1 %v6904_v55  ;;  %v3868_v55 = vrot.slane %v9301_v18, %v9867_v5 }
 0x968   : > { %5524 = vmatpush1.bf16.msra.mxu0 %v6899_v48  ;;  %5567 = vmatpush1.bf16.msra.mxu1 %v6902_v0  ;;  %v9872_v48 = vld [vmem:[#allocation48_spill] sm:$0xff] }
 0x969   : > { %5525 = vmatprep.subr.bf16.mxu0 %v6907_v26  ;;  %5568 = vmatprep.subr.bf16.mxu1 %v6910_v39  ;;  %v3876_v0 = vrot.slane %v9301_v18, %v9872_v48  ;;  %v3864_v26 = vrot.slane %v9301_v18, %v9866_v63  ;;  %v9873_v39 = vld [vmem:[#allocation49_spill] sm:$0xff] }
 0x96a   : > { %v7013_v48 = vld [vmem:[%s9559_s18 + $0x210] ss:$8 sps:$4 sm:$0xff]  }
 0x96c   : > { %5526 = vmatpush1.bf16.msra.mxu0 %v6905_v50  ;;  %5569 = vmatpush1.bf16.msra.mxu1 %v6908_v31  ;;  %v3872_v50 = vrot.slane %v9301_v18, %v9873_v39  ;;  %v7024_v39 = vld [vmem:[%s9559_s18 + $0x304] ss:$8 sps:$4 sm:$0xff]  }
 0x96d   : > { %5527 = vmatprep.subr.bf16.mxu0 %v6913_v14  ;;  %5570 = vmatprep.subr.bf16.mxu1 %v6916_v51 }
 0x970   : > { %5528 = vmatpush1.bf16.msra.mxu0 %v6911_v27  ;;  %5571 = vmatpush1.bf16.msra.mxu1 %v6914_v13 }
 0x971   : > { %5529 = vmatprep.subr.bf16.mxu0 %v6919_v36  ;;  %5572 = vmatprep.subr.bf16.mxu1 %v6922_v24 }
 0x974   : > { %5530 = vmatpush1.bf16.msra.mxu0 %v6917_v52  ;;  %5573 = vmatpush1.bf16.msra.mxu1 %v6920_v60 }
 0x975   : > { %5531 = vmatprep.subr.bf16.mxu0 %v6925_v62  ;;  %5574 = vmatprep.subr.bf16.mxu1 %v6928_v2 }
 0x978   : > { %5532 = vmatpush1.bf16.msra.mxu0 %v6923_v6  ;;  %5575 = vmatpush1.bf16.msra.mxu1 %v6926_v8 }
 0x979   : > { %5533 = vmatprep.subr.bf16.mxu0 %v6931_v12  ;;  %5576 = vmatprep.subr.bf16.mxu1 %v6934_v19 }
 0x97c   : > { %5534 = vmatpush2.bf16.msra.mxu0 %v6929_v21  ;;  %5577 = vmatpush2.bf16.msra.mxu1 %v6932_v22 }
 0x97d   : > { %5535 = vmatprep.subr.bf16.mxu0 %v6937_v37  ;;  %5578 = vmatprep.subr.bf16.mxu1 %v6940_v53 }
 0x980   : > { %5536 = vmatpush2.bf16.msra.mxu0 %v6935_v3  ;;  %5579 = vmatpush2.bf16.msra.mxu1 %v6938_v29 }
 0x981   : > { %5537 = vmatprep.subr.bf16.mxu0 %v6943_v41  ;;  %5580 = vmatprep.subr.bf16.mxu1 %v6946_v42 }
 0x984   : > { %5538 = vmatpush2.bf16.msra.mxu0 %v6941_v23  ;;  %5581 = vmatpush2.bf16.msra.mxu1 %v6944_v9  ;;  %v6977_v9 = vld [vmem:[%s9559_s18 + $0x270] ss:$8 sps:$4 sm:$0xff]  }
 0x985   : > { %5539 = vmatprep.subr.bf16.mxu0 %v6949_v17  ;;  %5582 = vmatprep.subr.bf16.mxu1 %v6952_v10  ;;  %v6980_v17 = vld [vmem:[%s9559_s18 + $0x370] ss:$8 sps:$4 sm:$0xff]  }
 0x988   : > { %5540 = vmatpush2.bf16.msra.mxu0 %v6947_v25  ;;  %5583 = vmatpush2.bf16.msra.mxu1 %v6950_v33  ;;  %v6985_v33 = vld [vmem:[%s9559_s18 + $0x264] ss:$8 sps:$4 sm:$0xff]  }
 0x989   : > { %5541 = vmatprep.subr.bf16.mxu0 %v6955_v40  ;;  %5584 = vmatprep.subr.bf16.mxu1 %v6958_v35  ;;  %v6988_v40 = vld [vmem:[%s9559_s18 + $0x364] ss:$8 sps:$4 sm:$0xff]   ;;  %v6983_v35 = vld [vmem:[%s9559_s18 + $0x260] ss:$8 sps:$4 sm:$0xff]  }
 0x98c   : > { %5542 = vmatpush2.bf16.msra.mxu0 %v6953_v38  ;;  %5585 = vmatpush2.bf16.msra.mxu1 %v6956_v44  ;;  %v6986_v38 = vld [vmem:[%s9559_s18 + $0x360] ss:$8 sps:$4 sm:$0xff]   ;;  %v6991_v44 = vld [vmem:[%s9559_s18 + $0x254] ss:$8 sps:$4 sm:$0xff]  }
 0x98d   : > { %5543 = vmatprep.subr.bf16.mxu0 %v6961_v54  ;;  %5586 = vmatprep.subr.bf16.mxu1 %v6964_v56  ;;  %v6994_v54 = vld [vmem:[%s9559_s18 + $0x354] ss:$8 sps:$4 sm:$0xff]   ;;  %v6989_v56 = vld [vmem:[%s9559_s18 + $0x250] ss:$8 sps:$4 sm:$0xff]  }
 0x990   : > { %5544 = vmatpush2.bf16.msra.mxu0 %v6959_v46  ;;  %5587 = vmatpush2.bf16.msra.mxu1 %v6962_v4  ;;  %v6992_v46 = vld [vmem:[%s9559_s18 + $0x350] ss:$8 sps:$4 sm:$0xff]   ;;  %v6997_v4 = vld [vmem:[%s9559_s18 + $0x244] ss:$8 sps:$4 sm:$0xff]  }
 0x991   : > { %5545 = vmatprep.subr.bf16.mxu0 %v6967_v15  ;;  %5588 = vmatprep.subr.bf16.mxu1 %v6970_v43  ;;  %v7000_v15 = vld [vmem:[%s9559_s18 + $0x344] ss:$8 sps:$4 sm:$0xff]   ;;  %v6995_v43 = vld [vmem:[%s9559_s18 + $0x240] ss:$8 sps:$4 sm:$0xff]  }
 0x994   : > { %5546 = vmatpush2.bf16.msra.mxu0 %v6965_v7  ;;  %5589 = vmatpush2.bf16.msra.mxu1 %v6968_v1  ;;  %v6998_v7 = vld [vmem:[%s9559_s18 + $0x340] ss:$8 sps:$4 sm:$0xff]   ;;  %v7003_v1 = vld [vmem:[%s9559_s18 + $0x234] ss:$8 sps:$4 sm:$0xff]  }
 0x995   : > { %5547 = vmatprep.subr.bf16.mxu0 %v6973_v47  ;;  %5590 = vmatprep.subr.bf16.mxu1 %v6976_v30  ;;  %v7006_v47 = vld [vmem:[%s9559_s18 + $0x334] ss:$8 sps:$4 sm:$0xff]   ;;  %v7001_v30 = vld [vmem:[%s9559_s18 + $0x230] ss:$8 sps:$4 sm:$0xff]  }
 0x998   : > { %5548 = vmatpush2.bf16.msra.mxu0 %v6971_v45  ;;  %5591 = vmatpush2.bf16.msra.mxu1 %v6974_v61  ;;  %v7004_v45 = vld [vmem:[%s9559_s18 + $0x330] ss:$8 sps:$4 sm:$0xff]   ;;  %v7009_v61 = vld [vmem:[%s9559_s18 + $0x224] ss:$8 sps:$4 sm:$0xff]  }
 0x999   : > { %5603 = vmatprep.subr.bf16.mxu0 %v6979_v57  ;;  %5646 = vmatprep.subr.bf16.mxu1 %v6982_v34  ;;  %v7012_v57 = vld [vmem:[%s9559_s18 + $0x324] ss:$8 sps:$4 sm:$0xff]   ;;  %v7007_v34 = vld [vmem:[%s9559_s18 + $0x220] ss:$8 sps:$4 sm:$0xff]  }
 0x9db   : > { %v4575_v16 = vpop.f32.mrf.mxu0  ;;  %v4618_v49 = vpop.f32.mrf.mxu1 }
 0x9dc   : > { %v4576_v60 = vadd.f32 %v4575_v16, %v3864_v26  ;;  %v4619_v62 = vadd.f32 %v4618_v49, %v3872_v50  ;;  %v7010_v16 = vld [vmem:[%s9559_s18 + $0x320] ss:$8 sps:$4 sm:$0xff]   ;;  %v7015_v49 = vld [vmem:[%s9559_s18 + $0x214] ss:$8 sps:$4 sm:$0xff]  }
 0x9dd   : > { %v4577_v31 = vpop.f32.mrf.mxu0  ;;  %v4620_v14 = vpop.f32.mrf.mxu1 }
 0x9de   : > { %v4578_v13 = vadd.f32 %v4577_v31, %v3868_v55  ;;  %v4621_v36 = vadd.f32 %v4620_v14, %v3876_v0  ;;  %v4713_v29 = vmax.f32 %v4576_v60, 0.0  ;;  %v4715_v41 = vmax.f32 %v4619_v62, 0.0  ;;  %v7022_v31 = vld [vmem:[%s9559_s18 + $0x300] ss:$8 sps:$4 sm:$0xff]   ;;  %v7027_v14 = vld [vmem:[%s9559_s18 + $0x2f4] ss:$8 sps:$4 sm:$0xff]  }
 0x9df   : > { %v4579_v51 = vpop.f32.mrf.mxu0  ;;  %v4622_v27 = vpop.f32.mrf.mxu1  ;;  %v7034_v60 = vld [vmem:[%s9559_s18 + $0x3e0] ss:$8 sps:$4 sm:$0xff]   ;;  %v7039_v62 = vld [vmem:[%s9559_s18 + $0x2d4] ss:$8 sps:$4 sm:$0xff]  }
 0x9e0   : > { %v4580_v24 = vadd.f32 %v4579_v51, %v3864_v26  ;;  %v4623_v52 = vadd.f32 %v4622_v27, %v3872_v50  ;;  %v4714_v22 = vmax.f32 %v4578_v13, 0.0  ;;  %v4716_v37 = vmax.f32 %v4621_v36, 0.0  ;;  %v7021_v26 = vld [vmem:[%s9559_s18 + $0x204] ss:$8 sps:$4 sm:$0xff]   ;;  %v7019_v50 = vld [vmem:[%s9559_s18 + $0x200] ss:$8 sps:$4 sm:$0xff]  }
 0x9e1   : > { %v4581_v2 = vpop.f32.mrf.mxu0  ;;  %v4624_v6 = vpop.f32.mrf.mxu1  ;;  %v7030_v51 = vld [vmem:[%s9559_s18 + $0x3f4] ss:$8 sps:$4 sm:$0xff]   ;;  %v7025_v27 = vld [vmem:[%s9559_s18 + $0x2f0] ss:$8 sps:$4 sm:$0xff]   ;;  %v7033_v36 = vld [vmem:[%s9559_s18 + $0x2e4] ss:$8 sps:$4 sm:$0xff]  }
 0x9e2   : > { %v4582_v8 = vadd.f32 %v4581_v2, %v3868_v55  ;;  %v4625_v12 = vadd.f32 %v4624_v6, %v3876_v0  ;;  %v4721_v19 = vmax.f32 %v4580_v24, 0.0  ;;  %v4723_v21 = vmax.f32 %v4623_v52, 0.0  ;;  %v7018_v55 = vld [vmem:[%s9559_s18 + $0x314] ss:$8 sps:$4 sm:$0xff]   ;;  %v7016_v0 = vld [vmem:[%s9559_s18 + $0x310] ss:$8 sps:$4 sm:$0xff]  }
 0x9e3   : > { %v7028_v13 = vld [vmem:[%s9559_s18 + $0x3f0] ss:$8 sps:$4 sm:$0xff]   ;;  %v7036_v24 = vld [vmem:[%s9559_s18 + $0x3e4] ss:$8 sps:$4 sm:$0xff]   ;;  %v7031_v52 = vld [vmem:[%s9559_s18 + $0x2e0] ss:$8 sps:$4 sm:$0xff]  }
 0x9e4   : > { %v4722_v53 = vmax.f32 %v4582_v8, 0.0  ;;  %v4724_v3 = vmax.f32 %v4625_v12, 0.0  ;;  %v4729_v10 = vpack.c.bf16 %v4721_v19, %v4713_v29  ;;  %v4731_v25 = vpack.c.bf16 %v4723_v21, %v4715_v41  ;;  %v7042_v2 = vld [vmem:[%s9559_s18 + $0x3d4] ss:$8 sps:$4 sm:$0xff]   ;;  %v7037_v6 = vld [vmem:[%s9559_s18 + $0x2d0] ss:$8 sps:$4 sm:$0xff]  }
 0x9e5   : > { %v7040_v8 = vld [vmem:[%s9559_s18 + $0x3d0] ss:$8 sps:$4 sm:$0xff]   ;;  %v7045_v12 = vld [vmem:[%s9559_s18 + $0x2c4] ss:$8 sps:$4 sm:$0xff]   ;;  %v7043_v21 = vld [vmem:[%s9559_s18 + $0x2c0] ss:$8 sps:$4 sm:$0xff]  }
 0x9e6   : > { %v4730_v42 = vpack.c.bf16 %v4722_v53, %v4714_v22  ;;  %v4732_v23 = vpack.c.bf16 %v4724_v3, %v4716_v37  ;;  %v7048_v19 = vld [vmem:[%s9559_s18 + $0x3c4] ss:$8 sps:$4 sm:$0xff]   ;;  %v7046_v22 = vld [vmem:[%s9559_s18 + $0x3c0] ss:$8 sps:$4 sm:$0xff]   ;;  %v7051_v37 = vld [vmem:[%s9559_s18 + $0x2b4] ss:$8 sps:$4 sm:$0xff]  }
 0x9e7   : > { %v7054_v53 = vld [vmem:[%s9559_s18 + $0x3b4] ss:$8 sps:$4 sm:$0xff]   ;;  %v7049_v3 = vld [vmem:[%s9559_s18 + $0x2b0] ss:$8 sps:$4 sm:$0xff]   ;;  %v7057_v41 = vld [vmem:[%s9559_s18 + $0x2a4] ss:$8 sps:$4 sm:$0xff]  }
 0x9e8   : > { %5549 = vmatprep.mubr.bf16.mxu0 %v4730_v42  ;;  %5592 = vmatprep.mubr.bf16.mxu1 %v4732_v23  ;;  %v7052_v29 = vld [vmem:[%s9559_s18 + $0x3b0] ss:$8 sps:$4 sm:$0xff]   ;;  %v7060_v42 = vld [vmem:[%s9559_s18 + $0x3a4] ss:$8 sps:$4 sm:$0xff]  }
 0x9e9   : > { %5550 = vmatmul.mubr.bf16.vlgmr.msra.gmra.mxu0 %v4729_v10  ;;  %5593 = vmatmul.mubr.bf16.vlgmr.msra.gmra.mxu1 %v4731_v25  ;;  %v9874_v23 = vld [vmem:[#allocation45_spill] sm:$0xff]  ;;  %v7055_v10 = vld [vmem:[%s9559_s18 + $0x2a0] ss:$8 sps:$4 sm:$0xff]  }
 0x9ea   : > { %5604 = vmatpush1.bf16.msra.mxu0 %v6977_v9  ;;  %5647 = vmatpush1.bf16.msra.mxu1 %v6980_v17  ;;  %v3891_v9 = vsub.s32 7, %v9874_v23  ;;  %v3887_v17 = vsub.s32 6, %v9874_v23  ;;  %v7058_v25 = vld [vmem:[%s9559_s18 + $0x3a0] ss:$8 sps:$4 sm:$0xff]  }
 0x9eb   : > { %5605 = vmatprep.subr.bf16.mxu0 %v6985_v33  ;;  %5648 = vmatprep.subr.bf16.mxu1 %v6988_v40 }
 0x9ee   : > { %5606 = vmatpush1.bf16.msra.mxu0 %v6983_v35  ;;  %5649 = vmatpush1.bf16.msra.mxu1 %v6986_v38  ;;  %v7063_v35 = vld [vmem:[%s9559_s18 + $0x294] ss:$8 sps:$4 sm:$0xff]  }
 0x9ef   : > { %5607 = vmatprep.subr.bf16.mxu0 %v6991_v44  ;;  %5650 = vmatprep.subr.bf16.mxu1 %v6994_v54  ;;  %v7066_v38 = vld [vmem:[%s9559_s18 + $0x394] ss:$8 sps:$4 sm:$0xff]   ;;  %v3884_v44 = vrot.slane %v9301_v18, %v9865_v11  ;;  %v3892_v54 = vrot.slane %v9301_v18, %v3891_v9 }
 0x9f2   : > { %5608 = vmatpush1.bf16.msra.mxu0 %v6989_v56  ;;  %5651 = vmatpush1.bf16.msra.mxu1 %v6992_v46  ;;  %v3880_v56 = vrot.slane %v9301_v18, %v9864_v58  ;;  %v3888_v46 = vrot.slane %v9301_v18, %v3887_v17  ;;  %v7069_v58 = vld [vmem:[%s9559_s18 + $0x284] ss:$8 sps:$4 sm:$0xff]  }
 0x9f3   : > { %5609 = vmatprep.subr.bf16.mxu0 %v6997_v4  ;;  %5652 = vmatprep.subr.bf16.mxu1 %v7000_v15  ;;  %v7072_v18 = vld [vmem:[%s9559_s18 + $0x384] ss:$8 sps:$4 sm:$0xff]  }
 0x9f6   : > { %5610 = vmatpush1.bf16.msra.mxu0 %v6995_v43  ;;  %5653 = vmatpush1.bf16.msra.mxu1 %v6998_v7  ;;  %v7061_v43 = vld [vmem:[%s9559_s18 + $0x290] ss:$8 sps:$4 sm:$0xff]  }
 0x9f7   : > { %5611 = vmatprep.subr.bf16.mxu0 %v7003_v1  ;;  %5654 = vmatprep.subr.bf16.mxu1 %v7006_v47  ;;  %v7064_v7 = vld [vmem:[%s9559_s18 + $0x390] ss:$8 sps:$4 sm:$0xff]  }
 0x9fa   : > { %5612 = vmatpush1.bf16.msra.mxu0 %v7001_v30  ;;  %5655 = vmatpush1.bf16.msra.mxu1 %v7004_v45 }
 0x9fb   : > { %5613 = vmatprep.subr.bf16.mxu0 %v7009_v61  ;;  %5656 = vmatprep.subr.bf16.mxu1 %v7012_v57 }
 0x9fe   : > { %5614 = vmatpush1.bf16.msra.mxu0 %v7007_v34  ;;  %5657 = vmatpush1.bf16.msra.mxu1 %v7010_v16 }
 0x9ff   : > { %5615 = vmatprep.subr.bf16.mxu0 %v7015_v49  ;;  %5658 = vmatprep.subr.bf16.mxu1 %v7018_v55 }
 0xa02   : > { %5616 = vmatpush1.bf16.msra.mxu0 %v7013_v48  ;;  %5659 = vmatpush1.bf16.msra.mxu1 %v7016_v0  ;;  %v7067_v0 = vld [vmem:[%s9559_s18 + $0x280] ss:$8 sps:$4 sm:$0xff]  }
 0xa03   : > { %5617 = vmatprep.subr.bf16.mxu0 %v7021_v26  ;;  %5660 = vmatprep.subr.bf16.mxu1 %v7024_v39  ;;  %v7070_v26 = vld [vmem:[%s9559_s18 + $0x380] ss:$8 sps:$4 sm:$0xff]  }
 0xa06   : > { %5618 = vmatpush1.bf16.msra.mxu0 %v7019_v50  ;;  %5661 = vmatpush1.bf16.msra.mxu1 %v7022_v31 }
 0xa07   : > { %5619 = vmatprep.subr.bf16.mxu0 %v7027_v14  ;;  %5662 = vmatprep.subr.bf16.mxu1 %v7030_v51 }
 0xa0a   : > { %5620 = vmatpush2.bf16.msra.mxu0 %v7025_v27  ;;  %5663 = vmatpush2.bf16.msra.mxu1 %v7028_v13 }
 0xa0b   : > { %5621 = vmatprep.subr.bf16.mxu0 %v7033_v36  ;;  %5664 = vmatprep.subr.bf16.mxu1 %v7036_v24 }
 0xa0e   : > { %5622 = vmatpush2.bf16.msra.mxu0 %v7031_v52  ;;  %5665 = vmatpush2.bf16.msra.mxu1 %v7034_v60 }
 0xa0f   : > { %5623 = vmatprep.subr.bf16.mxu0 %v7039_v62  ;;  %5666 = vmatprep.subr.bf16.mxu1 %v7042_v2 }
 0xa12   : > { %5624 = vmatpush2.bf16.msra.mxu0 %v7037_v6  ;;  %5667 = vmatpush2.bf16.msra.mxu1 %v7040_v8  ;;  %v4865_v8 = vld [vmem:[%s9560_s19] sm:$0x3] }
 0xa13   : > { %5625 = vmatprep.subr.bf16.mxu0 %v7045_v12  ;;  %5668 = vmatprep.subr.bf16.mxu1 %v7048_v19 }
 0xa16   : > { %5626 = vmatpush2.bf16.msra.mxu0 %v7043_v21  ;;  %5669 = vmatpush2.bf16.msra.mxu1 %v7046_v22  ;;  %v4870_v21 = vrot.slane %v4865_v8, %v9866_v63  ;;  %v4874_v22 = vrot.slane %v4865_v8, %v9867_v5 }
 0xa17   : > { %5627 = vmatprep.subr.bf16.mxu0 %v7051_v37  ;;  %5670 = vmatprep.subr.bf16.mxu1 %v7054_v53 }
 0xa1a   : > { %5628 = vmatpush2.bf16.msra.mxu0 %v7049_v3  ;;  %5671 = vmatpush2.bf16.msra.mxu1 %v7052_v29 }
 0xa1b   : > { %v4661_v33 = vpop.f32.mrf.mxu0  ;;  %v4704_v40 = vpop.f32.mrf.mxu1  ;;  %5629 = vmatprep.subr.bf16.mxu0 %v7057_v41  ;;  %5672 = vmatprep.subr.bf16.mxu1 %v7060_v42 }
 0xa1c   : > { %v4662_v57 = vadd.f32 %v4661_v33, %v3880_v56  ;;  %v4705_v34 = vadd.f32 %v4704_v40, %v3888_v46 }
 0xa1d   : > { %v4663_v4 = vpop.f32.mrf.mxu0  ;;  %v4706_v15 = vpop.f32.mrf.mxu1 }
 0xa1e   : > { %5630 = vmatpush2.bf16.msra.mxu0 %v7055_v10  ;;  %5673 = vmatpush2.bf16.msra.mxu1 %v7058_v25  ;;  %v4664_v47 = vadd.f32 %v4663_v4, %v3884_v44  ;;  %v4707_v30 = vadd.f32 %v4706_v15, %v3892_v54  ;;  %v4717_v13 = vmax.f32 %v4662_v57, 0.0  ;;  %v4719_v36 = vmax.f32 %v4705_v34, 0.0 }
 0xa1f   : > { %v4665_v11 = vpop.f32.mrf.mxu0  ;;  %v4708_v1 = vpop.f32.mrf.mxu1  ;;  %5631 = vmatprep.subr.bf16.mxu0 %v7063_v35  ;;  %5674 = vmatprep.subr.bf16.mxu1 %v7066_v38 }
 0xa20   : > { %v4666_v45 = vadd.f32 %v4665_v11, %v3880_v56  ;;  %v4709_v61 = vadd.f32 %v4708_v1, %v3888_v46  ;;  %v4718_v31 = vmax.f32 %v4664_v47, 0.0  ;;  %v4720_v14 = vmax.f32 %v4707_v30, 0.0 }
 0xa21   : > { %v4667_v16 = vpop.f32.mrf.mxu0  ;;  %v4710_v49 = vpop.f32.mrf.mxu1 }
 0xa22   : > { %v4668_v55 = vadd.f32 %v4667_v16, %v3884_v44  ;;  %v4711_v48 = vadd.f32 %v4710_v49, %v3892_v54  ;;  %5632 = vmatpush2.bf16.msra.mxu0 %v7061_v43  ;;  %5675 = vmatpush2.bf16.msra.mxu1 %v7064_v7  ;;  %v4725_v39 = vmax.f32 %v4666_v45, 0.0  ;;  %v4727_v50 = vmax.f32 %v4709_v61, 0.0 }
 0xa23   : > { %5633 = vmatprep.subr.bf16.mxu0 %v7069_v58  ;;  %5676 = vmatprep.subr.bf16.mxu1 %v7072_v18 }
 0xa24   : > { %v4726_v51 = vmax.f32 %v4668_v55, 0.0  ;;  %v4728_v27 = vmax.f32 %v4711_v48, 0.0  ;;  %v4733_v60 = vpack.c.bf16 %v4725_v39, %v4717_v13  ;;  %v4735_v62 = vpack.c.bf16 %v4727_v50, %v4719_v36 }
 0xa26   : > { %v4734_v24 = vpack.c.bf16 %v4726_v51, %v4718_v31  ;;  %v4736_v52 = vpack.c.bf16 %v4728_v27, %v4720_v14  ;;  %5634 = vmatpush2.bf16.msra.mxu0 %v7067_v0  ;;  %5677 = vmatpush2.bf16.msra.mxu1 %v7070_v26 }
 0xa28   : > { %5635 = vmatprep.mubr.bf16.mxu0 %v4734_v24  ;;  %5678 = vmatprep.mubr.bf16.mxu1 %v4736_v52 }
 0xa29   : > { %5636 = vmatmul.mubr.bf16.vlgmr.msra.gmra.mxu0 %v4733_v60  ;;  %5679 = vmatmul.mubr.bf16.vlgmr.msra.gmra.mxu1 %v4735_v62  ;;  %v5725_v62 = vld [vmem:[%s9561_s20] sm:$0x3] }
 0xa2a   : > { %v5734_v8 = vrot.slane %v5725_v62, %v9867_v5 }
 0xaa9   : > { %v5551_v2 = vpop.f32.mrf.mxu0  ;;  %v5594_v6 = vpop.f32.mrf.mxu1 }
 0xaaa   : > { %v5552_v3 = vadd.f32 %v5551_v2, %v4870_v21  ;;  %v5741_v2 = vld [vmem:[%s9562_s21] sm:$0x3] }
 0xaab   : > { %v5553_v12 = vpop.f32.mrf.mxu0  ;;  %v5596_v19 = vpop.f32.mrf.mxu1 }
 0xaac   : > { %v5554_v29 = vadd.f32 %v5553_v12, %v4874_v22  ;;  %v5595_v23 = vadd.f32 %v5594_v6, %v5552_v3  ;;  %v5730_v6 = vrot.slane %v5725_v62, %v9866_v63 }
 0xaad   : > { %v5555_v37 = vpop.f32.mrf.mxu0  ;;  %v5598_v53 = vpop.f32.mrf.mxu1 }
 0xaae   : > { %v5556_v9 = vadd.f32 %v5555_v37, %v4870_v21  ;;  %v5597_v25 = vadd.f32 %v5596_v19, %v5554_v29  ;;  %v5746_v19 = vrot.slane %v5741_v2, %v9866_v63  ;;  %v5750_v21 = vrot.slane %v5741_v2, %v9867_v5 }
 0xaaf   : > { %v5557_v41 = vpop.f32.mrf.mxu0  ;;  %v5600_v42 = vpop.f32.mrf.mxu1 }
 0xab0   : > { %v5558_v33 = vadd.f32 %v5557_v41, %v4874_v22  ;;  %v5599_v44 = vadd.f32 %v5598_v53, %v5556_v9 }
 0xab2   : > { %v5601_v15 = vadd.f32 %v5600_v42, %v5558_v33 }
 0xae9   : > { %v5637_v17 = vpop.f32.mrf.mxu0  ;;  %v5680_v10 = vpop.f32.mrf.mxu1 }
 0xaea   : > { %v5638_v40 = vadd.f32 %v5637_v17, %v5595_v23 }
 0xaeb   : > { %v5639_v35 = vpop.f32.mrf.mxu0  ;;  %v5682_v38 = vpop.f32.mrf.mxu1 }
 0xaec   : > { %v5681_v54 = vadd.f32 %v5680_v10, %v5638_v40  ;;  %v5640_v56 = vadd.f32 %v5639_v35, %v5597_v25 }
 0xaed   : > { %v5641_v46 = vpop.f32.mrf.mxu0  ;;  %v5684_v4 = vpop.f32.mrf.mxu1 }
 0xaee   : > { %v5683_v43 = vadd.f32 %v5682_v38, %v5640_v56  ;;  %v5642_v7 = vadd.f32 %v5641_v46, %v5599_v44  ;;  %v5689_v1 = vadd.f32 %v5681_v54, %v9086_v32 }
 0xaef   : > { %v5643_v11 = vpop.f32.mrf.mxu0  ;;  %v5686_v30 = vpop.f32.mrf.mxu1 }
 0xaf0   : > { %v5690_v58 = vadd.f32 %v5683_v43, %v9082_v28  ;;  %v5685_v18 = vadd.f32 %v5684_v4, %v5642_v7  ;;  %v5644_v47 = vadd.f32 %v5643_v11, %v5601_v15 }
 0xaf2   : > { %v5687_v45 = vadd.f32 %v5686_v30, %v5644_v47  ;;  %v5693_v61 = vadd.f32 %v5690_v58, %v5689_v1  ;;  %v5691_v57 = vadd.f32 %v5685_v18, %v9088_v20 }
 0xaf4   : > { %v5692_v34 = vadd.f32 %v5687_v45, %v9084_v59  ;;  %5694 = vadd.xlane.f32.xlu1 %v5693_v61 }
 0xaf6   : > { %v5696_v16 = vadd.f32 %v5692_v34, %v5691_v57 }
 0xaf8   : > { %5697 = vadd.xlane.f32.xlu1 %v5696_v16 }
 0xb7d   : > { %v5695_v49 = vpop.xlane.xlu1 %5694 }
 0xb7e   : > { %v5699_v55 = vmul.f32 0.00390625, %v5695_v49 }
 0xb80   : > { %v5701_v48 = vsub.f32 %v5689_v1, %v5699_v55  ;;  %v5702_v0 = vsub.f32 %v5690_v58, %v5699_v55 }
 0xb81   : > { %v5698_v26 = vpop.xlane.xlu1 %5697 }
 0xb82   : > { %v5700_v32 = vmul.f32 0.00390625, %v5698_v26  ;;  %v5705_v39 = vmul.f32 %v5701_v48, %v5701_v48  ;;  %v5706_v28 = vmul.f32 %v5702_v0, %v5702_v0 }
 0xb84   : > { %v5703_v50 = vsub.f32 %v5691_v57, %v5700_v32  ;;  %v5704_v31 = vsub.f32 %v5692_v34, %v5700_v32  ;;  %v5709_v14 = vadd.f32 %v5706_v28, %v5705_v39 }
 0xb86   : > { %5710 = vadd.xlane.f32.xlu0 %v5709_v14  ;;  %v5707_v51 = vmul.f32 %v5703_v50, %v5703_v50  ;;  %v5708_v20 = vmul.f32 %v5704_v31, %v5704_v31 }
 0xb88   : > { %v5712_v27 = vadd.f32 %v5708_v20, %v5707_v51 }
 0xb8a   : > { %5713 = vadd.xlane.f32.xlu1 %v5712_v27 }
 0xc0f   : > { %v5711_v59 = vpop.xlane.xlu0 %5710 }
 0xc10   : > { %v5715_v13 = vmul.f32 0.00390625, %v5711_v59 }
 0xc12   : > { %v5717_v36 = vadd.f32 1e-05, %v5715_v13 }
 0xc13   : > { %v5714_v24 = vpop.xlane.xlu1 %5713 }
 0xc14   : > { %7129 = vrsqrt.f32 %v5717_v36  ;;  %v5716_v52 = vmul.f32 0.00390625, %v5714_v24 }
 0xc16   : > { %v5718_v60 = vadd.f32 1e-05, %v5716_v52 }
 0xc18   : > { %7131 = vrsqrt.f32 %v5718_v60 }
 0xc21   : > { %v7130_v12 = vpop.eup %7129 }
 0xc22   : > { %v5721_v22 = vmul.f32 %v7130_v12, %v5701_v48  ;;  %v5722_v37 = vmul.f32 %v7130_v12, %v5702_v0 }
 0xc24   : > { %v5737_v53 = vmul.f32 %v5730_v6, %v5721_v22  ;;  %v5738_v3 = vmul.f32 %v5734_v8, %v5722_v37 }
 0xc25   : > { %v7132_v29 = vpop.eup %7131 }
 0xc26   : > { %v5753_v41 = vadd.f32 %v5746_v19, %v5737_v53  ;;  %v5754_v42 = vadd.f32 %v5750_v21, %v5738_v3  ;;  %v5723_v23 = vmul.f32 %v7132_v29, %v5703_v50  ;;  %v5724_v9 = vmul.f32 %v7132_v29, %v5704_v31 }
 0xc28   : > { %5757 = vst [vmem:[%s727_s3] sm:$0xff] %v5753_v41  ;;  %5758 = vst [vmem:[%s727_s3 + $0x8] sm:$0xff] %v5754_v42  ;;  %v5739_v17 = vmul.f32 %v5730_v6, %v5723_v23  ;;  %v5740_v10 = vmul.f32 %v5734_v8, %v5724_v9  ;;  %5768 = sbr.rel (!%p9876_p7) target bundleno = 3125 (0xc35), region = 124 }
 0xc2a   : > { %v5755_v25 = vadd.f32 %v5746_v19, %v5739_v17  ;;  %v5756_v33 = vadd.f32 %v5750_v21, %v5740_v10 }
 0xc2c   : > { %6422 = vst [vmem:[%s727_s3 + $0x10] sm:$0xff] %v5755_v25  ;;  %6423 = vst [vmem:[%s727_s3 + $0x18] sm:$0xff] %v5756_v33 }
 0xc2f   : > { %v5784_v63 = vld [vmem:[%s727_s3] sm:$0xff]  ;;  %v5786_v5 = vld [vmem:[%s727_s3 + $0x8] sm:$0xff] }
 0xc30   : > { %5785 = vst [vmem:[%s5771_s2] sm:$0xff] %v5784_v63  ;;  %5787 = vst [vmem:[%s5771_s2 + $0x8] sm:$0xff] %v5786_v5 }
 0xc33   : > { %v5788_v40 = vld [vmem:[%s727_s3 + $0x10] sm:$0xff]  ;;  %v5790_v35 = vld [vmem:[%s727_s3 + $0x18] sm:$0xff] }
 0xc34   : > { %5789 = vst [vmem:[%s5771_s2 + $0x20] sm:$0xff] %v5788_v40  ;;  %5791 = vst [vmem:[%s5771_s2 + $0x28] sm:$0xff] %v5790_v35 }
 0xc35 PF: > { %s9879_s29 = sld [smem:[#allocation12_spill]] }
 0xc36   : > { %s9880_s3 = sld [smem:[#allocation10_spill]] }
 0xc37   : > { %s9881_s28 = sld [smem:[#allocation13_spill]] }
 0xc3b   : > { %p31_p9 = scmp.ge.s32.totalorder %s9879_s29, 4  }
 0xc3d   :  { %33 = sbr.rel (!%p31_p9) target bundleno = 14 (0xe), region = 179 }
 0xc42   :  { %5807 = vsyncpa [#allocation3], 1 }
 0xc43   :  { %5809 = vsyncpa [#allocation3 + $0x1], 1 }
 0xc44   :  { %5810 = vsyncpa [#allocation5], 1 }

</bundles_post_ra>
